<compile_context>
chip_gen: v7x
topology: tpu7x:2x2x1
jax: 0.10.0
libtpu: 0.0.40
codegen_flags: <defaults>
</compile_context>

<pallas_src>
import functools

import jax
import jax.numpy as jnp
from jax.experimental import pallas as pl
from jax.experimental.pallas import tpu as pltpu


# ----------------------------------------------------------------------------
# DFT / IDFT matrices (folded into weights at prep time)
# ----------------------------------------------------------------------------

def _dft_mats(n):
    idx = jnp.arange(n, dtype=jnp.float32)
    ang = jnp.outer(idx, idx) * (2.0 * jnp.pi / n)
    # fft: real = x @ cos, imag = x @ (-sin)
    return jnp.cos(ang), -jnp.sin(ang)


def _idft_real_mats(n):
    idx = jnp.arange(n, dtype=jnp.float32)
    ang = jnp.outer(idx, idx) * (2.0 * jnp.pi / n)
    # Re(ifft(R + iI))[t] = (1/n) * sum_k (R[k]*cos - I[k]*sin)
    return jnp.cos(ang) / n, -jnp.sin(ang) / n


def _leaky(x, slope):
    return jnp.where(x >= 0, x, slope * x)


# ----------------------------------------------------------------------------
# Single fused Pallas kernel: the whole forward pass
# ----------------------------------------------------------------------------

def _stemgnn_kernel(*args, treedef, n_flat, B, N, T, U, fout, alpha, stack_cnt):
    x_gru_ref, x_blk_ref, wk_ref, wq_ref = args[:4]
    flat_refs = args[4:4 + n_flat]
    out_ref, att_ref = args[4 + n_flat:]

    # Unflatten REFS (not values) -> each weight is loaded at its point of use.
    p = jax.tree_util.tree_unflatten(treedef, list(flat_refs))
    f32 = jnp.float32
    BN = B * N

    # -------- GRU over the node axis (seq len = N, hidden = U), h0 = 0 -------
    # x_gru_ref: (N*B, T) rows ordered (node, batch); input projection hoisted.
    gi_all = (jnp.dot(x_gru_ref[...], p["gru_w_ihT"][...], preferred_element_type=f32)
              + p["gru_b_ih"][...])                                # (N*B, 3U)
    w_hhT = p["gru_w_hhT"][...]
    b_hh = p["gru_b_hh"][...]
    h = jnp.zeros((B, U), f32)
    key_acc = jnp.zeros((B, U), f32)      # = sum_s weight_key[s]   * gru_out[s]
    query_acc = jnp.zeros((B, U), f32)    # = sum_s weight_query[s] * gru_out[s]
    for s in range(N):                    # unrolled recurrence, single invocation
        gi = gi_all[s * B:(s + 1) * B, :]
        gh = jnp.dot(h, w_hhT, preferred_element_type=f32) + b_hh
        rz = jax.nn.sigmoid(gi[:, :2 * U] + gh[:, :2 * U])         # fused r,z gates
        r = rz[:, :U]
        z = rz[:, U:]
        n_ = jnp.tanh(gi[:, 2 * U:] + r * gh[:, 2 * U:])
        h = (1.0 - z) * n_ + z * h
        key_acc = key_acc + wk_ref[s] * h
        query_acc = query_acc + wq_ref[s] * h

    # -------- self-graph attention (batched over b) -> mean -> Laplacian -----
    keyT = jnp.transpose(key_acc)                         # (U, B)
    d = jnp.concatenate(
        [keyT[:, b:b + 1] + query_acc[b:b + 1, :] for b in range(B)], axis=0)   # (B*U, U)
    d = _leaky(d, alpha)
    d = d - jnp.max(d, axis=-1, keepdims=True)            # per-(b,row) max preserved
    e = jnp.exp(d)
    att_all = e / jnp.sum(e, axis=-1, keepdims=True)
    att_mean = att_all[0:U, :]
    for b in range(1, B):
        att_mean = att_mean + att_all[b * U:(b + 1) * U, :]
    att_mean = att_mean * (1.0 / B)
    # TODO(synk): nn.Dropout(p=0.5) on the attention is treated as identity (inference).

    att_T = jnp.transpose(att_mean)
    att_sym = 0.5 * (att_mean + att_T)
    att_ref[...] = att_sym

    degree_col = jnp.sum(att_mean, axis=1, keepdims=True)           # (U, 1), pre-symm row sums
    degree_row = jnp.sum(att_T, axis=0, keepdims=True)              # (1, U), same values
    inv_col = 1.0 / (jnp.sqrt(degree_col) + 1e-7)
    inv_row = 1.0 / (jnp.sqrt(degree_row) + 1e-7)
    ri = jax.lax.broadcasted_iota(jnp.int32, (U, U), 0)
    ci = jax.lax.broadcasted_iota(jnp.int32, (U, U), 1)
    m = jnp.where(ri == ci, degree_col - att_sym, -att_sym)         # diag(degree) - att_sym
    lap = inv_col * m * inv_row                                     # VPU scaling, no matmuls

    # -------- block-diagonal Laplacian over batch + Chebyshev recursion ------
    zero_n = jnp.zeros((N, N), f32)
    bd_rows = []
    for b in range(B):
        bd_rows.append(jnp.concatenate(
            [lap if bb == b else zero_n for bb in range(B)], axis=1))
    bd_lap = jnp.concatenate(bd_rows, axis=0)                       # (BN, BN) = kron(I_B, lap)
    cheb2 = bd_lap                                                  # k=1 (k=0 term is zero)
    cheb3 = 2.0 * jnp.dot(bd_lap, cheb2, preferred_element_type=f32)
    cheb4 = 2.0 * jnp.dot(bd_lap, cheb3, preferred_element_type=f32) - cheb2
    chebs = (cheb2, cheb3, cheb4)

    # -------- two StockBlockLayers -------------------------------------------
    x_rows = x_blk_ref[...]                                         # (B*N, T), batch-major rows
    forecast_sum = jnp.zeros((BN, T), f32)
    for stack_i in range(stack_cnt):
        bp = p["blocks"][stack_i]

        # GFT: one matmul per Chebyshev order (shared between real/imag streams).
        g = [jnp.dot(chebs[k], x_rows, preferred_element_type=f32) for k in range(3)]

        # Level-0 GLU with the DFT folded into the weights (k=0 zero-term dropped).
        yr = bp["glu0_rb"][...]
        yi = bp["glu0_ib"][...]
        for k in range(3):
            yr = yr + jnp.dot(g[k], bp["glu0_rw"][k][...], preferred_element_type=f32)
            yi = yi + jnp.dot(g[k], bp["glu0_iw"][k][...], preferred_element_type=f32)
        real = yr[:, :fout] * jax.nn.sigmoid(yr[:, fout:])
        img = yi[:, :fout] * jax.nn.sigmoid(yi[:, fout:])

        # GLU levels 1, 2 (left/right weights fused into one matmul per stream).
        for lvl in range(2):
            y = (jnp.dot(real, bp["glu_rw"][lvl][...], preferred_element_type=f32)
                 + bp["glu_rb"][lvl][...])
            real = y[:, :fout] * jax.nn.sigmoid(y[:, fout:])
            y = (jnp.dot(img, bp["glu_iw"][lvl][...], preferred_element_type=f32)
                 + bp["glu_ib"][lvl][...])
            img = y[:, :fout] * jax.nn.sigmoid(y[:, fout:])

        # IDFT (real part) + K-summed GConv weight folded into two matmuls.
        # TODO(synk): literal torch.fft.ifft over the trailing (real, imag) pair is
        # shape-inconsistent with the following matmul; the intended StemGNN semantics
        # real(ifft(real + i*img, axis=time)) are used instead.
        igfted = (jnp.dot(real, bp["cr"][...], preferred_element_type=f32)
                  + jnp.dot(img, bp["ci"][...], preferred_element_type=f32))    # (B*N, mT)

        fsrc = jax.nn.sigmoid(
            jnp.dot(igfted, bp["forecast_wT"][...], preferred_element_type=f32)
            + bp["forecast_b"][...])
        forecast_sum = forecast_sum + (
            jnp.dot(fsrc, bp["forecast_result_wT"][...], preferred_element_type=f32)
            + bp["forecast_result_b"][...])

        if stack_i == 0 and "backcast_wT" in bp:         # backcast feeds the next stack
            short = (jnp.dot(x_rows, bp["backcast_short_wT"][...],
                             preferred_element_type=f32)
                     + bp["backcast_short_b"][...])
            x_rows = jax.nn.sigmoid(
                jnp.dot(igfted, bp["backcast_wT"][...], preferred_element_type=f32)
                + bp["backcast_b"][...] - short)

    # -------- final fc: Linear(T,T) -> LeakyReLU(0.01) -> Linear(T,horizon) --
    h1 = _leaky(jnp.dot(forecast_sum, p["fc1_wT"][...], preferred_element_type=f32)
                + p["fc1_b"][...], 0.01)
    # Lane-dense output (horizon, B*N): NT contraction over the T dims.
    out = jax.lax.dot_general(p["fc2_w"][...], h1, (((1,), (1,)), ((), ())),
                              preferred_element_type=f32) + p["fc2_b"][...]
    out_ref[...] = out


# ----------------------------------------------------------------------------
# Forward wrapper (all heavy work inside the single pallas_call)
# ----------------------------------------------------------------------------

def model_forward(prep, x, *, time_step, multi, stack_cnt, alpha, horizon):
    B, T, N = x.shape
    U = N
    fout = 4 * time_step * multi

    # Layout plumbing only: two tiny pre-transposed row views of the input.
    x_gru_rows = jnp.transpose(x, (2, 0, 1)).reshape(N * B, T)   # (node, batch) rows
    x_blk_rows = jnp.transpose(x, (0, 2, 1)).reshape(B * N, T)   # (batch, node) rows

    flat, treedef = jax.tree_util.tree_flatten(prep["vmem"])
    kernel = functools.partial(
        _stemgnn_kernel, treedef=treedef, n_flat=len(flat),
        B=B, N=N, T=T, U=U, fout=fout, alpha=alpha, stack_cnt=stack_cnt)

    vmem = pl.BlockSpec(memory_space=pltpu.MemorySpace.VMEM)
    smem = pl.BlockSpec(memory_space=pltpu.MemorySpace.SMEM)
    fc_rows, attention = pl.pallas_call(
        kernel,
        out_shape=(jax.ShapeDtypeStruct((horizon, B * N), jnp.float32),
                   jax.ShapeDtypeStruct((N, N), jnp.float32)),
        in_specs=[vmem, vmem, smem, smem] + [vmem] * len(flat),
        out_specs=(vmem, vmem),
    )(x_gru_rows, x_blk_rows, prep["wk"], prep["wq"], *flat)

    forecast = jnp.transpose(fc_rows.reshape(horizon, B, N), (1, 0, 2))  # (B, horizon, N)
    return forecast, attention


# ----------------------------------------------------------------------------
# Parameters: raw (PyTorch-layout) init + one-time preparation (pre-transpose/fuse)
# ----------------------------------------------------------------------------

def init_params(key, units, time_step, multi, stack_cnt, horizon):
    U, T = units, time_step
    mT = T * multi
    fout = 4 * mT
    fin0 = 4 * T
    keys = iter(jax.random.split(key, 512))

    def w(shape, scale=0.1):
        return scale * jax.random.normal(next(keys), shape, dtype=jnp.float32)

    params = {
        "weight_key": w((U, 1)),
        "weight_query": w((U, 1)),
        "gru_w_ih": w((3 * U, T)),
        "gru_w_hh": w((3 * U, U)),
        "gru_b_ih": w((3 * U,)),
        "gru_b_hh": w((3 * U,)),
        "fc1_w": w((T, T)), "fc1_b": w((T,)),
        "fc2_w": w((horizon, T)), "fc2_b": w((horizon,)),
        "stock_block": [],
    }
    for _ in range(stack_cnt):
        glus = []
        for i in range(3):
            fin = fin0 if i == 0 else fout
            for _ in range(2):
                glus.append({"wl": w((fout, fin)), "bl": w((fout,)),
                             "wr": w((fout, fin)), "br": w((fout,))})
        params["stock_block"].append({
            "weight": w((4, mT, mT)),
            "forecast_w": w((mT, mT)), "forecast_b": w((mT,)),
            "forecast_result_w": w((T, mT)), "forecast_result_b": w((T,)),
            "backcast_w": w((T, mT)), "backcast_b": w((T,)),
            "backcast_short_w": w((T, T)), "backcast_short_b": w((T,)),
            "glus": glus,
        })
    return params


def prepare_params(params, *, time_step, multi, stack_cnt):
    """One-time weight prep: pre-transpose, fuse GLU left/right, fold DFT into the
    level-0 GLU weights (dropping the all-zero k=0 Chebyshev term) and fold the IDFT
    into the GConv weight."""
    T = time_step
    mT = T * multi

    dft_cos, dft_msin = _dft_mats(T)
    idft_c, idft_s = _idft_real_mats(mT)

    def fuse(g):
        return (jnp.concatenate([g["wl"].T, g["wr"].T], axis=1),       # (fin, 2*fout)
                jnp.concatenate([g["bl"], g["br"]]).reshape(1, -1))

    blocks = []
    for i in range(stack_cnt):
        sp = params["stock_block"][i]
        w0r, b0r = fuse(sp["glus"][0])                                  # (4T, 2*fout)
        w0i, b0i = fuse(sp["glus"][1])
        glu0_rw = [dft_cos @ w0r[k * T:(k + 1) * T, :] for k in (1, 2, 3)]   # (T, 2*fout) each
        glu0_iw = [dft_msin @ w0i[k * T:(k + 1) * T, :] for k in (1, 2, 3)]
        glu_rw, glu_rb, glu_iw, glu_ib = [], [], [], []
        for lvl in (1, 2):
            wr_, br_ = fuse(sp["glus"][2 * lvl])
            wi_, bi_ = fuse(sp["glus"][2 * lvl + 1])
            glu_rw.append(wr_); glu_rb.append(br_)
            glu_iw.append(wi_); glu_ib.append(bi_)
        cr = jnp.concatenate([idft_c @ sp["weight"][k] for k in range(4)], axis=0)   # (4*mT, mT)
        ci = jnp.concatenate([idft_s @ sp["weight"][k] for k in range(4)], axis=0)
        blk = {
            "glu0_rw": glu0_rw, "glu0_iw": glu0_iw,
            "glu0_rb": b0r, "glu0_ib": b0i,
            "glu_rw": glu_rw, "glu_rb": glu_rb,
            "glu_iw": glu_iw, "glu_ib": glu_ib,
            "cr": cr, "ci": ci,
            "forecast_wT": sp["forecast_w"].T,
            "forecast_b": sp["forecast_b"].reshape(1, -1),
            "forecast_result_wT": sp["forecast_result_w"].T,
            "forecast_result_b": sp["forecast_result_b"].reshape(1, -1),
        }
        if i == 0:
            blk["backcast_wT"] = sp["backcast_w"].T
            blk["backcast_b"] = sp["backcast_b"].reshape(1, -1)
            blk["backcast_short_wT"] = sp["backcast_short_w"].T
            blk["backcast_short_b"] = sp["backcast_short_b"].reshape(1, -1)
        blocks.append(blk)

    vmem = {
        "gru_w_ihT": params["gru_w_ih"].T,
        "gru_w_hhT": params["gru_w_hh"].T,
        "gru_b_ih": params["gru_b_ih"].reshape(1, -1),
        "gru_b_hh": params["gru_b_hh"].reshape(1, -1),
        "fc1_wT": params["fc1_w"].T, "fc1_b": params["fc1_b"].reshape(1, -1),
        "fc2_w": params["fc2_w"], "fc2_b": params["fc2_b"].reshape(-1, 1),
        "blocks": blocks,
    }
    return {"vmem": vmem,
            "wk": params["weight_key"].reshape(-1),
            "wq": params["weight_query"].reshape(-1)}


# ----------------------------------------------------------------------------

if __name__ == "__main__":
    units = 8          # node count == GRU hidden size (StemGNN requirement)
    stack_cnt = 2
    time_step = 4
    multi_layer = 2
    horizon = 1
    batch = 2
    leaky_alpha = 0.2

    root = jax.random.PRNGKey(0)
    k_params, k_x = jax.random.split(root)
    params = init_params(k_params, units, time_step, multi_layer, stack_cnt, horizon)
    prep = prepare_params(params, time_step=time_step, multi=multi_layer,
                          stack_cnt=stack_cnt)
    x = jax.random.normal(k_x, (batch, time_step, units), dtype=jnp.float32)

    fwd = jax.jit(functools.partial(
        model_forward, time_step=time_step, multi=multi_layer,
        stack_cnt=stack_cnt, alpha=leaky_alpha, horizon=horizon))

    forecast, attention = fwd(prep, x)
    jax.block_until_ready(forecast)
    jax.block_until_ready(attention)

    assert forecast.shape == (batch, 1, units), forecast.shape
    assert attention.shape == (units, units), attention.shape
    assert bool(jnp.all(jnp.isfinite(forecast))) and bool(jnp.all(jnp.isfinite(attention)))
    print("KERNEL_OK")
</pallas_src>

<mosaic_0001>
module attributes {stable_mosaic.version = 11 : i64} {
  func.func @_stemgnn_kernel(%arg0: memref<16x4xf32, #tpu.memory_space<vmem>>, %arg1: memref<16x4xf32, #tpu.memory_space<vmem>>, %arg2: memref<8xf32, #tpu.memory_space<smem>>, %arg3: memref<8xf32, #tpu.memory_space<smem>>, %arg4: memref<1x4xf32, #tpu.memory_space<vmem>>, %arg5: memref<1x4xf32, #tpu.memory_space<vmem>>, %arg6: memref<4x4xf32, #tpu.memory_space<vmem>>, %arg7: memref<8x4xf32, #tpu.memory_space<vmem>>, %arg8: memref<32x8xf32, #tpu.memory_space<vmem>>, %arg9: memref<32x8xf32, #tpu.memory_space<vmem>>, %arg10: memref<1x8xf32, #tpu.memory_space<vmem>>, %arg11: memref<1x4xf32, #tpu.memory_space<vmem>>, %arg12: memref<8x4xf32, #tpu.memory_space<vmem>>, %arg13: memref<8x8xf32, #tpu.memory_space<vmem>>, %arg14: memref<1x64xf32, #tpu.memory_space<vmem>>, %arg15: memref<4x64xf32, #tpu.memory_space<vmem>>, %arg16: memref<4x64xf32, #tpu.memory_space<vmem>>, %arg17: memref<4x64xf32, #tpu.memory_space<vmem>>, %arg18: memref<1x64xf32, #tpu.memory_space<vmem>>, %arg19: memref<4x64xf32, #tpu.memory_space<vmem>>, %arg20: memref<4x64xf32, #tpu.memory_space<vmem>>, %arg21: memref<4x64xf32, #tpu.memory_space<vmem>>, %arg22: memref<1x64xf32, #tpu.memory_space<vmem>>, %arg23: memref<1x64xf32, #tpu.memory_space<vmem>>, %arg24: memref<32x64xf32, #tpu.memory_space<vmem>>, %arg25: memref<32x64xf32, #tpu.memory_space<vmem>>, %arg26: memref<1x64xf32, #tpu.memory_space<vmem>>, %arg27: memref<1x64xf32, #tpu.memory_space<vmem>>, %arg28: memref<32x64xf32, #tpu.memory_space<vmem>>, %arg29: memref<32x64xf32, #tpu.memory_space<vmem>>, %arg30: memref<32x8xf32, #tpu.memory_space<vmem>>, %arg31: memref<32x8xf32, #tpu.memory_space<vmem>>, %arg32: memref<1x8xf32, #tpu.memory_space<vmem>>, %arg33: memref<1x4xf32, #tpu.memory_space<vmem>>, %arg34: memref<8x4xf32, #tpu.memory_space<vmem>>, %arg35: memref<8x8xf32, #tpu.memory_space<vmem>>, %arg36: memref<1x64xf32, #tpu.memory_space<vmem>>, %arg37: memref<4x64xf32, #tpu.memory_space<vmem>>, %arg38: memref<4x64xf32, #tpu.memory_space<vmem>>, %arg39: memref<4x64xf32, #tpu.memory_space<vmem>>, %arg40: memref<1x64xf32, #tpu.memory_space<vmem>>, %arg41: memref<4x64xf32, #tpu.memory_space<vmem>>, %arg42: memref<4x64xf32, #tpu.memory_space<vmem>>, %arg43: memref<4x64xf32, #tpu.memory_space<vmem>>, %arg44: memref<1x64xf32, #tpu.memory_space<vmem>>, %arg45: memref<1x64xf32, #tpu.memory_space<vmem>>, %arg46: memref<32x64xf32, #tpu.memory_space<vmem>>, %arg47: memref<32x64xf32, #tpu.memory_space<vmem>>, %arg48: memref<1x64xf32, #tpu.memory_space<vmem>>, %arg49: memref<1x64xf32, #tpu.memory_space<vmem>>, %arg50: memref<32x64xf32, #tpu.memory_space<vmem>>, %arg51: memref<32x64xf32, #tpu.memory_space<vmem>>, %arg52: memref<1x4xf32, #tpu.memory_space<vmem>>, %arg53: memref<4x4xf32, #tpu.memory_space<vmem>>, %arg54: memref<1x1xf32, #tpu.memory_space<vmem>>, %arg55: memref<1x4xf32, #tpu.memory_space<vmem>>, %arg56: memref<1x24xf32, #tpu.memory_space<vmem>>, %arg57: memref<1x24xf32, #tpu.memory_space<vmem>>, %arg58: memref<8x24xf32, #tpu.memory_space<vmem>>, %arg59: memref<4x24xf32, #tpu.memory_space<vmem>>, %arg60: memref<1x16xf32, #tpu.memory_space<vmem>>, %arg61: memref<8x8xf32, #tpu.memory_space<vmem>>) attributes {dimension_semantics = [], scalar_prefetch = 0 : i64, scratch_operands = 0 : i64, tpu.core_type = #tpu.core_type<tc>} {
    %c0 = arith.constant 0 : index
    %c0_0 = arith.constant 0 : index
    %0 = vector.load %arg0[%c0, %c0_0] : memref<16x4xf32, #tpu.memory_space<vmem>>, vector<16x4xf32>
    %c0_1 = arith.constant 0 : index
    %c0_2 = arith.constant 0 : index
    %1 = vector.load %arg59[%c0_1, %c0_2] : memref<4x24xf32, #tpu.memory_space<vmem>>, vector<4x24xf32>
    %cst = arith.constant dense<0.000000e+00> : vector<16x24xf32>
    %2 = tpu.matmul %0, %1, %cst {dimension_numbers = #tpu.dot_dimension_numbers<[1], [0], [0], [1], [0, 0, 1, 1], [], []>} : vector<16x4xf32>, vector<4x24xf32>, vector<16x24xf32> -> vector<16x24xf32>
    %c0_3 = arith.constant 0 : index
    %c0_4 = arith.constant 0 : index
    %3 = vector.load %arg57[%c0_3, %c0_4] : memref<1x24xf32, #tpu.memory_space<vmem>>, vector<1x24xf32>
    %4 = vector.broadcast %3 : vector<1x24xf32> to vector<16x24xf32>
    %5 = arith.addf %2, %4 : vector<16x24xf32>
    %c0_5 = arith.constant 0 : index
    %c0_6 = arith.constant 0 : index
    %6 = vector.load %arg58[%c0_5, %c0_6] : memref<8x24xf32, #tpu.memory_space<vmem>>, vector<8x24xf32>
    %c0_7 = arith.constant 0 : index
    %c0_8 = arith.constant 0 : index
    %7 = vector.load %arg56[%c0_7, %c0_8] : memref<1x24xf32, #tpu.memory_space<vmem>>, vector<1x24xf32>
    %cst_9 = arith.constant 0.000000e+00 : f32
    %8 = vector.broadcast %cst_9 : f32 to vector<2x8xf32>
    %cst_10 = arith.constant 0.000000e+00 : f32
    %9 = vector.broadcast %cst_10 : f32 to vector<2x8xf32>
    %cst_11 = arith.constant 0.000000e+00 : f32
    %10 = vector.broadcast %cst_11 : f32 to vector<2x8xf32>
    %11 = vector.extract_strided_slice %5 {offsets = [0, 0], sizes = [2, 24], strides = [1, 1]} : vector<16x24xf32> to vector<2x24xf32>
    %cst_12 = arith.constant dense<0.000000e+00> : vector<2x24xf32>
    %12 = tpu.matmul %8, %6, %cst_12 {dimension_numbers = #tpu.dot_dimension_numbers<[1], [0], [0], [1], [0, 0, 1, 1], [], []>} : vector<2x8xf32>, vector<8x24xf32>, vector<2x24xf32> -> vector<2x24xf32>
    %13 = vector.broadcast %7 : vector<1x24xf32> to vector<2x24xf32>
    %14 = arith.addf %12, %13 : vector<2x24xf32>
    %15 = vector.extract_strided_slice %11 {offsets = [0, 0], sizes = [2, 16], strides = [1, 1]} : vector<2x24xf32> to vector<2x16xf32>
    %16 = vector.extract_strided_slice %14 {offsets = [0, 0], sizes = [2, 16], strides = [1, 1]} : vector<2x24xf32> to vector<2x16xf32>
    %17 = arith.addf %15, %16 : vector<2x16xf32>
    %18 = arith.negf %17 : vector<2x16xf32>
    %19 = math.exp %18 : vector<2x16xf32>
    %cst_13 = arith.constant 1.000000e+00 : f32
    %20 = vector.broadcast %cst_13 : f32 to vector<2x16xf32>
    %21 = arith.addf %20, %19 : vector<2x16xf32>
    %22 = arith.divf %20, %21 : vector<2x16xf32>
    %23 = vector.extract_strided_slice %22 {offsets = [0, 0], sizes = [2, 8], strides = [1, 1]} : vector<2x16xf32> to vector<2x8xf32>
    %24 = vector.extract_strided_slice %22 {offsets = [0, 8], sizes = [2, 8], strides = [1, 1]} : vector<2x16xf32> to vector<2x8xf32>
    %25 = vector.extract_strided_slice %11 {offsets = [0, 16], sizes = [2, 8], strides = [1, 1]} : vector<2x24xf32> to vector<2x8xf32>
    %26 = vector.extract_strided_slice %14 {offsets = [0, 16], sizes = [2, 8], strides = [1, 1]} : vector<2x24xf32> to vector<2x8xf32>
    %27 = arith.mulf %23, %26 : vector<2x8xf32>
    %28 = arith.addf %25, %27 : vector<2x8xf32>
    %29 = math.tanh %28 : vector<2x8xf32>
    %cst_14 = arith.constant 1.000000e+00 : f32
    %30 = vector.broadcast %cst_14 : f32 to vector<2x8xf32>
    %31 = arith.subf %30, %24 : vector<2x8xf32>
    %32 = arith.mulf %31, %29 : vector<2x8xf32>
    %33 = arith.mulf %24, %8 : vector<2x8xf32>
    %34 = arith.addf %32, %33 : vector<2x8xf32>
    %c0_15 = arith.constant 0 : index
    %35 = memref.load %arg2[%c0_15] : memref<8xf32, #tpu.memory_space<smem>>
    %36 = vector.broadcast %35 : f32 to vector<2x8xf32>
    %37 = arith.mulf %36, %34 : vector<2x8xf32>
    %38 = arith.addf %9, %37 : vector<2x8xf32>
    %c0_16 = arith.constant 0 : index
    %39 = memref.load %arg3[%c0_16] : memref<8xf32, #tpu.memory_space<smem>>
    %40 = vector.broadcast %39 : f32 to vector<2x8xf32>
    %41 = arith.mulf %40, %34 : vector<2x8xf32>
    %42 = arith.addf %10, %41 : vector<2x8xf32>
    %43 = vector.extract_strided_slice %5 {offsets = [2, 0], sizes = [2, 24], strides = [1, 1]} : vector<16x24xf32> to vector<2x24xf32>
    %cst_17 = arith.constant dense<0.000000e+00> : vector<2x24xf32>
    %44 = tpu.matmul %34, %6, %cst_17 {dimension_numbers = #tpu.dot_dimension_numbers<[1], [0], [0], [1], [0, 0, 1, 1], [], []>} : vector<2x8xf32>, vector<8x24xf32>, vector<2x24xf32> -> vector<2x24xf32>
    %45 = vector.broadcast %7 : vector<1x24xf32> to vector<2x24xf32>
    %46 = arith.addf %44, %45 : vector<2x24xf32>
    %47 = vector.extract_strided_slice %43 {offsets = [0, 0], sizes = [2, 16], strides = [1, 1]} : vector<2x24xf32> to vector<2x16xf32>
    %48 = vector.extract_strided_slice %46 {offsets = [0, 0], sizes = [2, 16], strides = [1, 1]} : vector<2x24xf32> to vector<2x16xf32>
    %49 = arith.addf %47, %48 : vector<2x16xf32>
    %50 = arith.negf %49 : vector<2x16xf32>
    %51 = math.exp %50 : vector<2x16xf32>
    %cst_18 = arith.constant 1.000000e+00 : f32
    %52 = vector.broadcast %cst_18 : f32 to vector<2x16xf32>
    %53 = arith.addf %52, %51 : vector<2x16xf32>
    %54 = arith.divf %52, %53 : vector<2x16xf32>
    %55 = vector.extract_strided_slice %54 {offsets = [0, 0], sizes = [2, 8], strides = [1, 1]} : vector<2x16xf32> to vector<2x8xf32>
    %56 = vector.extract_strided_slice %54 {offsets = [0, 8], sizes = [2, 8], strides = [1, 1]} : vector<2x16xf32> to vector<2x8xf32>
    %57 = vector.extract_strided_slice %43 {offsets = [0, 16], sizes = [2, 8], strides = [1, 1]} : vector<2x24xf32> to vector<2x8xf32>
    %58 = vector.extract_strided_slice %46 {offsets = [0, 16], sizes = [2, 8], strides = [1, 1]} : vector<2x24xf32> to vector<2x8xf32>
    %59 = arith.mulf %55, %58 : vector<2x8xf32>
    %60 = arith.addf %57, %59 : vector<2x8xf32>
    %61 = math.tanh %60 : vector<2x8xf32>
    %cst_19 = arith.constant 1.000000e+00 : f32
    %62 = vector.broadcast %cst_19 : f32 to vector<2x8xf32>
    %63 = arith.subf %62, %56 : vector<2x8xf32>
    %64 = arith.mulf %63, %61 : vector<2x8xf32>
    %65 = arith.mulf %56, %34 : vector<2x8xf32>
    %66 = arith.addf %64, %65 : vector<2x8xf32>
    %c1 = arith.constant 1 : index
    %67 = memref.load %arg2[%c1] : memref<8xf32, #tpu.memory_space<smem>>
    %68 = vector.broadcast %67 : f32 to vector<2x8xf32>
    %69 = arith.mulf %68, %66 : vector<2x8xf32>
    %70 = arith.addf %38, %69 : vector<2x8xf32>
    %c1_20 = arith.constant 1 : index
    %71 = memref.load %arg3[%c1_20] : memref<8xf32, #tpu.memory_space<smem>>
    %72 = vector.broadcast %71 : f32 to vector<2x8xf32>
    %73 = arith.mulf %72, %66 : vector<2x8xf32>
    %74 = arith.addf %42, %73 : vector<2x8xf32>
    %75 = vector.extract_strided_slice %5 {offsets = [4, 0], sizes = [2, 24], strides = [1, 1]} : vector<16x24xf32> to vector<2x24xf32>
    %cst_21 = arith.constant dense<0.000000e+00> : vector<2x24xf32>
    %76 = tpu.matmul %66, %6, %cst_21 {dimension_numbers = #tpu.dot_dimension_numbers<[1], [0], [0], [1], [0, 0, 1, 1], [], []>} : vector<2x8xf32>, vector<8x24xf32>, vector<2x24xf32> -> vector<2x24xf32>
    %77 = vector.broadcast %7 : vector<1x24xf32> to vector<2x24xf32>
    %78 = arith.addf %76, %77 : vector<2x24xf32>
    %79 = vector.extract_strided_slice %75 {offsets = [0, 0], sizes = [2, 16], strides = [1, 1]} : vector<2x24xf32> to vector<2x16xf32>
    %80 = vector.extract_strided_slice %78 {offsets = [0, 0], sizes = [2, 16], strides = [1, 1]} : vector<2x24xf32> to vector<2x16xf32>
    %81 = arith.addf %79, %80 : vector<2x16xf32>
    %82 = arith.negf %81 : vector<2x16xf32>
    %83 = math.exp %82 : vector<2x16xf32>
    %cst_22 = arith.constant 1.000000e+00 : f32
    %84 = vector.broadcast %cst_22 : f32 to vector<2x16xf32>
    %85 = arith.addf %84, %83 : vector<2x16xf32>
    %86 = arith.divf %84, %85 : vector<2x16xf32>
    %87 = vector.extract_strided_slice %86 {offsets = [0, 0], sizes = [2, 8], strides = [1, 1]} : vector<2x16xf32> to vector<2x8xf32>
    %88 = vector.extract_strided_slice %86 {offsets = [0, 8], sizes = [2, 8], strides = [1, 1]} : vector<2x16xf32> to vector<2x8xf32>
    %89 = vector.extract_strided_slice %75 {offsets = [0, 16], sizes = [2, 8], strides = [1, 1]} : vector<2x24xf32> to vector<2x8xf32>
    %90 = vector.extract_strided_slice %78 {offsets = [0, 16], sizes = [2, 8], strides = [1, 1]} : vector<2x24xf32> to vector<2x8xf32>
    %91 = arith.mulf %87, %90 : vector<2x8xf32>
    %92 = arith.addf %89, %91 : vector<2x8xf32>
    %93 = math.tanh %92 : vector<2x8xf32>
    %cst_23 = arith.constant 1.000000e+00 : f32
    %94 = vector.broadcast %cst_23 : f32 to vector<2x8xf32>
    %95 = arith.subf %94, %88 : vector<2x8xf32>
    %96 = arith.mulf %95, %93 : vector<2x8xf32>
    %97 = arith.mulf %88, %66 : vector<2x8xf32>
    %98 = arith.addf %96, %97 : vector<2x8xf32>
    %c2 = arith.constant 2 : index
    %99 = memref.load %arg2[%c2] : memref<8xf32, #tpu.memory_space<smem>>
    %100 = vector.broadcast %99 : f32 to vector<2x8xf32>
    %101 = arith.mulf %100, %98 : vector<2x8xf32>
    %102 = arith.addf %70, %101 : vector<2x8xf32>
    %c2_24 = arith.constant 2 : index
    %103 = memref.load %arg3[%c2_24] : memref<8xf32, #tpu.memory_space<smem>>
    %104 = vector.broadcast %103 : f32 to vector<2x8xf32>
    %105 = arith.mulf %104, %98 : vector<2x8xf32>
    %106 = arith.addf %74, %105 : vector<2x8xf32>
    %107 = vector.extract_strided_slice %5 {offsets = [6, 0], sizes = [2, 24], strides = [1, 1]} : vector<16x24xf32> to vector<2x24xf32>
    %cst_25 = arith.constant dense<0.000000e+00> : vector<2x24xf32>
    %108 = tpu.matmul %98, %6, %cst_25 {dimension_numbers = #tpu.dot_dimension_numbers<[1], [0], [0], [1], [0, 0, 1, 1], [], []>} : vector<2x8xf32>, vector<8x24xf32>, vector<2x24xf32> -> vector<2x24xf32>
    %109 = vector.broadcast %7 : vector<1x24xf32> to vector<2x24xf32>
    %110 = arith.addf %108, %109 : vector<2x24xf32>
    %111 = vector.extract_strided_slice %107 {offsets = [0, 0], sizes = [2, 16], strides = [1, 1]} : vector<2x24xf32> to vector<2x16xf32>
    %112 = vector.extract_strided_slice %110 {offsets = [0, 0], sizes = [2, 16], strides = [1, 1]} : vector<2x24xf32> to vector<2x16xf32>
    %113 = arith.addf %111, %112 : vector<2x16xf32>
    %114 = arith.negf %113 : vector<2x16xf32>
    %115 = math.exp %114 : vector<2x16xf32>
    %cst_26 = arith.constant 1.000000e+00 : f32
    %116 = vector.broadcast %cst_26 : f32 to vector<2x16xf32>
    %117 = arith.addf %116, %115 : vector<2x16xf32>
    %118 = arith.divf %116, %117 : vector<2x16xf32>
    %119 = vector.extract_strided_slice %118 {offsets = [0, 0], sizes = [2, 8], strides = [1, 1]} : vector<2x16xf32> to vector<2x8xf32>
    %120 = vector.extract_strided_slice %118 {offsets = [0, 8], sizes = [2, 8], strides = [1, 1]} : vector<2x16xf32> to vector<2x8xf32>
    %121 = vector.extract_strided_slice %107 {offsets = [0, 16], sizes = [2, 8], strides = [1, 1]} : vector<2x24xf32> to vector<2x8xf32>
    %122 = vector.extract_strided_slice %110 {offsets = [0, 16], sizes = [2, 8], strides = [1, 1]} : vector<2x24xf32> to vector<2x8xf32>
    %123 = arith.mulf %119, %122 : vector<2x8xf32>
    %124 = arith.addf %121, %123 : vector<2x8xf32>
    %125 = math.tanh %124 : vector<2x8xf32>
    %cst_27 = arith.constant 1.000000e+00 : f32
    %126 = vector.broadcast %cst_27 : f32 to vector<2x8xf32>
    %127 = arith.subf %126, %120 : vector<2x8xf32>
    %128 = arith.mulf %127, %125 : vector<2x8xf32>
    %129 = arith.mulf %120, %98 : vector<2x8xf32>
    %130 = arith.addf %128, %129 : vector<2x8xf32>
    %c3 = arith.constant 3 : index
    %131 = memref.load %arg2[%c3] : memref<8xf32, #tpu.memory_space<smem>>
    %132 = vector.broadcast %131 : f32 to vector<2x8xf32>
    %133 = arith.mulf %132, %130 : vector<2x8xf32>
    %134 = arith.addf %102, %133 : vector<2x8xf32>
    %c3_28 = arith.constant 3 : index
    %135 = memref.load %arg3[%c3_28] : memref<8xf32, #tpu.memory_space<smem>>
    %136 = vector.broadcast %135 : f32 to vector<2x8xf32>
    %137 = arith.mulf %136, %130 : vector<2x8xf32>
    %138 = arith.addf %106, %137 : vector<2x8xf32>
    %139 = vector.extract_strided_slice %5 {offsets = [8, 0], sizes = [2, 24], strides = [1, 1]} : vector<16x24xf32> to vector<2x24xf32>
    %cst_29 = arith.constant dense<0.000000e+00> : vector<2x24xf32>
    %140 = tpu.matmul %130, %6, %cst_29 {dimension_numbers = #tpu.dot_dimension_numbers<[1], [0], [0], [1], [0, 0, 1, 1], [], []>} : vector<2x8xf32>, vector<8x24xf32>, vector<2x24xf32> -> vector<2x24xf32>
    %141 = vector.broadcast %7 : vector<1x24xf32> to vector<2x24xf32>
    %142 = arith.addf %140, %141 : vector<2x24xf32>
    %143 = vector.extract_strided_slice %139 {offsets = [0, 0], sizes = [2, 16], strides = [1, 1]} : vector<2x24xf32> to vector<2x16xf32>
    %144 = vector.extract_strided_slice %142 {offsets = [0, 0], sizes = [2, 16], strides = [1, 1]} : vector<2x24xf32> to vector<2x16xf32>
    %145 = arith.addf %143, %144 : vector<2x16xf32>
    %146 = arith.negf %145 : vector<2x16xf32>
    %147 = math.exp %146 : vector<2x16xf32>
    %cst_30 = arith.constant 1.000000e+00 : f32
    %148 = vector.broadcast %cst_30 : f32 to vector<2x16xf32>
    %149 = arith.addf %148, %147 : vector<2x16xf32>
    %150 = arith.divf %148, %149 : vector<2x16xf32>
    %151 = vector.extract_strided_slice %150 {offsets = [0, 0], sizes = [2, 8], strides = [1, 1]} : vector<2x16xf32> to vector<2x8xf32>
    %152 = vector.extract_strided_slice %150 {offsets = [0, 8], sizes = [2, 8], strides = [1, 1]} : vector<2x16xf32> to vector<2x8xf32>
    %153 = vector.extract_strided_slice %139 {offsets = [0, 16], sizes = [2, 8], strides = [1, 1]} : vector<2x24xf32> to vector<2x8xf32>
    %154 = vector.extract_strided_slice %142 {offsets = [0, 16], sizes = [2, 8], strides = [1, 1]} : vector<2x24xf32> to vector<2x8xf32>
    %155 = arith.mulf %151, %154 : vector<2x8xf32>
    %156 = arith.addf %153, %155 : vector<2x8xf32>
    %157 = math.tanh %156 : vector<2x8xf32>
    %cst_31 = arith.constant 1.000000e+00 : f32
    %158 = vector.broadcast %cst_31 : f32 to vector<2x8xf32>
    %159 = arith.subf %158, %152 : vector<2x8xf32>
    %160 = arith.mulf %159, %157 : vector<2x8xf32>
    %161 = arith.mulf %152, %130 : vector<2x8xf32>
    %162 = arith.addf %160, %161 : vector<2x8xf32>
    %c4 = arith.constant 4 : index
    %163 = memref.load %arg2[%c4] : memref<8xf32, #tpu.memory_space<smem>>
    %164 = vector.broadcast %163 : f32 to vector<2x8xf32>
    %165 = arith.mulf %164, %162 : vector<2x8xf32>
    %166 = arith.addf %134, %165 : vector<2x8xf32>
    %c4_32 = arith.constant 4 : index
    %167 = memref.load %arg3[%c4_32] : memref<8xf32, #tpu.memory_space<smem>>
    %168 = vector.broadcast %167 : f32 to vector<2x8xf32>
    %169 = arith.mulf %168, %162 : vector<2x8xf32>
    %170 = arith.addf %138, %169 : vector<2x8xf32>
    %171 = vector.extract_strided_slice %5 {offsets = [10, 0], sizes = [2, 24], strides = [1, 1]} : vector<16x24xf32> to vector<2x24xf32>
    %cst_33 = arith.constant dense<0.000000e+00> : vector<2x24xf32>
    %172 = tpu.matmul %162, %6, %cst_33 {dimension_numbers = #tpu.dot_dimension_numbers<[1], [0], [0], [1], [0, 0, 1, 1], [], []>} : vector<2x8xf32>, vector<8x24xf32>, vector<2x24xf32> -> vector<2x24xf32>
    %173 = vector.broadcast %7 : vector<1x24xf32> to vector<2x24xf32>
    %174 = arith.addf %172, %173 : vector<2x24xf32>
    %175 = vector.extract_strided_slice %171 {offsets = [0, 0], sizes = [2, 16], strides = [1, 1]} : vector<2x24xf32> to vector<2x16xf32>
    %176 = vector.extract_strided_slice %174 {offsets = [0, 0], sizes = [2, 16], strides = [1, 1]} : vector<2x24xf32> to vector<2x16xf32>
    %177 = arith.addf %175, %176 : vector<2x16xf32>
    %178 = arith.negf %177 : vector<2x16xf32>
    %179 = math.exp %178 : vector<2x16xf32>
    %cst_34 = arith.constant 1.000000e+00 : f32
    %180 = vector.broadcast %cst_34 : f32 to vector<2x16xf32>
    %181 = arith.addf %180, %179 : vector<2x16xf32>
    %182 = arith.divf %180, %181 : vector<2x16xf32>
    %183 = vector.extract_strided_slice %182 {offsets = [0, 0], sizes = [2, 8], strides = [1, 1]} : vector<2x16xf32> to vector<2x8xf32>
    %184 = vector.extract_strided_slice %182 {offsets = [0, 8], sizes = [2, 8], strides = [1, 1]} : vector<2x16xf32> to vector<2x8xf32>
    %185 = vector.extract_strided_slice %171 {offsets = [0, 16], sizes = [2, 8], strides = [1, 1]} : vector<2x24xf32> to vector<2x8xf32>
    %186 = vector.extract_strided_slice %174 {offsets = [0, 16], sizes = [2, 8], strides = [1, 1]} : vector<2x24xf32> to vector<2x8xf32>
    %187 = arith.mulf %183, %186 : vector<2x8xf32>
    %188 = arith.addf %185, %187 : vector<2x8xf32>
    %189 = math.tanh %188 : vector<2x8xf32>
    %cst_35 = arith.constant 1.000000e+00 : f32
    %190 = vector.broadcast %cst_35 : f32 to vector<2x8xf32>
    %191 = arith.subf %190, %184 : vector<2x8xf32>
    %192 = arith.mulf %191, %189 : vector<2x8xf32>
    %193 = arith.mulf %184, %162 : vector<2x8xf32>
    %194 = arith.addf %192, %193 : vector<2x8xf32>
    %c5 = arith.constant 5 : index
    %195 = memref.load %arg2[%c5] : memref<8xf32, #tpu.memory_space<smem>>
    %196 = vector.broadcast %195 : f32 to vector<2x8xf32>
    %197 = arith.mulf %196, %194 : vector<2x8xf32>
    %198 = arith.addf %166, %197 : vector<2x8xf32>
    %c5_36 = arith.constant 5 : index
    %199 = memref.load %arg3[%c5_36] : memref<8xf32, #tpu.memory_space<smem>>
    %200 = vector.broadcast %199 : f32 to vector<2x8xf32>
    %201 = arith.mulf %200, %194 : vector<2x8xf32>
    %202 = arith.addf %170, %201 : vector<2x8xf32>
    %203 = vector.extract_strided_slice %5 {offsets = [12, 0], sizes = [2, 24], strides = [1, 1]} : vector<16x24xf32> to vector<2x24xf32>
    %cst_37 = arith.constant dense<0.000000e+00> : vector<2x24xf32>
    %204 = tpu.matmul %194, %6, %cst_37 {dimension_numbers = #tpu.dot_dimension_numbers<[1], [0], [0], [1], [0, 0, 1, 1], [], []>} : vector<2x8xf32>, vector<8x24xf32>, vector<2x24xf32> -> vector<2x24xf32>
    %205 = vector.broadcast %7 : vector<1x24xf32> to vector<2x24xf32>
    %206 = arith.addf %204, %205 : vector<2x24xf32>
    %207 = vector.extract_strided_slice %203 {offsets = [0, 0], sizes = [2, 16], strides = [1, 1]} : vector<2x24xf32> to vector<2x16xf32>
    %208 = vector.extract_strided_slice %206 {offsets = [0, 0], sizes = [2, 16], strides = [1, 1]} : vector<2x24xf32> to vector<2x16xf32>
    %209 = arith.addf %207, %208 : vector<2x16xf32>
    %210 = arith.negf %209 : vector<2x16xf32>
    %211 = math.exp %210 : vector<2x16xf32>
    %cst_38 = arith.constant 1.000000e+00 : f32
    %212 = vector.broadcast %cst_38 : f32 to vector<2x16xf32>
    %213 = arith.addf %212, %211 : vector<2x16xf32>
    %214 = arith.divf %212, %213 : vector<2x16xf32>
    %215 = vector.extract_strided_slice %214 {offsets = [0, 0], sizes = [2, 8], strides = [1, 1]} : vector<2x16xf32> to vector<2x8xf32>
    %216 = vector.extract_strided_slice %214 {offsets = [0, 8], sizes = [2, 8], strides = [1, 1]} : vector<2x16xf32> to vector<2x8xf32>
    %217 = vector.extract_strided_slice %203 {offsets = [0, 16], sizes = [2, 8], strides = [1, 1]} : vector<2x24xf32> to vector<2x8xf32>
    %218 = vector.extract_strided_slice %206 {offsets = [0, 16], sizes = [2, 8], strides = [1, 1]} : vector<2x24xf32> to vector<2x8xf32>
    %219 = arith.mulf %215, %218 : vector<2x8xf32>
    %220 = arith.addf %217, %219 : vector<2x8xf32>
    %221 = math.tanh %220 : vector<2x8xf32>
    %cst_39 = arith.constant 1.000000e+00 : f32
    %222 = vector.broadcast %cst_39 : f32 to vector<2x8xf32>
    %223 = arith.subf %222, %216 : vector<2x8xf32>
    %224 = arith.mulf %223, %221 : vector<2x8xf32>
    %225 = arith.mulf %216, %194 : vector<2x8xf32>
    %226 = arith.addf %224, %225 : vector<2x8xf32>
    %c6 = arith.constant 6 : index
    %227 = memref.load %arg2[%c6] : memref<8xf32, #tpu.memory_space<smem>>
    %228 = vector.broadcast %227 : f32 to vector<2x8xf32>
    %229 = arith.mulf %228, %226 : vector<2x8xf32>
    %230 = arith.addf %198, %229 : vector<2x8xf32>
    %c6_40 = arith.constant 6 : index
    %231 = memref.load %arg3[%c6_40] : memref<8xf32, #tpu.memory_space<smem>>
    %232 = vector.broadcast %231 : f32 to vector<2x8xf32>
    %233 = arith.mulf %232, %226 : vector<2x8xf32>
    %234 = arith.addf %202, %233 : vector<2x8xf32>
    %235 = vector.extract_strided_slice %5 {offsets = [14, 0], sizes = [2, 24], strides = [1, 1]} : vector<16x24xf32> to vector<2x24xf32>
    %cst_41 = arith.constant dense<0.000000e+00> : vector<2x24xf32>
    %236 = tpu.matmul %226, %6, %cst_41 {dimension_numbers = #tpu.dot_dimension_numbers<[1], [0], [0], [1], [0, 0, 1, 1], [], []>} : vector<2x8xf32>, vector<8x24xf32>, vector<2x24xf32> -> vector<2x24xf32>
    %237 = vector.broadcast %7 : vector<1x24xf32> to vector<2x24xf32>
    %238 = arith.addf %236, %237 : vector<2x24xf32>
    %239 = vector.extract_strided_slice %235 {offsets = [0, 0], sizes = [2, 16], strides = [1, 1]} : vector<2x24xf32> to vector<2x16xf32>
    %240 = vector.extract_strided_slice %238 {offsets = [0, 0], sizes = [2, 16], strides = [1, 1]} : vector<2x24xf32> to vector<2x16xf32>
    %241 = arith.addf %239, %240 : vector<2x16xf32>
    %242 = arith.negf %241 : vector<2x16xf32>
    %243 = math.exp %242 : vector<2x16xf32>
    %cst_42 = arith.constant 1.000000e+00 : f32
    %244 = vector.broadcast %cst_42 : f32 to vector<2x16xf32>
    %245 = arith.addf %244, %243 : vector<2x16xf32>
    %246 = arith.divf %244, %245 : vector<2x16xf32>
    %247 = vector.extract_strided_slice %246 {offsets = [0, 0], sizes = [2, 8], strides = [1, 1]} : vector<2x16xf32> to vector<2x8xf32>
    %248 = vector.extract_strided_slice %246 {offsets = [0, 8], sizes = [2, 8], strides = [1, 1]} : vector<2x16xf32> to vector<2x8xf32>
    %249 = vector.extract_strided_slice %235 {offsets = [0, 16], sizes = [2, 8], strides = [1, 1]} : vector<2x24xf32> to vector<2x8xf32>
    %250 = vector.extract_strided_slice %238 {offsets = [0, 16], sizes = [2, 8], strides = [1, 1]} : vector<2x24xf32> to vector<2x8xf32>
    %251 = arith.mulf %247, %250 : vector<2x8xf32>
    %252 = arith.addf %249, %251 : vector<2x8xf32>
    %253 = math.tanh %252 : vector<2x8xf32>
    %cst_43 = arith.constant 1.000000e+00 : f32
    %254 = vector.broadcast %cst_43 : f32 to vector<2x8xf32>
    %255 = arith.subf %254, %248 : vector<2x8xf32>
    %256 = arith.mulf %255, %253 : vector<2x8xf32>
    %257 = arith.mulf %248, %226 : vector<2x8xf32>
    %258 = arith.addf %256, %257 : vector<2x8xf32>
    %c7 = arith.constant 7 : index
    %259 = memref.load %arg2[%c7] : memref<8xf32, #tpu.memory_space<smem>>
    %260 = vector.broadcast %259 : f32 to vector<2x8xf32>
    %261 = arith.mulf %260, %258 : vector<2x8xf32>
    %262 = arith.addf %230, %261 : vector<2x8xf32>
    %c7_44 = arith.constant 7 : index
    %263 = memref.load %arg3[%c7_44] : memref<8xf32, #tpu.memory_space<smem>>
    %264 = vector.broadcast %263 : f32 to vector<2x8xf32>
    %265 = arith.mulf %264, %258 : vector<2x8xf32>
    %266 = arith.addf %234, %265 : vector<2x8xf32>
    %267 = tpu.transpose %262, [1, 0] : vector<2x8xf32> -> vector<8x2xf32>
    %268 = vector.extract_strided_slice %267 {offsets = [0, 0], sizes = [8, 1], strides = [1, 1]} : vector<8x2xf32> to vector<8x1xf32>
    %269 = vector.extract_strided_slice %266 {offsets = [0, 0], sizes = [1, 8], strides = [1, 1]} : vector<2x8xf32> to vector<1x8xf32>
    %270 = vector.broadcast %268 : vector<8x1xf32> to vector<8x8xf32>
    %271 = vector.broadcast %269 : vector<1x8xf32> to vector<8x8xf32>
    %272 = arith.addf %270, %271 : vector<8x8xf32>
    %273 = vector.extract_strided_slice %267 {offsets = [0, 1], sizes = [8, 1], strides = [1, 1]} : vector<8x2xf32> to vector<8x1xf32>
    %274 = vector.extract_strided_slice %266 {offsets = [1, 0], sizes = [1, 8], strides = [1, 1]} : vector<2x8xf32> to vector<1x8xf32>
    %275 = vector.broadcast %273 : vector<8x1xf32> to vector<8x8xf32>
    %276 = vector.broadcast %274 : vector<1x8xf32> to vector<8x8xf32>
    %277 = arith.addf %275, %276 : vector<8x8xf32>
    %278 = tpu.concatenate %272, %277 in 0 : vector<8x8xf32>, vector<8x8xf32> -> vector<16x8xf32>
    %cst_45 = arith.constant 0.000000e+00 : f32
    %279 = vector.broadcast %cst_45 : f32 to vector<16x8xf32>
    %280 = arith.cmpf oge, %278, %279 : vector<16x8xf32>
    %cst_46 = arith.constant 2.000000e-01 : f32
    %281 = vector.broadcast %cst_46 : f32 to vector<16x8xf32>
    %282 = arith.mulf %281, %278 : vector<16x8xf32>
    %283 = arith.select %280, %278, %282 : vector<16x8xi1>, vector<16x8xf32>
    %cst_47 = arith.constant dense<0xFF800000> : vector<16xf32>
    %284 = vector.multi_reduction <maximumf>, %283, %cst_47 [1] : vector<16x8xf32> to vector<16xf32>
    %285 = vector.shape_cast %284 : vector<16xf32> to vector<16x1xf32>
    %286 = vector.broadcast %285 : vector<16x1xf32> to vector<16x8xf32>
    %287 = arith.subf %283, %286 : vector<16x8xf32>
    %288 = math.exp %287 : vector<16x8xf32>
    %cst_48 = arith.constant dense<0.000000e+00> : vector<16xf32>
    %289 = vector.multi_reduction <add>, %288, %cst_48 [1] : vector<16x8xf32> to vector<16xf32>
    %290 = vector.shape_cast %289 : vector<16xf32> to vector<16x1xf32>
    %291 = vector.broadcast %290 : vector<16x1xf32> to vector<16x8xf32>
    %292 = arith.divf %288, %291 : vector<16x8xf32>
    %293 = vector.extract_strided_slice %292 {offsets = [0, 0], sizes = [8, 8], strides = [1, 1]} : vector<16x8xf32> to vector<8x8xf32>
    %294 = vector.extract_strided_slice %292 {offsets = [8, 0], sizes = [8, 8], strides = [1, 1]} : vector<16x8xf32> to vector<8x8xf32>
    %295 = arith.addf %293, %294 : vector<8x8xf32>
    %cst_49 = arith.constant 5.000000e-01 : f32
    %296 = vector.broadcast %cst_49 : f32 to vector<8x8xf32>
    %297 = arith.mulf %295, %296 : vector<8x8xf32>
    %298 = tpu.transpose %297, [1, 0] : vector<8x8xf32> -> vector<8x8xf32>
    %299 = arith.addf %297, %298 : vector<8x8xf32>
    %cst_50 = arith.constant 5.000000e-01 : f32
    %300 = vector.broadcast %cst_50 : f32 to vector<8x8xf32>
    %301 = arith.mulf %300, %299 : vector<8x8xf32>
    %c0_51 = arith.constant 0 : index
    %c0_52 = arith.constant 0 : index
    %302 = vector.load %arg61[%c0_51, %c0_52] : memref<8x8xf32, #tpu.memory_space<vmem>>, vector<8x8xf32>
    tpu.vector_store %arg61[%c0_51, %c0_52], %301 {strides = array<i32>} : memref<8x8xf32, #tpu.memory_space<vmem>>, vector<8x8xf32>,
    %cst_53 = arith.constant dense<0.000000e+00> : vector<8xf32>
    %303 = vector.multi_reduction <add>, %297, %cst_53 [1] : vector<8x8xf32> to vector<8xf32>
    %304 = vector.shape_cast %303 : vector<8xf32> to vector<8x1xf32>
    %cst_54 = arith.constant dense<0.000000e+00> : vector<8xf32>
    %305 = vector.multi_reduction <add>, %298, %cst_54 [0] : vector<8x8xf32> to vector<8xf32>
    %306 = vector.shape_cast %305 : vector<8xf32> to vector<1x8xf32>
    %307 = math.sqrt %304 : vector<8x1xf32>
    %cst_55 = arith.constant 1.000000e-07 : f32
    %308 = vector.broadcast %cst_55 : f32 to vector<8x1xf32>
    %309 = arith.addf %307, %308 : vector<8x1xf32>
    %cst_56 = arith.constant 1.000000e+00 : f32
    %310 = vector.broadcast %cst_56 : f32 to vector<8x1xf32>
    %311 = arith.divf %310, %309 : vector<8x1xf32>
    %312 = math.sqrt %306 : vector<1x8xf32>
    %cst_57 = arith.constant 1.000000e-07 : f32
    %313 = vector.broadcast %cst_57 : f32 to vector<1x8xf32>
    %314 = arith.addf %312, %313 : vector<1x8xf32>
    %cst_58 = arith.constant 1.000000e+00 : f32
    %315 = vector.broadcast %cst_58 : f32 to vector<1x8xf32>
    %316 = arith.divf %315, %314 : vector<1x8xf32>
    %317 = tpu.iota {dimensions = array<i32: 0>} : vector<8x8xi32>
    %318 = tpu.iota {dimensions = array<i32: 1>} : vector<8x8xi32>
    %319 = arith.cmpi eq, %317, %318 : vector<8x8xi32>
    %320 = vector.broadcast %304 : vector<8x1xf32> to vector<8x8xf32>
    %321 = arith.subf %320, %301 : vector<8x8xf32>
    %cst_59 = arith.constant 0.000000e+00 : f32
    %322 = vector.broadcast %cst_59 : f32 to vector<8x8xf32>
    %323 = arith.subf %322, %301 : vector<8x8xf32>
    %324 = arith.select %319, %321, %323 : vector<8x8xi1>, vector<8x8xf32>
    %325 = vector.broadcast %311 : vector<8x1xf32> to vector<8x8xf32>
    %326 = arith.mulf %325, %324 : vector<8x8xf32>
    %327 = vector.broadcast %316 : vector<1x8xf32> to vector<8x8xf32>
    %328 = arith.mulf %326, %327 : vector<8x8xf32>
    %cst_60 = arith.constant 0.000000e+00 : f32
    %329 = vector.broadcast %cst_60 : f32 to vector<8x8xf32>
    %330 = tpu.concatenate %328, %329 in 1 : vector<8x8xf32>, vector<8x8xf32> -> vector<8x16xf32>
    %331 = tpu.concatenate %329, %328 in 1 : vector<8x8xf32>, vector<8x8xf32> -> vector<8x16xf32>
    %332 = tpu.concatenate %330, %331 in 0 : vector<8x16xf32>, vector<8x16xf32> -> vector<16x16xf32>
    %cst_61 = arith.constant dense<0.000000e+00> : vector<16x16xf32>
    %333 = tpu.matmul %332, %332, %cst_61 {dimension_numbers = #tpu.dot_dimension_numbers<[1], [0], [0], [1], [0, 0, 1, 1], [], []>} : vector<16x16xf32>, vector<16x16xf32>, vector<16x16xf32> -> vector<16x16xf32>
    %cst_62 = arith.constant 2.000000e+00 : f32
    %334 = vector.broadcast %cst_62 : f32 to vector<16x16xf32>
    %335 = arith.mulf %334, %333 : vector<16x16xf32>
    %cst_63 = arith.constant dense<0.000000e+00> : vector<16x16xf32>
    %336 = tpu.matmul %332, %335, %cst_63 {dimension_numbers = #tpu.dot_dimension_numbers<[1], [0], [0], [1], [0, 0, 1, 1], [], []>} : vector<16x16xf32>, vector<16x16xf32>, vector<16x16xf32> -> vector<16x16xf32>
    %cst_64 = arith.constant 2.000000e+00 : f32
    %337 = vector.broadcast %cst_64 : f32 to vector<16x16xf32>
    %338 = arith.mulf %337, %336 : vector<16x16xf32>
    %339 = arith.subf %338, %332 : vector<16x16xf32>
    %c0_65 = arith.constant 0 : index
    %c0_66 = arith.constant 0 : index
    %340 = vector.load %arg1[%c0_65, %c0_66] : memref<16x4xf32, #tpu.memory_space<vmem>>, vector<16x4xf32>
    %cst_67 = arith.constant 0.000000e+00 : f32
    %341 = vector.broadcast %cst_67 : f32 to vector<16x4xf32>
    %cst_68 = arith.constant dense<0.000000e+00> : vector<16x4xf32>
    %342 = tpu.matmul %332, %340, %cst_68 {dimension_numbers = #tpu.dot_dimension_numbers<[1], [0], [0], [1], [0, 0, 1, 1], [], []>} : vector<16x16xf32>, vector<16x4xf32>, vector<16x4xf32> -> vector<16x4xf32>
    %cst_69 = arith.constant dense<0.000000e+00> : vector<16x4xf32>
    %343 = tpu.matmul %335, %340, %cst_69 {dimension_numbers = #tpu.dot_dimension_numbers<[1], [0], [0], [1], [0, 0, 1, 1], [], []>} : vector<16x16xf32>, vector<16x4xf32>, vector<16x4xf32> -> vector<16x4xf32>
    %cst_70 = arith.constant dense<0.000000e+00> : vector<16x4xf32>
    %344 = tpu.matmul %339, %340, %cst_70 {dimension_numbers = #tpu.dot_dimension_numbers<[1], [0], [0], [1], [0, 0, 1, 1], [], []>} : vector<16x16xf32>, vector<16x4xf32>, vector<16x4xf32> -> vector<16x4xf32>
    %c0_71 = arith.constant 0 : index
    %c0_72 = arith.constant 0 : index
    %345 = vector.load %arg18[%c0_71, %c0_72] : memref<1x64xf32, #tpu.memory_space<vmem>>, vector<1x64xf32>
    %c0_73 = arith.constant 0 : index
    %c0_74 = arith.constant 0 : index
    %346 = vector.load %arg14[%c0_73, %c0_74] : memref<1x64xf32, #tpu.memory_space<vmem>>, vector<1x64xf32>
    %c0_75 = arith.constant 0 : index
    %c0_76 = arith.constant 0 : index
    %347 = vector.load %arg19[%c0_75, %c0_76] : memref<4x64xf32, #tpu.memory_space<vmem>>, vector<4x64xf32>
    %cst_77 = arith.constant dense<0.000000e+00> : vector<16x64xf32>
    %348 = tpu.matmul %342, %347, %cst_77 {dimension_numbers = #tpu.dot_dimension_numbers<[1], [0], [0], [1], [0, 0, 1, 1], [], []>} : vector<16x4xf32>, vector<4x64xf32>, vector<16x64xf32> -> vector<16x64xf32>
    %349 = vector.broadcast %345 : vector<1x64xf32> to vector<16x64xf32>
    %350 = arith.addf %349, %348 : vector<16x64xf32>
    %c0_78 = arith.constant 0 : index
    %c0_79 = arith.constant 0 : index
    %351 = vector.load %arg15[%c0_78, %c0_79] : memref<4x64xf32, #tpu.memory_space<vmem>>, vector<4x64xf32>
    %cst_80 = arith.constant dense<0.000000e+00> : vector<16x64xf32>
    %352 = tpu.matmul %342, %351, %cst_80 {dimension_numbers = #tpu.dot_dimension_numbers<[1], [0], [0], [1], [0, 0, 1, 1], [], []>} : vector<16x4xf32>, vector<4x64xf32>, vector<16x64xf32> -> vector<16x64xf32>
    %353 = vector.broadcast %346 : vector<1x64xf32> to vector<16x64xf32>
    %354 = arith.addf %353, %352 : vector<16x64xf32>
    %c0_81 = arith.constant 0 : index
    %c0_82 = arith.constant 0 : index
    %355 = vector.load %arg20[%c0_81, %c0_82] : memref<4x64xf32, #tpu.memory_space<vmem>>, vector<4x64xf32>
    %cst_83 = arith.constant dense<0.000000e+00> : vector<16x64xf32>
    %356 = tpu.matmul %343, %355, %cst_83 {dimension_numbers = #tpu.dot_dimension_numbers<[1], [0], [0], [1], [0, 0, 1, 1], [], []>} : vector<16x4xf32>, vector<4x64xf32>, vector<16x64xf32> -> vector<16x64xf32>
    %357 = arith.addf %350, %356 : vector<16x64xf32>
    %c0_84 = arith.constant 0 : index
    %c0_85 = arith.constant 0 : index
    %358 = vector.load %arg16[%c0_84, %c0_85] : memref<4x64xf32, #tpu.memory_space<vmem>>, vector<4x64xf32>
    %cst_86 = arith.constant dense<0.000000e+00> : vector<16x64xf32>
    %359 = tpu.matmul %343, %358, %cst_86 {dimension_numbers = #tpu.dot_dimension_numbers<[1], [0], [0], [1], [0, 0, 1, 1], [], []>} : vector<16x4xf32>, vector<4x64xf32>, vector<16x64xf32> -> vector<16x64xf32>
    %360 = arith.addf %354, %359 : vector<16x64xf32>
    %c0_87 = arith.constant 0 : index
    %c0_88 = arith.constant 0 : index
    %361 = vector.load %arg21[%c0_87, %c0_88] : memref<4x64xf32, #tpu.memory_space<vmem>>, vector<4x64xf32>
    %cst_89 = arith.constant dense<0.000000e+00> : vector<16x64xf32>
    %362 = tpu.matmul %344, %361, %cst_89 {dimension_numbers = #tpu.dot_dimension_numbers<[1], [0], [0], [1], [0, 0, 1, 1], [], []>} : vector<16x4xf32>, vector<4x64xf32>, vector<16x64xf32> -> vector<16x64xf32>
    %363 = arith.addf %357, %362 : vector<16x64xf32>
    %c0_90 = arith.constant 0 : index
    %c0_91 = arith.constant 0 : index
    %364 = vector.load %arg17[%c0_90, %c0_91] : memref<4x64xf32, #tpu.memory_space<vmem>>, vector<4x64xf32>
    %cst_92 = arith.constant dense<0.000000e+00> : vector<16x64xf32>
    %365 = tpu.matmul %344, %364, %cst_92 {dimension_numbers = #tpu.dot_dimension_numbers<[1], [0], [0], [1], [0, 0, 1, 1], [], []>} : vector<16x4xf32>, vector<4x64xf32>, vector<16x64xf32> -> vector<16x64xf32>
    %366 = arith.addf %360, %365 : vector<16x64xf32>
    %367 = vector.extract_strided_slice %363 {offsets = [0, 0], sizes = [16, 32], strides = [1, 1]} : vector<16x64xf32> to vector<16x32xf32>
    %368 = vector.extract_strided_slice %363 {offsets = [0, 32], sizes = [16, 32], strides = [1, 1]} : vector<16x64xf32> to vector<16x32xf32>
    %369 = arith.negf %368 : vector<16x32xf32>
    %370 = math.exp %369 : vector<16x32xf32>
    %cst_93 = arith.constant 1.000000e+00 : f32
    %371 = vector.broadcast %cst_93 : f32 to vector<16x32xf32>
    %372 = arith.addf %371, %370 : vector<16x32xf32>
    %373 = arith.divf %371, %372 : vector<16x32xf32>
    %374 = arith.mulf %367, %373 : vector<16x32xf32>
    %375 = vector.extract_strided_slice %366 {offsets = [0, 0], sizes = [16, 32], strides = [1, 1]} : vector<16x64xf32> to vector<16x32xf32>
    %376 = vector.extract_strided_slice %366 {offsets = [0, 32], sizes = [16, 32], strides = [1, 1]} : vector<16x64xf32> to vector<16x32xf32>
    %377 = arith.negf %376 : vector<16x32xf32>
    %378 = math.exp %377 : vector<16x32xf32>
    %cst_94 = arith.constant 1.000000e+00 : f32
    %379 = vector.broadcast %cst_94 : f32 to vector<16x32xf32>
    %380 = arith.addf %379, %378 : vector<16x32xf32>
    %381 = arith.divf %379, %380 : vector<16x32xf32>
    %382 = arith.mulf %375, %381 : vector<16x32xf32>
    %c0_95 = arith.constant 0 : index
    %c0_96 = arith.constant 0 : index
    %383 = vector.load %arg28[%c0_95, %c0_96] : memref<32x64xf32, #tpu.memory_space<vmem>>, vector<32x64xf32>
    %cst_97 = arith.constant dense<0.000000e+00> : vector<16x64xf32>
    %384 = tpu.matmul %374, %383, %cst_97 {dimension_numbers = #tpu.dot_dimension_numbers<[1], [0], [0], [1], [0, 0, 1, 1], [], []>} : vector<16x32xf32>, vector<32x64xf32>, vector<16x64xf32> -> vector<16x64xf32>
    %c0_98 = arith.constant 0 : index
    %c0_99 = arith.constant 0 : index
    %385 = vector.load %arg26[%c0_98, %c0_99] : memref<1x64xf32, #tpu.memory_space<vmem>>, vector<1x64xf32>
    %386 = vector.broadcast %385 : vector<1x64xf32> to vector<16x64xf32>
    %387 = arith.addf %384, %386 : vector<16x64xf32>
    %388 = vector.extract_strided_slice %387 {offsets = [0, 0], sizes = [16, 32], strides = [1, 1]} : vector<16x64xf32> to vector<16x32xf32>
    %389 = vector.extract_strided_slice %387 {offsets = [0, 32], sizes = [16, 32], strides = [1, 1]} : vector<16x64xf32> to vector<16x32xf32>
    %390 = arith.negf %389 : vector<16x32xf32>
    %391 = math.exp %390 : vector<16x32xf32>
    %cst_100 = arith.constant 1.000000e+00 : f32
    %392 = vector.broadcast %cst_100 : f32 to vector<16x32xf32>
    %393 = arith.addf %392, %391 : vector<16x32xf32>
    %394 = arith.divf %392, %393 : vector<16x32xf32>
    %395 = arith.mulf %388, %394 : vector<16x32xf32>
    %c0_101 = arith.constant 0 : index
    %c0_102 = arith.constant 0 : index
    %396 = vector.load %arg24[%c0_101, %c0_102] : memref<32x64xf32, #tpu.memory_space<vmem>>, vector<32x64xf32>
    %cst_103 = arith.constant dense<0.000000e+00> : vector<16x64xf32>
    %397 = tpu.matmul %382, %396, %cst_103 {dimension_numbers = #tpu.dot_dimension_numbers<[1], [0], [0], [1], [0, 0, 1, 1], [], []>} : vector<16x32xf32>, vector<32x64xf32>, vector<16x64xf32> -> vector<16x64xf32>
    %c0_104 = arith.constant 0 : index
    %c0_105 = arith.constant 0 : index
    %398 = vector.load %arg22[%c0_104, %c0_105] : memref<1x64xf32, #tpu.memory_space<vmem>>, vector<1x64xf32>
    %399 = vector.broadcast %398 : vector<1x64xf32> to vector<16x64xf32>
    %400 = arith.addf %397, %399 : vector<16x64xf32>
    %401 = vector.extract_strided_slice %400 {offsets = [0, 0], sizes = [16, 32], strides = [1, 1]} : vector<16x64xf32> to vector<16x32xf32>
    %402 = vector.extract_strided_slice %400 {offsets = [0, 32], sizes = [16, 32], strides = [1, 1]} : vector<16x64xf32> to vector<16x32xf32>
    %403 = arith.negf %402 : vector<16x32xf32>
    %404 = math.exp %403 : vector<16x32xf32>
    %cst_106 = arith.constant 1.000000e+00 : f32
    %405 = vector.broadcast %cst_106 : f32 to vector<16x32xf32>
    %406 = arith.addf %405, %404 : vector<16x32xf32>
    %407 = arith.divf %405, %406 : vector<16x32xf32>
    %408 = arith.mulf %401, %407 : vector<16x32xf32>
    %c0_107 = arith.constant 0 : index
    %c0_108 = arith.constant 0 : index
    %409 = vector.load %arg29[%c0_107, %c0_108] : memref<32x64xf32, #tpu.memory_space<vmem>>, vector<32x64xf32>
    %cst_109 = arith.constant dense<0.000000e+00> : vector<16x64xf32>
    %410 = tpu.matmul %395, %409, %cst_109 {dimension_numbers = #tpu.dot_dimension_numbers<[1], [0], [0], [1], [0, 0, 1, 1], [], []>} : vector<16x32xf32>, vector<32x64xf32>, vector<16x64xf32> -> vector<16x64xf32>
    %c0_110 = arith.constant 0 : index
    %c0_111 = arith.constant 0 : index
    %411 = vector.load %arg27[%c0_110, %c0_111] : memref<1x64xf32, #tpu.memory_space<vmem>>, vector<1x64xf32>
    %412 = vector.broadcast %411 : vector<1x64xf32> to vector<16x64xf32>
    %413 = arith.addf %410, %412 : vector<16x64xf32>
    %414 = vector.extract_strided_slice %413 {offsets = [0, 0], sizes = [16, 32], strides = [1, 1]} : vector<16x64xf32> to vector<16x32xf32>
    %415 = vector.extract_strided_slice %413 {offsets = [0, 32], sizes = [16, 32], strides = [1, 1]} : vector<16x64xf32> to vector<16x32xf32>
    %416 = arith.negf %415 : vector<16x32xf32>
    %417 = math.exp %416 : vector<16x32xf32>
    %cst_112 = arith.constant 1.000000e+00 : f32
    %418 = vector.broadcast %cst_112 : f32 to vector<16x32xf32>
    %419 = arith.addf %418, %417 : vector<16x32xf32>
    %420 = arith.divf %418, %419 : vector<16x32xf32>
    %421 = arith.mulf %414, %420 : vector<16x32xf32>
    %c0_113 = arith.constant 0 : index
    %c0_114 = arith.constant 0 : index
    %422 = vector.load %arg25[%c0_113, %c0_114] : memref<32x64xf32, #tpu.memory_space<vmem>>, vector<32x64xf32>
    %cst_115 = arith.constant dense<0.000000e+00> : vector<16x64xf32>
    %423 = tpu.matmul %408, %422, %cst_115 {dimension_numbers = #tpu.dot_dimension_numbers<[1], [0], [0], [1], [0, 0, 1, 1], [], []>} : vector<16x32xf32>, vector<32x64xf32>, vector<16x64xf32> -> vector<16x64xf32>
    %c0_116 = arith.constant 0 : index
    %c0_117 = arith.constant 0 : index
    %424 = vector.load %arg23[%c0_116, %c0_117] : memref<1x64xf32, #tpu.memory_space<vmem>>, vector<1x64xf32>
    %425 = vector.broadcast %424 : vector<1x64xf32> to vector<16x64xf32>
    %426 = arith.addf %423, %425 : vector<16x64xf32>
    %427 = vector.extract_strided_slice %426 {offsets = [0, 0], sizes = [16, 32], strides = [1, 1]} : vector<16x64xf32> to vector<16x32xf32>
    %428 = vector.extract_strided_slice %426 {offsets = [0, 32], sizes = [16, 32], strides = [1, 1]} : vector<16x64xf32> to vector<16x32xf32>
    %429 = arith.negf %428 : vector<16x32xf32>
    %430 = math.exp %429 : vector<16x32xf32>
    %cst_118 = arith.constant 1.000000e+00 : f32
    %431 = vector.broadcast %cst_118 : f32 to vector<16x32xf32>
    %432 = arith.addf %431, %430 : vector<16x32xf32>
    %433 = arith.divf %431, %432 : vector<16x32xf32>
    %434 = arith.mulf %427, %433 : vector<16x32xf32>
    %c0_119 = arith.constant 0 : index
    %c0_120 = arith.constant 0 : index
    %435 = vector.load %arg9[%c0_119, %c0_120] : memref<32x8xf32, #tpu.memory_space<vmem>>, vector<32x8xf32>
    %cst_121 = arith.constant dense<0.000000e+00> : vector<16x8xf32>
    %436 = tpu.matmul %421, %435, %cst_121 {dimension_numbers = #tpu.dot_dimension_numbers<[1], [0], [0], [1], [0, 0, 1, 1], [], []>} : vector<16x32xf32>, vector<32x8xf32>, vector<16x8xf32> -> vector<16x8xf32>
    %c0_122 = arith.constant 0 : index
    %c0_123 = arith.constant 0 : index
    %437 = vector.load %arg8[%c0_122, %c0_123] : memref<32x8xf32, #tpu.memory_space<vmem>>, vector<32x8xf32>
    %cst_124 = arith.constant dense<0.000000e+00> : vector<16x8xf32>
    %438 = tpu.matmul %434, %437, %cst_124 {dimension_numbers = #tpu.dot_dimension_numbers<[1], [0], [0], [1], [0, 0, 1, 1], [], []>} : vector<16x32xf32>, vector<32x8xf32>, vector<16x8xf32> -> vector<16x8xf32>
    %439 = arith.addf %436, %438 : vector<16x8xf32>
    %c0_125 = arith.constant 0 : index
    %c0_126 = arith.constant 0 : index
    %440 = vector.load %arg13[%c0_125, %c0_126] : memref<8x8xf32, #tpu.memory_space<vmem>>, vector<8x8xf32>
    %cst_127 = arith.constant dense<0.000000e+00> : vector<16x8xf32>
    %441 = tpu.matmul %439, %440, %cst_127 {dimension_numbers = #tpu.dot_dimension_numbers<[1], [0], [0], [1], [0, 0, 1, 1], [], []>} : vector<16x8xf32>, vector<8x8xf32>, vector<16x8xf32> -> vector<16x8xf32>
    %c0_128 = arith.constant 0 : index
    %c0_129 = arith.constant 0 : index
    %442 = vector.load %arg10[%c0_128, %c0_129] : memref<1x8xf32, #tpu.memory_space<vmem>>, vector<1x8xf32>
    %443 = vector.broadcast %442 : vector<1x8xf32> to vector<16x8xf32>
    %444 = arith.addf %441, %443 : vector<16x8xf32>
    %445 = arith.negf %444 : vector<16x8xf32>
    %446 = math.exp %445 : vector<16x8xf32>
    %cst_130 = arith.constant 1.000000e+00 : f32
    %447 = vector.broadcast %cst_130 : f32 to vector<16x8xf32>
    %448 = arith.addf %447, %446 : vector<16x8xf32>
    %449 = arith.divf %447, %448 : vector<16x8xf32>
    %c0_131 = arith.constant 0 : index
    %c0_132 = arith.constant 0 : index
    %450 = vector.load %arg12[%c0_131, %c0_132] : memref<8x4xf32, #tpu.memory_space<vmem>>, vector<8x4xf32>
    %cst_133 = arith.constant dense<0.000000e+00> : vector<16x4xf32>
    %451 = tpu.matmul %449, %450, %cst_133 {dimension_numbers = #tpu.dot_dimension_numbers<[1], [0], [0], [1], [0, 0, 1, 1], [], []>} : vector<16x8xf32>, vector<8x4xf32>, vector<16x4xf32> -> vector<16x4xf32>
    %c0_134 = arith.constant 0 : index
    %c0_135 = arith.constant 0 : index
    %452 = vector.load %arg11[%c0_134, %c0_135] : memref<1x4xf32, #tpu.memory_space<vmem>>, vector<1x4xf32>
    %453 = vector.broadcast %452 : vector<1x4xf32> to vector<16x4xf32>
    %454 = arith.addf %451, %453 : vector<16x4xf32>
    %455 = arith.addf %341, %454 : vector<16x4xf32>
    %c0_136 = arith.constant 0 : index
    %c0_137 = arith.constant 0 : index
    %456 = vector.load %arg6[%c0_136, %c0_137] : memref<4x4xf32, #tpu.memory_space<vmem>>, vector<4x4xf32>
    %cst_138 = arith.constant dense<0.000000e+00> : vector<16x4xf32>
    %457 = tpu.matmul %340, %456, %cst_138 {dimension_numbers = #tpu.dot_dimension_numbers<[1], [0], [0], [1], [0, 0, 1, 1], [], []>} : vector<16x4xf32>, vector<4x4xf32>, vector<16x4xf32> -> vector<16x4xf32>
    %c0_139 = arith.constant 0 : index
    %c0_140 = arith.constant 0 : index
    %458 = vector.load %arg5[%c0_139, %c0_140] : memref<1x4xf32, #tpu.memory_space<vmem>>, vector<1x4xf32>
    %459 = vector.broadcast %458 : vector<1x4xf32> to vector<16x4xf32>
    %460 = arith.addf %457, %459 : vector<16x4xf32>
    %c0_141 = arith.constant 0 : index
    %c0_142 = arith.constant 0 : index
    %461 = vector.load %arg7[%c0_141, %c0_142] : memref<8x4xf32, #tpu.memory_space<vmem>>, vector<8x4xf32>
    %cst_143 = arith.constant dense<0.000000e+00> : vector<16x4xf32>
    %462 = tpu.matmul %439, %461, %cst_143 {dimension_numbers = #tpu.dot_dimension_numbers<[1], [0], [0], [1], [0, 0, 1, 1], [], []>} : vector<16x8xf32>, vector<8x4xf32>, vector<16x4xf32> -> vector<16x4xf32>
    %c0_144 = arith.constant 0 : index
    %c0_145 = arith.constant 0 : index
    %463 = vector.load %arg4[%c0_144, %c0_145] : memref<1x4xf32, #tpu.memory_space<vmem>>, vector<1x4xf32>
    %464 = vector.broadcast %463 : vector<1x4xf32> to vector<16x4xf32>
    %465 = arith.addf %462, %464 : vector<16x4xf32>
    %466 = arith.subf %465, %460 : vector<16x4xf32>
    %467 = arith.negf %466 : vector<16x4xf32>
    %468 = math.exp %467 : vector<16x4xf32>
    %cst_146 = arith.constant 1.000000e+00 : f32
    %469 = vector.broadcast %cst_146 : f32 to vector<16x4xf32>
    %470 = arith.addf %469, %468 : vector<16x4xf32>
    %471 = arith.divf %469, %470 : vector<16x4xf32>
    %cst_147 = arith.constant dense<0.000000e+00> : vector<16x4xf32>
    %472 = tpu.matmul %332, %471, %cst_147 {dimension_numbers = #tpu.dot_dimension_numbers<[1], [0], [0], [1], [0, 0, 1, 1], [], []>} : vector<16x16xf32>, vector<16x4xf32>, vector<16x4xf32> -> vector<16x4xf32>
    %cst_148 = arith.constant dense<0.000000e+00> : vector<16x4xf32>
    %473 = tpu.matmul %335, %471, %cst_148 {dimension_numbers = #tpu.dot_dimension_numbers<[1], [0], [0], [1], [0, 0, 1, 1], [], []>} : vector<16x16xf32>, vector<16x4xf32>, vector<16x4xf32> -> vector<16x4xf32>
    %cst_149 = arith.constant dense<0.000000e+00> : vector<16x4xf32>
    %474 = tpu.matmul %339, %471, %cst_149 {dimension_numbers = #tpu.dot_dimension_numbers<[1], [0], [0], [1], [0, 0, 1, 1], [], []>} : vector<16x16xf32>, vector<16x4xf32>, vector<16x4xf32> -> vector<16x4xf32>
    %c0_150 = arith.constant 0 : index
    %c0_151 = arith.constant 0 : index
    %475 = vector.load %arg40[%c0_150, %c0_151] : memref<1x64xf32, #tpu.memory_space<vmem>>, vector<1x64xf32>
    %c0_152 = arith.constant 0 : index
    %c0_153 = arith.constant 0 : index
    %476 = vector.load %arg36[%c0_152, %c0_153] : memref<1x64xf32, #tpu.memory_space<vmem>>, vector<1x64xf32>
    %c0_154 = arith.constant 0 : index
    %c0_155 = arith.constant 0 : index
    %477 = vector.load %arg41[%c0_154, %c0_155] : memref<4x64xf32, #tpu.memory_space<vmem>>, vector<4x64xf32>
    %cst_156 = arith.constant dense<0.000000e+00> : vector<16x64xf32>
    %478 = tpu.matmul %472, %477, %cst_156 {dimension_numbers = #tpu.dot_dimension_numbers<[1], [0], [0], [1], [0, 0, 1, 1], [], []>} : vector<16x4xf32>, vector<4x64xf32>, vector<16x64xf32> -> vector<16x64xf32>
    %479 = vector.broadcast %475 : vector<1x64xf32> to vector<16x64xf32>
    %480 = arith.addf %479, %478 : vector<16x64xf32>
    %c0_157 = arith.constant 0 : index
    %c0_158 = arith.constant 0 : index
    %481 = vector.load %arg37[%c0_157, %c0_158] : memref<4x64xf32, #tpu.memory_space<vmem>>, vector<4x64xf32>
    %cst_159 = arith.constant dense<0.000000e+00> : vector<16x64xf32>
    %482 = tpu.matmul %472, %481, %cst_159 {dimension_numbers = #tpu.dot_dimension_numbers<[1], [0], [0], [1], [0, 0, 1, 1], [], []>} : vector<16x4xf32>, vector<4x64xf32>, vector<16x64xf32> -> vector<16x64xf32>
    %483 = vector.broadcast %476 : vector<1x64xf32> to vector<16x64xf32>
    %484 = arith.addf %483, %482 : vector<16x64xf32>
    %c0_160 = arith.constant 0 : index
    %c0_161 = arith.constant 0 : index
    %485 = vector.load %arg42[%c0_160, %c0_161] : memref<4x64xf32, #tpu.memory_space<vmem>>, vector<4x64xf32>
    %cst_162 = arith.constant dense<0.000000e+00> : vector<16x64xf32>
    %486 = tpu.matmul %473, %485, %cst_162 {dimension_numbers = #tpu.dot_dimension_numbers<[1], [0], [0], [1], [0, 0, 1, 1], [], []>} : vector<16x4xf32>, vector<4x64xf32>, vector<16x64xf32> -> vector<16x64xf32>
    %487 = arith.addf %480, %486 : vector<16x64xf32>
    %c0_163 = arith.constant 0 : index
    %c0_164 = arith.constant 0 : index
    %488 = vector.load %arg38[%c0_163, %c0_164] : memref<4x64xf32, #tpu.memory_space<vmem>>, vector<4x64xf32>
    %cst_165 = arith.constant dense<0.000000e+00> : vector<16x64xf32>
    %489 = tpu.matmul %473, %488, %cst_165 {dimension_numbers = #tpu.dot_dimension_numbers<[1], [0], [0], [1], [0, 0, 1, 1], [], []>} : vector<16x4xf32>, vector<4x64xf32>, vector<16x64xf32> -> vector<16x64xf32>
    %490 = arith.addf %484, %489 : vector<16x64xf32>
    %c0_166 = arith.constant 0 : index
    %c0_167 = arith.constant 0 : index
    %491 = vector.load %arg43[%c0_166, %c0_167] : memref<4x64xf32, #tpu.memory_space<vmem>>, vector<4x64xf32>
    %cst_168 = arith.constant dense<0.000000e+00> : vector<16x64xf32>
    %492 = tpu.matmul %474, %491, %cst_168 {dimension_numbers = #tpu.dot_dimension_numbers<[1], [0], [0], [1], [0, 0, 1, 1], [], []>} : vector<16x4xf32>, vector<4x64xf32>, vector<16x64xf32> -> vector<16x64xf32>
    %493 = arith.addf %487, %492 : vector<16x64xf32>
    %c0_169 = arith.constant 0 : index
    %c0_170 = arith.constant 0 : index
    %494 = vector.load %arg39[%c0_169, %c0_170] : memref<4x64xf32, #tpu.memory_space<vmem>>, vector<4x64xf32>
    %cst_171 = arith.constant dense<0.000000e+00> : vector<16x64xf32>
    %495 = tpu.matmul %474, %494, %cst_171 {dimension_numbers = #tpu.dot_dimension_numbers<[1], [0], [0], [1], [0, 0, 1, 1], [], []>} : vector<16x4xf32>, vector<4x64xf32>, vector<16x64xf32> -> vector<16x64xf32>
    %496 = arith.addf %490, %495 : vector<16x64xf32>
    %497 = vector.extract_strided_slice %493 {offsets = [0, 0], sizes = [16, 32], strides = [1, 1]} : vector<16x64xf32> to vector<16x32xf32>
    %498 = vector.extract_strided_slice %493 {offsets = [0, 32], sizes = [16, 32], strides = [1, 1]} : vector<16x64xf32> to vector<16x32xf32>
    %499 = arith.negf %498 : vector<16x32xf32>
    %500 = math.exp %499 : vector<16x32xf32>
    %cst_172 = arith.constant 1.000000e+00 : f32
    %501 = vector.broadcast %cst_172 : f32 to vector<16x32xf32>
    %502 = arith.addf %501, %500 : vector<16x32xf32>
    %503 = arith.divf %501, %502 : vector<16x32xf32>
    %504 = arith.mulf %497, %503 : vector<16x32xf32>
    %505 = vector.extract_strided_slice %496 {offsets = [0, 0], sizes = [16, 32], strides = [1, 1]} : vector<16x64xf32> to vector<16x32xf32>
    %506 = vector.extract_strided_slice %496 {offsets = [0, 32], sizes = [16, 32], strides = [1, 1]} : vector<16x64xf32> to vector<16x32xf32>
    %507 = arith.negf %506 : vector<16x32xf32>
    %508 = math.exp %507 : vector<16x32xf32>
    %cst_173 = arith.constant 1.000000e+00 : f32
    %509 = vector.broadcast %cst_173 : f32 to vector<16x32xf32>
    %510 = arith.addf %509, %508 : vector<16x32xf32>
    %511 = arith.divf %509, %510 : vector<16x32xf32>
    %512 = arith.mulf %505, %511 : vector<16x32xf32>
    %c0_174 = arith.constant 0 : index
    %c0_175 = arith.constant 0 : index
    %513 = vector.load %arg50[%c0_174, %c0_175] : memref<32x64xf32, #tpu.memory_space<vmem>>, vector<32x64xf32>
    %cst_176 = arith.constant dense<0.000000e+00> : vector<16x64xf32>
    %514 = tpu.matmul %504, %513, %cst_176 {dimension_numbers = #tpu.dot_dimension_numbers<[1], [0], [0], [1], [0, 0, 1, 1], [], []>} : vector<16x32xf32>, vector<32x64xf32>, vector<16x64xf32> -> vector<16x64xf32>
    %c0_177 = arith.constant 0 : index
    %c0_178 = arith.constant 0 : index
    %515 = vector.load %arg48[%c0_177, %c0_178] : memref<1x64xf32, #tpu.memory_space<vmem>>, vector<1x64xf32>
    %516 = vector.broadcast %515 : vector<1x64xf32> to vector<16x64xf32>
    %517 = arith.addf %514, %516 : vector<16x64xf32>
    %518 = vector.extract_strided_slice %517 {offsets = [0, 0], sizes = [16, 32], strides = [1, 1]} : vector<16x64xf32> to vector<16x32xf32>
    %519 = vector.extract_strided_slice %517 {offsets = [0, 32], sizes = [16, 32], strides = [1, 1]} : vector<16x64xf32> to vector<16x32xf32>
    %520 = arith.negf %519 : vector<16x32xf32>
    %521 = math.exp %520 : vector<16x32xf32>
    %cst_179 = arith.constant 1.000000e+00 : f32
    %522 = vector.broadcast %cst_179 : f32 to vector<16x32xf32>
    %523 = arith.addf %522, %521 : vector<16x32xf32>
    %524 = arith.divf %522, %523 : vector<16x32xf32>
    %525 = arith.mulf %518, %524 : vector<16x32xf32>
    %c0_180 = arith.constant 0 : index
    %c0_181 = arith.constant 0 : index
    %526 = vector.load %arg46[%c0_180, %c0_181] : memref<32x64xf32, #tpu.memory_space<vmem>>, vector<32x64xf32>
    %cst_182 = arith.constant dense<0.000000e+00> : vector<16x64xf32>
    %527 = tpu.matmul %512, %526, %cst_182 {dimension_numbers = #tpu.dot_dimension_numbers<[1], [0], [0], [1], [0, 0, 1, 1], [], []>} : vector<16x32xf32>, vector<32x64xf32>, vector<16x64xf32> -> vector<16x64xf32>
    %c0_183 = arith.constant 0 : index
    %c0_184 = arith.constant 0 : index
    %528 = vector.load %arg44[%c0_183, %c0_184] : memref<1x64xf32, #tpu.memory_space<vmem>>, vector<1x64xf32>
    %529 = vector.broadcast %528 : vector<1x64xf32> to vector<16x64xf32>
    %530 = arith.addf %527, %529 : vector<16x64xf32>
    %531 = vector.extract_strided_slice %530 {offsets = [0, 0], sizes = [16, 32], strides = [1, 1]} : vector<16x64xf32> to vector<16x32xf32>
    %532 = vector.extract_strided_slice %530 {offsets = [0, 32], sizes = [16, 32], strides = [1, 1]} : vector<16x64xf32> to vector<16x32xf32>
    %533 = arith.negf %532 : vector<16x32xf32>
    %534 = math.exp %533 : vector<16x32xf32>
    %cst_185 = arith.constant 1.000000e+00 : f32
    %535 = vector.broadcast %cst_185 : f32 to vector<16x32xf32>
    %536 = arith.addf %535, %534 : vector<16x32xf32>
    %537 = arith.divf %535, %536 : vector<16x32xf32>
    %538 = arith.mulf %531, %537 : vector<16x32xf32>
    %c0_186 = arith.constant 0 : index
    %c0_187 = arith.constant 0 : index
    %539 = vector.load %arg51[%c0_186, %c0_187] : memref<32x64xf32, #tpu.memory_space<vmem>>, vector<32x64xf32>
    %cst_188 = arith.constant dense<0.000000e+00> : vector<16x64xf32>
    %540 = tpu.matmul %525, %539, %cst_188 {dimension_numbers = #tpu.dot_dimension_numbers<[1], [0], [0], [1], [0, 0, 1, 1], [], []>} : vector<16x32xf32>, vector<32x64xf32>, vector<16x64xf32> -> vector<16x64xf32>
    %c0_189 = arith.constant 0 : index
    %c0_190 = arith.constant 0 : index
    %541 = vector.load %arg49[%c0_189, %c0_190] : memref<1x64xf32, #tpu.memory_space<vmem>>, vector<1x64xf32>
    %542 = vector.broadcast %541 : vector<1x64xf32> to vector<16x64xf32>
    %543 = arith.addf %540, %542 : vector<16x64xf32>
    %544 = vector.extract_strided_slice %543 {offsets = [0, 0], sizes = [16, 32], strides = [1, 1]} : vector<16x64xf32> to vector<16x32xf32>
    %545 = vector.extract_strided_slice %543 {offsets = [0, 32], sizes = [16, 32], strides = [1, 1]} : vector<16x64xf32> to vector<16x32xf32>
    %546 = arith.negf %545 : vector<16x32xf32>
    %547 = math.exp %546 : vector<16x32xf32>
    %cst_191 = arith.constant 1.000000e+00 : f32
    %548 = vector.broadcast %cst_191 : f32 to vector<16x32xf32>
    %549 = arith.addf %548, %547 : vector<16x32xf32>
    %550 = arith.divf %548, %549 : vector<16x32xf32>
    %551 = arith.mulf %544, %550 : vector<16x32xf32>
    %c0_192 = arith.constant 0 : index
    %c0_193 = arith.constant 0 : index
    %552 = vector.load %arg47[%c0_192, %c0_193] : memref<32x64xf32, #tpu.memory_space<vmem>>, vector<32x64xf32>
    %cst_194 = arith.constant dense<0.000000e+00> : vector<16x64xf32>
    %553 = tpu.matmul %538, %552, %cst_194 {dimension_numbers = #tpu.dot_dimension_numbers<[1], [0], [0], [1], [0, 0, 1, 1], [], []>} : vector<16x32xf32>, vector<32x64xf32>, vector<16x64xf32> -> vector<16x64xf32>
    %c0_195 = arith.constant 0 : index
    %c0_196 = arith.constant 0 : index
    %554 = vector.load %arg45[%c0_195, %c0_196] : memref<1x64xf32, #tpu.memory_space<vmem>>, vector<1x64xf32>
    %555 = vector.broadcast %554 : vector<1x64xf32> to vector<16x64xf32>
    %556 = arith.addf %553, %555 : vector<16x64xf32>
    %557 = vector.extract_strided_slice %556 {offsets = [0, 0], sizes = [16, 32], strides = [1, 1]} : vector<16x64xf32> to vector<16x32xf32>
    %558 = vector.extract_strided_slice %556 {offsets = [0, 32], sizes = [16, 32], strides = [1, 1]} : vector<16x64xf32> to vector<16x32xf32>
    %559 = arith.negf %558 : vector<16x32xf32>
    %560 = math.exp %559 : vector<16x32xf32>
    %cst_197 = arith.constant 1.000000e+00 : f32
    %561 = vector.broadcast %cst_197 : f32 to vector<16x32xf32>
    %562 = arith.addf %561, %560 : vector<16x32xf32>
    %563 = arith.divf %561, %562 : vector<16x32xf32>
    %564 = arith.mulf %557, %563 : vector<16x32xf32>
    %c0_198 = arith.constant 0 : index
    %c0_199 = arith.constant 0 : index
    %565 = vector.load %arg31[%c0_198, %c0_199] : memref<32x8xf32, #tpu.memory_space<vmem>>, vector<32x8xf32>
    %cst_200 = arith.constant dense<0.000000e+00> : vector<16x8xf32>
    %566 = tpu.matmul %551, %565, %cst_200 {dimension_numbers = #tpu.dot_dimension_numbers<[1], [0], [0], [1], [0, 0, 1, 1], [], []>} : vector<16x32xf32>, vector<32x8xf32>, vector<16x8xf32> -> vector<16x8xf32>
    %c0_201 = arith.constant 0 : index
    %c0_202 = arith.constant 0 : index
    %567 = vector.load %arg30[%c0_201, %c0_202] : memref<32x8xf32, #tpu.memory_space<vmem>>, vector<32x8xf32>
    %cst_203 = arith.constant dense<0.000000e+00> : vector<16x8xf32>
    %568 = tpu.matmul %564, %567, %cst_203 {dimension_numbers = #tpu.dot_dimension_numbers<[1], [0], [0], [1], [0, 0, 1, 1], [], []>} : vector<16x32xf32>, vector<32x8xf32>, vector<16x8xf32> -> vector<16x8xf32>
    %569 = arith.addf %566, %568 : vector<16x8xf32>
    %c0_204 = arith.constant 0 : index
    %c0_205 = arith.constant 0 : index
    %570 = vector.load %arg35[%c0_204, %c0_205] : memref<8x8xf32, #tpu.memory_space<vmem>>, vector<8x8xf32>
    %cst_206 = arith.constant dense<0.000000e+00> : vector<16x8xf32>
    %571 = tpu.matmul %569, %570, %cst_206 {dimension_numbers = #tpu.dot_dimension_numbers<[1], [0], [0], [1], [0, 0, 1, 1], [], []>} : vector<16x8xf32>, vector<8x8xf32>, vector<16x8xf32> -> vector<16x8xf32>
    %c0_207 = arith.constant 0 : index
    %c0_208 = arith.constant 0 : index
    %572 = vector.load %arg32[%c0_207, %c0_208] : memref<1x8xf32, #tpu.memory_space<vmem>>, vector<1x8xf32>
    %573 = vector.broadcast %572 : vector<1x8xf32> to vector<16x8xf32>
    %574 = arith.addf %571, %573 : vector<16x8xf32>
    %575 = arith.negf %574 : vector<16x8xf32>
    %576 = math.exp %575 : vector<16x8xf32>
    %cst_209 = arith.constant 1.000000e+00 : f32
    %577 = vector.broadcast %cst_209 : f32 to vector<16x8xf32>
    %578 = arith.addf %577, %576 : vector<16x8xf32>
    %579 = arith.divf %577, %578 : vector<16x8xf32>
    %c0_210 = arith.constant 0 : index
    %c0_211 = arith.constant 0 : index
    %580 = vector.load %arg34[%c0_210, %c0_211] : memref<8x4xf32, #tpu.memory_space<vmem>>, vector<8x4xf32>
    %cst_212 = arith.constant dense<0.000000e+00> : vector<16x4xf32>
    %581 = tpu.matmul %579, %580, %cst_212 {dimension_numbers = #tpu.dot_dimension_numbers<[1], [0], [0], [1], [0, 0, 1, 1], [], []>} : vector<16x8xf32>, vector<8x4xf32>, vector<16x4xf32> -> vector<16x4xf32>
    %c0_213 = arith.constant 0 : index
    %c0_214 = arith.constant 0 : index
    %582 = vector.load %arg33[%c0_213, %c0_214] : memref<1x4xf32, #tpu.memory_space<vmem>>, vector<1x4xf32>
    %583 = vector.broadcast %582 : vector<1x4xf32> to vector<16x4xf32>
    %584 = arith.addf %581, %583 : vector<16x4xf32>
    %585 = arith.addf %455, %584 : vector<16x4xf32>
    %c0_215 = arith.constant 0 : index
    %c0_216 = arith.constant 0 : index
    %586 = vector.load %arg53[%c0_215, %c0_216] : memref<4x4xf32, #tpu.memory_space<vmem>>, vector<4x4xf32>
    %cst_217 = arith.constant dense<0.000000e+00> : vector<16x4xf32>
    %587 = tpu.matmul %585, %586, %cst_217 {dimension_numbers = #tpu.dot_dimension_numbers<[1], [0], [0], [1], [0, 0, 1, 1], [], []>} : vector<16x4xf32>, vector<4x4xf32>, vector<16x4xf32> -> vector<16x4xf32>
    %c0_218 = arith.constant 0 : index
    %c0_219 = arith.constant 0 : index
    %588 = vector.load %arg52[%c0_218, %c0_219] : memref<1x4xf32, #tpu.memory_space<vmem>>, vector<1x4xf32>
    %589 = vector.broadcast %588 : vector<1x4xf32> to vector<16x4xf32>
    %590 = arith.addf %587, %589 : vector<16x4xf32>
    %cst_220 = arith.constant 0.000000e+00 : f32
    %591 = vector.broadcast %cst_220 : f32 to vector<16x4xf32>
    %592 = arith.cmpf oge, %590, %591 : vector<16x4xf32>
    %cst_221 = arith.constant 0.00999999977 : f32
    %593 = vector.broadcast %cst_221 : f32 to vector<16x4xf32>
    %594 = arith.mulf %593, %590 : vector<16x4xf32>
    %595 = arith.select %592, %590, %594 : vector<16x4xi1>, vector<16x4xf32>
    %c0_222 = arith.constant 0 : index
    %c0_223 = arith.constant 0 : index
    %596 = vector.load %arg55[%c0_222, %c0_223] : memref<1x4xf32, #tpu.memory_space<vmem>>, vector<1x4xf32>
    %cst_224 = arith.constant dense<0.000000e+00> : vector<1x16xf32>
    %597 = tpu.matmul %596, %595, %cst_224 {dimension_numbers = #tpu.dot_dimension_numbers<[1], [1], [0], [0], [0, 0, 1, 0], [], []>} : vector<1x4xf32>, vector<16x4xf32>, vector<1x16xf32> -> vector<1x16xf32>
    %c0_225 = arith.constant 0 : index
    %c0_226 = arith.constant 0 : index
    %598 = vector.load %arg54[%c0_225, %c0_226] : memref<1x1xf32, #tpu.memory_space<vmem>>, vector<1x1xf32>
    %599 = vector.broadcast %598 : vector<1x1xf32> to vector<1x16xf32>
    %600 = arith.addf %597, %599 : vector<1x16xf32>
    %c0_227 = arith.constant 0 : index
    %c0_228 = arith.constant 0 : index
    %601 = vector.load %arg60[%c0_227, %c0_228] : memref<1x16xf32, #tpu.memory_space<vmem>>, vector<1x16xf32>
    tpu.vector_store %arg60[%c0_227, %c0_228], %600 {strides = array<i32>} : memref<1x16xf32, #tpu.memory_space<vmem>>, vector<1x16xf32>,
    return
  }
}

</mosaic_0001>

<bundles_post_ra>
// kernel: model_forward.1
= control target key start
LH: loop header
LB: loop body
LE: loop exit
PB: predicated region body
PF: predicated region fallthrough
CT: control target
= control target key end

     0   :  { %s7220_s6 = smov 1   ;;  %s7221_s10 = smov 2   ;;  %s8110_s0 = inlined_call_operand.smem [shape: u32[62], index: -1, kind: input, shape index: {}] }
   0x1   :  { %s7321_s5 = sld [smem:[%s8110_s0]]   ;;  %s7222_s14 = smov 3  }
   0x2   :  { %s7326_s9 = sld [smem:[%s8110_s0 + %s7220_s6]]   ;;  %s7223_s18 = smov 4  }
   0x3   :  { %s7331_s13 = sld [smem:[%s8110_s0 + %s7221_s10]]   ;;  %s7224_s22 = smov 5  }
   0x4   :  { %s7336_s17 = sld [smem:[%s8110_s0 + %s7222_s14]]   ;;  %s7225_s26 = smov 6  }
   0x5   :  { %s7341_s21 = sld [smem:[%s8110_s0 + %s7223_s18]]   ;;  %s7226_s30 = smov 7  }
   0x6   :  { %s7346_s25 = sld [smem:[%s8110_s0 + %s7224_s22]]   ;;  %s7227_s4 = smov 8  }
   0x7   :  { %8130 = sst [smem:[#allocation51_spill]] %s7321_s5  ;;  %s7228_s10 = smov 9  }
   0x8   :  { %8131 = sst [smem:[#allocation52_spill]] %s7326_s9  ;;  %s7229_s15 = smov 10  }
   0x9   :  { %s7351_s29 = sld [smem:[%s8110_s0 + %s7225_s26]]   ;;  %s7230_s20 = smov 11  }
   0xa   :  { %s7356_s3 = sld [smem:[%s8110_s0 + %s7226_s30]]   ;;  %s7231_s26 = smov 12  }
   0xb   :  { %8132 = sst [smem:[#allocation53_spill]] %s7341_s21  ;;  %s7232_s1 = smov 13  }
   0xc   :  { %8133 = sst [smem:[#allocation54_spill]] %s7346_s25  ;;  %s7233_s7 = smov 14  }
   0xd   :  { %s7361_s8 = sld [smem:[%s8110_s0 + %s7227_s4]]   ;;  %s7235_s22 = smov 16  }
   0xe   :  { %s7366_s14 = sld [smem:[%s8110_s0 + %s7228_s10]]   ;;  %s7236_s28 = smov 17  }
   0xf   :  { %8134 = sst [smem:[#allocation55_spill]] %s7351_s29  ;;  %s7274_s16 = smov 55  }
  0x10   :  { %8135 = sst [smem:[#allocation56_spill]] %s7356_s3  ;;  %s7275_s23 = smov 56  }
  0x11   :  { %s7371_s19 = sld [smem:[%s8110_s0 + %s7229_s15]]   ;;  %s7234_s15 = smov 15  }
  0x12   :  { %s7376_s24 = sld [smem:[%s8110_s0 + %s7230_s20]]   ;;  %s7277_s10 = smov 58  }
  0x13   :  { %8136 = sst [smem:[#allocation57_spill]] %s7361_s8 }
  0x14   :  { %8137 = sst [smem:[#allocation58_spill]] %s7366_s14 }
  0x15   :  { %s7381_s30 = sld [smem:[%s8110_s0 + %s7231_s26]]  }
  0x16   :  { %s7386_s6 = sld [smem:[%s8110_s0 + %s7232_s1]]   ;;  %s7276_s1 = smov 57  }
  0x17   :  { %8138 = sst [smem:[#allocation59_spill]] %s7371_s19 }
  0x18   :  { %8139 = sst [smem:[#allocation60_spill]] %s7376_s24 }
  0x19   :  { %s7391_s12 = sld [smem:[%s8110_s0 + %s7233_s7]]   ;;  %s7237_s7 = smov 18  }
  0x1a   :  { %s7396_s20 = sld [smem:[%s8110_s0 + %s7234_s15]]   ;;  %s7238_s15 = smov 19  }
  0x1b   :  { %8140 = sst [smem:[#allocation61_spill]] %s7381_s30 }
  0x1c   :  { %8141 = sst [smem:[#allocation62_spill]] %s7386_s6 }
  0x1d   :  { %s7401_s27 = sld [smem:[%s8110_s0 + %s7235_s22]]   ;;  %s7239_s22 = smov 20  }
  0x1e   :  { %s7406_s4 = sld [smem:[%s8110_s0 + %s7236_s28]]   ;;  %s7240_s28 = smov 21  }
  0x1f   :  { %8142 = sst [smem:[#allocation63_spill]] %s7391_s12 }
  0x20   :  { %8143 = sst [smem:[#allocation64_spill]] %s7396_s20 }
  0x21   :  { %s7411_s24 = sld [smem:[%s8110_s0 + %s7237_s7]]   ;;  %s7241_s7 = smov 22  }
  0x22   :  { %s7416_s21 = sld [smem:[%s8110_s0 + %s7238_s15]]   ;;  %s7242_s15 = smov 23  }
  0x23   :  { %8144 = sst [smem:[#allocation65_spill]] %s7401_s27 }
  0x24   :  { %8145 = sst [smem:[#allocation66_spill]] %s7406_s4 }
  0x25   :  { %s7421_s25 = sld [smem:[%s8110_s0 + %s7239_s22]]   ;;  %s7243_s22 = smov 24  }
  0x26   :  { %s7426_s3 = sld [smem:[%s8110_s0 + %s7240_s28]]   ;;  %s7244_s28 = smov 25  }
  0x27   :  { %8146 = sst [smem:[#allocation67_spill]] %s7411_s24 }
  0x28   :  { %8147 = sst [smem:[#allocation68_spill]] %s7416_s21 }
  0x29   :  { %s7431_s19 = sld [smem:[%s8110_s0 + %s7241_s7]]   ;;  %s7245_s7 = smov 26  }
  0x2a   :  { %s7436_s29 = sld [smem:[%s8110_s0 + %s7242_s15]]   ;;  %s7246_s15 = smov 27  }
  0x2b   :  { %8148 = sst [smem:[#allocation69_spill]] %s7421_s25 }
  0x2c   :  { %8149 = sst [smem:[#allocation70_spill]] %s7426_s3 }
  0x2d   :  { %s7441_s30 = sld [smem:[%s8110_s0 + %s7243_s22]]   ;;  %s7247_s22 = smov 28  }
  0x2e   :  { %s7446_s6 = sld [smem:[%s8110_s0 + %s7244_s28]]   ;;  %s7248_s28 = smov 29  }
  0x2f   :  { %8150 = sst [smem:[#allocation71_spill]] %s7431_s19 }
  0x30   :  { %8151 = sst [smem:[#allocation72_spill]] %s7436_s29 }
  0x31   :  { %s7451_s14 = sld [smem:[%s8110_s0 + %s7245_s7]]   ;;  %s7249_s7 = smov 30  }
  0x32   :  { %s7456_s29 = sld [smem:[%s8110_s0 + %s7246_s15]]   ;;  %s7250_s15 = smov 31  }
  0x33   :  { %8152 = sst [smem:[#allocation73_spill]] %s7441_s30 }
  0x34   :  { %8153 = sst [smem:[#allocation74_spill]] %s7446_s6 }
  0x35   :  { %s7461_s8 = sld [smem:[%s8110_s0 + %s7247_s22]]   ;;  %s7251_s22 = smov 32  }
  0x36   :  { %s7466_s19 = sld [smem:[%s8110_s0 + %s7248_s28]]   ;;  %s7252_s28 = smov 33  }
  0x37   :  { %8154 = sst [smem:[#allocation75_spill]] %s7451_s14 }
  0x38   :  { %8155 = sst [smem:[#allocation76_spill]] %s7456_s29 }
  0x39   :  { %s7471_s14 = sld [smem:[%s8110_s0 + %s7249_s7]]   ;;  %s7253_s7 = smov 34  }
  0x3a   :  { %s7476_s29 = sld [smem:[%s8110_s0 + %s7250_s15]]   ;;  %s7254_s15 = smov 35  }
  0x3b   :  { %8156 = sst [smem:[#allocation77_spill]] %s7461_s8 }
  0x3c   :  { %8157 = sst [smem:[#allocation78_spill]] %s7466_s19 }
  0x3d   :  { %s7481_s6 = sld [smem:[%s8110_s0 + %s7251_s22]]   ;;  %s7255_s22 = smov 36  }
  0x3e   :  { %s7486_s19 = sld [smem:[%s8110_s0 + %s7252_s28]]   ;;  %s7256_s28 = smov 37  }
  0x3f   :  { %8158 = sst [smem:[#allocation79_spill]] %s7471_s14 }
  0x40   :  { %8159 = sst [smem:[#allocation80_spill]] %s7476_s29 }
  0x41   :  { %s7491_s14 = sld [smem:[%s8110_s0 + %s7253_s7]]   ;;  %s7257_s7 = smov 38  }
  0x42   :  { %s7496_s29 = sld [smem:[%s8110_s0 + %s7254_s15]]   ;;  %s7258_s15 = smov 39  }
  0x43   :  { %8160 = sst [smem:[#allocation81_spill]] %s7481_s6 }
  0x44   :  { %s7501_s6 = sld [smem:[%s8110_s0 + %s7255_s22]]   ;;  %s7259_s22 = smov 40  }
  0x45   :  { %s7506_s8 = sld [smem:[%s8110_s0 + %s7256_s28]]   ;;  %s7260_s28 = smov 41  }
  0x46   :  { %s7521_s24 = sld [smem:[%s8110_s0 + %s7259_s22]]   ;;  %s7263_s22 = smov 44  }
  0x47   :  { %8161 = sst [smem:[#allocation82_spill]] %s7491_s14 }
  0x48   :  { %8162 = sst [smem:[#allocation83_spill]] %s7496_s29 }
  0x49   :  { %s7511_s14 = sld [smem:[%s8110_s0 + %s7257_s7]]   ;;  %s7261_s7 = smov 42  }
  0x4a   :  { %s7516_s29 = sld [smem:[%s8110_s0 + %s7258_s15]]   ;;  %s7262_s15 = smov 43  }
  0x4b   :  { %8163 = sst [smem:[#allocation84_spill]] %s7506_s8 }
  0x4c   :  { %s7526_s8 = sld [smem:[%s8110_s0 + %s7260_s28]]   ;;  %s7264_s28 = smov 45  }
  0x4d   :  { %s7531_s12 = sld [smem:[%s8110_s0 + %s7261_s7]]   ;;  %s7265_s7 = smov 46  }
  0x4e   :  { %s7536_s30 = sld [smem:[%s8110_s0 + %s7262_s15]]   ;;  %s7266_s15 = smov 47  }
  0x4f   :  { %s7541_s3 = sld [smem:[%s8110_s0 + %s7263_s22]]   ;;  %s7267_s22 = smov 48  }
  0x50   :  { %s7546_s4 = sld [smem:[%s8110_s0 + %s7264_s28]]   ;;  %s7268_s28 = smov 49  }
  0x51   :  { %s7551_s27 = sld [smem:[%s8110_s0 + %s7265_s7]]   ;;  %s7269_s7 = smov 50  }
  0x52   :  { %s7556_s20 = sld [smem:[%s8110_s0 + %s7266_s15]]   ;;  %s7270_s15 = smov 51  }
  0x53   :  { %8164 = sst [smem:[#allocation85_spill]] %s7531_s12 }
  0x54   :  { %s7561_s25 = sld [smem:[%s8110_s0 + %s7267_s22]]   ;;  %s7271_s22 = smov 52  }
  0x55   :  { %8165 = sst [smem:[#allocation86_spill]] %s7541_s3 }
  0x56   :  { %s7566_s21 = sld [smem:[%s8110_s0 + %s7268_s28]]   ;;  %s7272_s28 = smov 53  }
  0x57   :  { %8166 = sst [smem:[#allocation87_spill]] %s7551_s27 }
  0x58   :  { %8167 = sst [smem:[#allocation88_spill]] %s7556_s20 }
  0x59   :  { %s7571_s27 = sld [smem:[%s8110_s0 + %s7269_s7]]   ;;  %s7273_s7 = smov 54  }
  0x5a   :  { %8168 = sst [smem:[#allocation89_spill]] %s7561_s25 }
  0x5b   :  { %s7576_s20 = sld [smem:[%s8110_s0 + %s7270_s15]]  }
  0x5c   :  { %s7581_s9 = sld [smem:[%s8110_s0 + %s7271_s22]]  }
  0x5d   :  { %s7586_s5 = sld [smem:[%s8110_s0 + %s7272_s28]]  }
  0x5e   :  { %s7604_s25 = sld [smem:[%s8110_s0 + %s7276_s1]]   ;;  %s7280_s1 = smov 61  }
  0x5f   :  { %8169 = sst [smem:[#allocation90_spill]] %s7571_s27 }
  0x60   :  { %s5578_s27 = sld [smem:[%s8110_s0 + %s7273_s7]]  }
  0x61   :  { %8170 = sst [smem:[#allocation91_spill]] %s7576_s20 }
  0x62   :  { %8171 = sst [smem:[#allocation92_spill]] %s7581_s9 }
  0x63   :  { %s7594_s20 = sld [smem:[%s8110_s0 + %s7274_s16]]   ;;  %s7278_s16 = smov 59  }
  0x64   :  { %s7599_s9 = sld [smem:[%s8110_s0 + %s7275_s23]]   ;;  %s7279_s23 = smov 60  }
  0x65   :  { %s7609_s3 = sld [smem:[%s8110_s0 + %s7277_s10]]  }
  0x66   :  { %s7619_s12 = sld [smem:[%s8110_s0 + %s7279_s23]]   ;;  %v129_v0 = vstv %s5578_s27 }
  0x67   :  { %s7624_s7 = sld [smem:[%s8110_s0 + %s7280_s1]]   ;;  %130 = vst [vmem:[#allocation2] sm:$0x1] %v129_v0 }
  0x69   :  { %8172 = sst [smem:[#allocation93_spill]] %s7594_s20 }
  0x6a   :  { %s7614_s20 = sld [smem:[%s8110_s0 + %s7278_s16]]  }
  0x6b   :  { %131 = vsyncpa [#allocation6], 0 }
  0x6c   :  { %132 = vsyncpa [#allocation8], 0 }
  0x6d   :  { %133 = vsyncpa [#allocation4], 0 }
  0x6e   :  { %134 = vsyncpa [#allocation11], 0 }
  0x6f   :  { %135 = vsyncpa [#allocation14], 0 }
  0x70   :  { %136 = vsyncpa [#allocation17], 0 }
  0x71   :  { %137 = vsyncpa [#allocation20], 0 }
  0x72   :  { %138 = vsyncpa [#allocation23], 0 }
  0x73   :  { %139 = vsyncpa [#allocation26], 0 }
  0x74   :  { %140 = vsyncpa [#allocation29], 0 }
  0x75   :  { %141 = vsyncpa [#allocation32], 0 }
  0x76   :  { %142 = vsyncpa [#allocation35], 0 }
  0x77   :  { %143 = vsyncpa [#allocation5], 0  ;;  %s7281_s27 = smov [#allocation10]   ;;  %s7282_s10 = smov [#allocation13]  }
  0x78   :  { %s242_s0 = sshll.u32 %s7281_s27, 4  ;;  %s264_s11 = sshll.u32 %s7282_s10, 4  ;;  %s243_s0 = int_to_ptr.vmem [resolvable:$true] %s242_s0  ;;  %s265_s11 = int_to_ptr.vmem [resolvable:$true] %s264_s11 }
  0x79   :  { %s6734_s16 = scalar_lea.hbm %s7501_s6, 16 }
  0x7a   :  { %p6735_p0 = scmp.ne.s32.totalorder %s7501_s6, %s6734_s16  ;;  %p6738_p1 = scmp.lt.u32.totalorder %s6734_s16, %s7501_s6 }
  0x7c   :  { %p6740_p2 = pnand %p6738_p1, %p6735_p0 }
  0x7e   :  { %6743 = shalt.err (!%p6740_p2)
}
  0x7f   :  { %s6744_s15 = scalar_lea.vmem %s243_s0, 16  ;;  %s6748_s18 = scalar_lea.vmem %s243_s0, 32 }
  0x80   :  { %p6745_p3 = scmp.ne.s32.totalorder %s243_s0, %s6744_s15  ;;  %p6749_p4 = scmp.lt.s32.totalorder %s243_s0, %s243_s0 }
  0x81   :  { %p6750_p5 = scmp.lt.s32.totalorder %s6748_s18, %s6744_s15 }
  0x83   :  { %p6751_p6 = por %p6750_p5, %p6749_p4 }
  0x85   :  { %p6752_p7 = pnand %p6751_p6, %p6745_p3 }
  0x87   :  { %6755 = shalt.err (!%p6752_p7)
}
  0x88   :  { %245 = dma.hbm_to_vmem [thread:$0]  %s7501_s6, 16, %s243_s0, [#allocation11]  }
  0x89   :  { %s6756_s23 = scalar_lea.hbm %s7516_s29, 64 }
  0x8a   :  { %p6757_p8 = scmp.ne.s32.totalorder %s7516_s29, %s6756_s23  ;;  %p6760_p9 = scmp.lt.u32.totalorder %s6756_s23, %s7516_s29 }
  0x8c   :  { %p6762_p10 = pnand %p6760_p9, %p6757_p8 }
  0x8e   :  { %6765 = shalt.err (!%p6762_p10)
}
  0x8f   :  { %s6766_s22 = scalar_lea.vmem %s265_s11, 64  ;;  %p6771_p12 = scmp.lt.s32.totalorder %s265_s11, %s265_s11 }
  0x90   :  { %p6767_p11 = scmp.ne.s32.totalorder %s265_s11, %s6766_s22  ;;  %p6772_p13 = scmp.lt.s32.totalorder %s6766_s22, %s6766_s22 }
  0x92   :  { %p6773_p0 = por %p6772_p13, %p6771_p12 }
  0x94   :  { %p6774_p1 = pnand %p6773_p0, %p6767_p11 }
  0x96   :  { %6777 = shalt.err (!%p6774_p1)
}
  0x97   :  { %267 = dma.hbm_to_vmem [thread:$0]  %s7516_s29, 64, %s265_s11, [#allocation14]  }
  0x98   :  { %s7283_s26 = smov [#allocation16]   ;;  %s7284_s6 = smov [#allocation19]  }
  0x99   :  { %s284_s1 = sshll.u32 %s7283_s26, 4  ;;  %s304_s28 = sshll.u32 %s7284_s6, 4  ;;  %s285_s1 = int_to_ptr.vmem [resolvable:$true] %s284_s1  ;;  %s305_s28 = int_to_ptr.vmem [resolvable:$true] %s304_s28 }
  0x9a   :  { %s6778_s2 = scalar_lea.hbm %s7526_s8, 64 }
  0x9b   :  { %p6779_p2 = scmp.ne.s32.totalorder %s7526_s8, %s6778_s2  ;;  %p6782_p3 = scmp.lt.u32.totalorder %s6778_s2, %s7526_s8 }
  0x9d   :  { %p6784_p4 = pnand %p6782_p3, %p6779_p2 }
  0x9f   :  { %6787 = shalt.err (!%p6784_p4)
}
  0xa0   :  { %s6788_s27 = scalar_lea.vmem %s285_s1, 64  ;;  %p6793_p6 = scmp.lt.s32.totalorder %s285_s1, %s285_s1 }
  0xa1   :  { %p6789_p5 = scmp.ne.s32.totalorder %s285_s1, %s6788_s27  ;;  %p6794_p7 = scmp.lt.s32.totalorder %s6788_s27, %s6788_s27 }
  0xa3   :  { %p6795_p8 = por %p6794_p7, %p6793_p6 }
  0xa5   :  { %p6796_p9 = pnand %p6795_p8, %p6789_p5 }
  0xa7   :  { %6799 = shalt.err (!%p6796_p9)
}
  0xa8   :  { %287 = dma.hbm_to_vmem [thread:$0]  %s7526_s8, 64, %s285_s1, [#allocation17]  }
  0xa9   :  { %s6800_s29 = scalar_lea.hbm %s7536_s30, 64 }
  0xaa   :  { %p6801_p10 = scmp.ne.s32.totalorder %s7536_s30, %s6800_s29  ;;  %p6804_p11 = scmp.lt.u32.totalorder %s6800_s29, %s7536_s30 }
  0xac   :  { %p6806_p12 = pnand %p6804_p11, %p6801_p10 }
  0xae   :  { %6809 = shalt.err (!%p6806_p12)
}
  0xaf   :  { %s6810_s0 = scalar_lea.vmem %s305_s28, 64  ;;  %p6815_p0 = scmp.lt.s32.totalorder %s305_s28, %s305_s28 }
  0xb0   :  { %p6811_p13 = scmp.ne.s32.totalorder %s305_s28, %s6810_s0  ;;  %p6816_p1 = scmp.lt.s32.totalorder %s6810_s0, %s6810_s0 }
  0xb2   :  { %p6817_p2 = por %p6816_p1, %p6815_p0 }
  0xb4   :  { %p6818_p3 = pnand %p6817_p2, %p6811_p13 }
  0xb6   :  { %6821 = shalt.err (!%p6818_p3)
}
  0xb7   :  { %307 = dma.hbm_to_vmem [thread:$0]  %s7536_s30, 64, %s305_s28, [#allocation20]  }
  0xb8   :  { %s7285_s10 = smov [#allocation22]   ;;  %s7286_s8 = smov [#allocation25]  }
  0xb9   :  { %s324_s11 = sshll.u32 %s7285_s10, 4  ;;  %s348_s16 = sshll.u32 %s7286_s8, 4  ;;  %s325_s11 = int_to_ptr.vmem [resolvable:$true] %s324_s11  ;;  %s349_s16 = int_to_ptr.vmem [resolvable:$true] %s348_s16 }
  0xba   :  { %s6822_s15 = scalar_lea.hbm %s7546_s4, 16 }
  0xbb   :  { %p6823_p4 = scmp.ne.s32.totalorder %s7546_s4, %s6822_s15  ;;  %p6826_p5 = scmp.lt.u32.totalorder %s6822_s15, %s7546_s4 }
  0xbd   :  { %p6828_p6 = pnand %p6826_p5, %p6823_p4 }
  0xbf   :  { %6831 = shalt.err (!%p6828_p6)
}
  0xc0   :  { %s6832_s18 = scalar_lea.vmem %s325_s11, 16  ;;  %s6836_s23 = scalar_lea.vmem %s325_s11, 32 }
  0xc1   :  { %p6833_p7 = scmp.ne.s32.totalorder %s325_s11, %s6832_s18  ;;  %p6837_p8 = scmp.lt.s32.totalorder %s325_s11, %s325_s11 }
  0xc2   :  { %p6838_p9 = scmp.lt.s32.totalorder %s6836_s23, %s6832_s18 }
  0xc4   :  { %p6839_p10 = por %p6838_p9, %p6837_p8 }
  0xc6   :  { %p6840_p11 = pnand %p6839_p10, %p6833_p7 }
  0xc8   :  { %6843 = shalt.err (!%p6840_p11)
}
  0xc9   :  { %327 = dma.hbm_to_vmem [thread:$0]  %s7546_s4, 16, %s325_s11, [#allocation23]  }
  0xca   :  { %s6844_s30 = scalar_lea.hbm %s7566_s21, 16 }
  0xcb   :  { %p6845_p12 = scmp.ne.s32.totalorder %s7566_s21, %s6844_s30  ;;  %p6848_p13 = scmp.lt.u32.totalorder %s6844_s30, %s7566_s21 }
  0xcd   :  { %p6850_p0 = pnand %p6848_p13, %p6845_p12 }
  0xcf   :  { %6853 = shalt.err (!%p6850_p0)
}
  0xd0   :  { %s6854_s22 = scalar_lea.vmem %s349_s16, 16  ;;  %s6858_s26 = scalar_lea.vmem %s349_s16, 32 }
  0xd1   :  { %p6855_p1 = scmp.ne.s32.totalorder %s349_s16, %s6854_s22  ;;  %p6859_p2 = scmp.lt.s32.totalorder %s349_s16, %s349_s16 }
  0xd2   :  { %p6860_p3 = scmp.lt.s32.totalorder %s6858_s26, %s6854_s22 }
  0xd4   :  { %p6861_p4 = por %p6860_p3, %p6859_p2 }
  0xd6   :  { %p6862_p5 = pnand %p6861_p4, %p6855_p1 }
  0xd8   :  { %6865 = shalt.err (!%p6862_p5)
}
  0xd9   :  { %351 = dma.hbm_to_vmem [thread:$0]  %s7566_s21, 16, %s349_s16, [#allocation26]  }
  0xda   :  { %s7287_s1 = smov [#allocation28]   ;;  %s7288_s6 = smov [#allocation31]  }
  0xdb   :  { %s372_s4 = sshll.u32 %s7287_s1, 4  ;;  %s394_s28 = sshll.u32 %s7288_s6, 4  ;;  %s373_s4 = int_to_ptr.vmem [resolvable:$true] %s372_s4  ;;  %s395_s28 = int_to_ptr.vmem [resolvable:$true] %s394_s28 }
  0xdc   :  { %s6866_s2 = scalar_lea.hbm %s7586_s5, 64 }
  0xdd   :  { %p6867_p6 = scmp.ne.s32.totalorder %s7586_s5, %s6866_s2  ;;  %p6870_p7 = scmp.lt.u32.totalorder %s6866_s2, %s7586_s5 }
  0xdf   :  { %p6872_p8 = pnand %p6870_p7, %p6867_p6 }
  0xe1   :  { %6875 = shalt.err (!%p6872_p8)
}
  0xe2   :  { %s6876_s27 = scalar_lea.vmem %s373_s4, 64  ;;  %p6881_p10 = scmp.lt.s32.totalorder %s373_s4, %s373_s4 }
  0xe3   :  { %p6877_p9 = scmp.ne.s32.totalorder %s373_s4, %s6876_s27  ;;  %p6882_p11 = scmp.lt.s32.totalorder %s6876_s27, %s6876_s27 }
  0xe5   :  { %p6883_p12 = por %p6882_p11, %p6881_p10 }
  0xe7   :  { %p6884_p13 = pnand %p6883_p12, %p6877_p9 }
  0xe9   :  { %6887 = shalt.err (!%p6884_p13)
}
  0xea   :  { %375 = dma.hbm_to_vmem [thread:$0]  %s7586_s5, 64, %s373_s4, [#allocation29]  }
  0xeb   :  { %s6888_s21 = scalar_lea.hbm %s7599_s9, 16 }
  0xec   :  { %p6889_p0 = scmp.ne.s32.totalorder %s7599_s9, %s6888_s21  ;;  %p6892_p1 = scmp.lt.u32.totalorder %s6888_s21, %s7599_s9 }
  0xee   :  { %p6894_p2 = pnand %p6892_p1, %p6889_p0 }
  0xf0   :  { %6897 = shalt.err (!%p6894_p2)
}
  0xf1   :  { %s6898_s29 = scalar_lea.vmem %s395_s28, 16  ;;  %s6902_s0 = scalar_lea.vmem %s395_s28, 32 }
  0xf2   :  { %p6899_p3 = scmp.ne.s32.totalorder %s395_s28, %s6898_s29  ;;  %p6903_p4 = scmp.lt.s32.totalorder %s395_s28, %s395_s28 }
  0xf3   :  { %p6904_p5 = scmp.lt.s32.totalorder %s6902_s0, %s6898_s29 }
  0xf5   :  { %p6905_p6 = por %p6904_p5, %p6903_p4 }
  0xf7   :  { %p6906_p7 = pnand %p6905_p6, %p6899_p3 }
  0xf9   :  { %6909 = shalt.err (!%p6906_p7)
}
  0xfa   :  { %397 = dma.hbm_to_vmem [thread:$0]  %s7599_s9, 16, %s395_s28, [#allocation32]  }
  0xfb   :  { %s7289_s10 = smov [#allocation34]   ;;  %s6910_s11 = scalar_lea.hbm %s7609_s3, 128 }
  0xfc   :  { %s414_s5 = sshll.u32 %s7289_s10, 4  ;;  %p6911_p8 = scmp.ne.s32.totalorder %s7609_s3, %s6910_s11  ;;  %s415_s5 = int_to_ptr.vmem [resolvable:$true] %s414_s5 }
  0xfd   :  { %p6914_p9 = scmp.lt.u32.totalorder %s6910_s11, %s7609_s3 }
  0xff   :  { %p6916_p10 = pnand %p6914_p9, %p6911_p8 }
 0x101   :  { %6919 = shalt.err (!%p6916_p10)
}
 0x102   :  { %s6920_s8 = scalar_lea.vmem %s415_s5, 128  ;;  %p6925_p12 = scmp.lt.s32.totalorder %s415_s5, %s415_s5 }
 0x103   :  { %p6921_p11 = scmp.ne.s32.totalorder %s415_s5, %s6920_s8  ;;  %p6926_p13 = scmp.lt.s32.totalorder %s6920_s8, %s6920_s8 }
 0x105   :  { %p6927_p0 = por %p6926_p13, %p6925_p12 }
 0x107   :  { %p6928_p1 = pnand %p6927_p0, %p6921_p11 }
 0x109   :  { %6931 = shalt.err (!%p6928_p1)
}
 0x10a   :  { %417 = dma.hbm_to_vmem [thread:$0]  %s7609_s3, 128, %s415_s5, [#allocation35]  }
 0x10b   :  { %s6932_s9 = scalar_lea.hbm %s7331_s13, 16 }
 0x10c   :  { %p6933_p2 = scmp.ne.s32.totalorder %s7331_s13, %s6932_s9  ;;  %p6936_p3 = scmp.lt.u32.totalorder %s6932_s9, %s7331_s13 }
 0x10e   :  { %p6938_p4 = pnand %p6936_p3, %p6933_p2 }
 0x110   :  { %6941 = shalt.err (!%p6938_p4)
}
 0x111   :  { %s7290_s16 = smov [#allocation3]   ;;  %s6942_s15 = scalar_lea.hbm %s7336_s17, 16 }
 0x112   :  { %155 = dma.hbm_to_smem %s7331_s13, 16, %s7290_s16, [#allocation6]  }
 0x113   :  { %p6943_p5 = scmp.ne.s32.totalorder %s7336_s17, %s6942_s15  ;;  %p6946_p6 = scmp.lt.u32.totalorder %s6942_s15, %s7336_s17 }
 0x115   :  { %p6948_p7 = pnand %p6946_p6, %p6943_p5 }
 0x117   :  { %6951 = shalt.err (!%p6948_p7)
}
 0x118   :  { %s7291_s18 = smov [#allocation7]   ;;  %s7292_s3 = smov [#allocation9]  }
 0x119   :  { %163 = dma.hbm_to_smem %s7336_s17, 16, %s7291_s18, [#allocation8]  }
 0x11a   :  { %s228_s23 = sshll.u32 %s7292_s3, 4  ;;  %s7293_s30 = smov [#allocation12]   ;;  %s229_s23 = int_to_ptr.vmem [resolvable:$true] %s228_s23 }
 0x11b   :  { %s254_s22 = sshll.u32 %s7293_s30, 4  ;;  %s6952_s26 = scalar_lea.hbm %s7486_s19, 16  ;;  %s255_s22 = int_to_ptr.vmem [resolvable:$true] %s254_s22 }
 0x11c   :  { %p6953_p8 = scmp.ne.s32.totalorder %s7486_s19, %s6952_s26  ;;  %p6956_p9 = scmp.lt.u32.totalorder %s6952_s26, %s7486_s19 }
 0x11e   :  { %p6958_p10 = pnand %p6956_p9, %p6953_p8 }
 0x120   :  { %6961 = shalt.err (!%p6958_p10)
}
 0x121   :  { %s6962_s13 = scalar_lea.vmem %s229_s23, 16  ;;  %s6966_s1 = scalar_lea.vmem %s229_s23, 32 }
 0x122   :  { %p6963_p11 = scmp.ne.s32.totalorder %s229_s23, %s6962_s13  ;;  %p6967_p12 = scmp.lt.s32.totalorder %s229_s23, %s229_s23 }
 0x123   :  { %p6968_p13 = scmp.lt.s32.totalorder %s6966_s1, %s6962_s13 }
 0x125   :  { %p6969_p0 = por %p6968_p13, %p6967_p12 }
 0x127   :  { %p6970_p1 = pnand %p6969_p0, %p6963_p11 }
 0x129   :  { %6973 = shalt.err (!%p6970_p1)
}
 0x12a   :  { %231 = dma.hbm_to_vmem [thread:$0]  %s7486_s19, 16, %s229_s23, [#allocation4]  }
 0x12b   :  { %s6974_s17 = scalar_lea.hbm %s7511_s14, 64 }
 0x12c   :  { %p6975_p2 = scmp.ne.s32.totalorder %s7511_s14, %s6974_s17  ;;  %p6978_p3 = scmp.lt.u32.totalorder %s6974_s17, %s7511_s14 }
 0x12e   :  { %p6980_p4 = pnand %p6978_p3, %p6975_p2 }
 0x130   :  { %6983 = shalt.err (!%p6980_p4)
}
 0x131   :  { %s6984_s4 = scalar_lea.vmem %s255_s22, 64  ;;  %p6989_p6 = scmp.lt.s32.totalorder %s255_s22, %s255_s22 }
 0x132   :  { %p6985_p5 = scmp.ne.s32.totalorder %s255_s22, %s6984_s4  ;;  %p6990_p7 = scmp.lt.s32.totalorder %s6984_s4, %s6984_s4 }
 0x134   :  { %p6991_p8 = por %p6990_p7, %p6989_p6 }
 0x136   :  { %p6992_p9 = pnand %p6991_p8, %p6985_p5 }
 0x138   :  { %6995 = shalt.err (!%p6992_p9)
}
 0x139   :  { %257 = dma.hbm_to_vmem [thread:$0]  %s7511_s14, 64, %s255_s22, [#allocation11]  }
 0x13a   :  { %s7294_s6 = smov [#allocation15]   ;;  %s7295_s28 = smov [#allocation18]  }
 0x13b   :  { %s274_s19 = sshll.u32 %s7294_s6, 4  ;;  %s294_s2 = sshll.u32 %s7295_s28, 4  ;;  %s275_s19 = int_to_ptr.vmem [resolvable:$true] %s274_s19  ;;  %s295_s2 = int_to_ptr.vmem [resolvable:$true] %s294_s2 }
 0x13c   :  { %s6996_s27 = scalar_lea.hbm %s7521_s24, 16 }
 0x13d   :  { %p6997_p10 = scmp.ne.s32.totalorder %s7521_s24, %s6996_s27  ;;  %p7000_p11 = scmp.lt.u32.totalorder %s6996_s27, %s7521_s24 }
 0x13f   :  { %p7002_p12 = pnand %p7000_p11, %p6997_p10 }
 0x141   :  { %7005 = shalt.err (!%p7002_p12)
}
 0x142   :  { %s7006_s21 = scalar_lea.vmem %s275_s19, 16  ;;  %s7010_s29 = scalar_lea.vmem %s275_s19, 32 }
 0x143   :  { %p7007_p13 = scmp.ne.s32.totalorder %s275_s19, %s7006_s21  ;;  %p7011_p0 = scmp.lt.s32.totalorder %s275_s19, %s275_s19 }
 0x144   :  { %p7012_p1 = scmp.lt.s32.totalorder %s7010_s29, %s7006_s21 }
 0x146   :  { %p7013_p2 = por %p7012_p1, %p7011_p0 }
 0x148   :  { %p7014_p3 = pnand %p7013_p2, %p7007_p13 }
 0x14a   :  { %7017 = shalt.err (!%p7014_p3)
}
 0x14b   :  { %s8173_s14 = sld [smem:[#allocation85_spill]] }
 0x14c   :  { %277 = dma.hbm_to_vmem [thread:$0]  %s7521_s24, 16, %s275_s19, [#allocation14]  }
 0x151   :  { %s7018_s0 = scalar_lea.hbm %s8173_s14, 64 }
 0x152   :  { %p7019_p4 = scmp.ne.s32.totalorder %s8173_s14, %s7018_s0  ;;  %p7022_p5 = scmp.lt.u32.totalorder %s7018_s0, %s8173_s14 }
 0x154   :  { %p7024_p6 = pnand %p7022_p5, %p7019_p4 }
 0x156   :  { %7027 = shalt.err (!%p7024_p6)
}
 0x157   :  { %s7028_s10 = scalar_lea.vmem %s295_s2, 64  ;;  %p7033_p8 = scmp.lt.s32.totalorder %s295_s2, %s295_s2 }
 0x158   :  { %p7029_p7 = scmp.ne.s32.totalorder %s295_s2, %s7028_s10  ;;  %p7034_p9 = scmp.lt.s32.totalorder %s7028_s10, %s7028_s10 }
 0x15a   :  { %p7035_p10 = por %p7034_p9, %p7033_p8 }
 0x15c   :  { %p7036_p11 = pnand %p7035_p10, %p7029_p7 }
 0x15e   :  { %7039 = shalt.err (!%p7036_p11)
}
 0x15f   :  { %s8174_s5 = sld [smem:[#allocation86_spill]]  ;;  %s7296_s11 = smov [#allocation21]  }
 0x160   :  { %297 = dma.hbm_to_vmem [thread:$0]  %s8173_s14, 64, %s295_s2, [#allocation17]  }
 0x161   :  { %s314_s24 = sshll.u32 %s7296_s11, 4  ;;  %s7297_s8 = smov [#allocation24]   ;;  %s315_s24 = int_to_ptr.vmem [resolvable:$true] %s314_s24 }
 0x162   :  { %s338_s9 = sshll.u32 %s7297_s8, 4  ;;  %s339_s9 = int_to_ptr.vmem [resolvable:$true] %s338_s9 }
 0x165   :  { %s7040_s16 = scalar_lea.hbm %s8174_s5, 16 }
 0x166   :  { %p7041_p12 = scmp.ne.s32.totalorder %s8174_s5, %s7040_s16  ;;  %p7044_p13 = scmp.lt.u32.totalorder %s7040_s16, %s8174_s5 }
 0x168   :  { %p7046_p0 = pnand %p7044_p13, %p7041_p12 }
 0x16a   :  { %7049 = shalt.err (!%p7046_p0)
}
 0x16b   :  { %s7050_s15 = scalar_lea.vmem %s315_s24, 16  ;;  %s7054_s18 = scalar_lea.vmem %s315_s24, 32 }
 0x16c   :  { %p7051_p1 = scmp.ne.s32.totalorder %s315_s24, %s7050_s15  ;;  %p7055_p2 = scmp.lt.s32.totalorder %s315_s24, %s315_s24 }
 0x16d   :  { %p7056_p3 = scmp.lt.s32.totalorder %s7054_s18, %s7050_s15 }
 0x16f   :  { %p7057_p4 = por %p7056_p3, %p7055_p2 }
 0x171   :  { %p7058_p5 = pnand %p7057_p4, %p7051_p1 }
 0x173   :  { %7061 = shalt.err (!%p7058_p5)
}
 0x174   :  { %s8175_s3 = sld [smem:[#allocation89_spill]] }
 0x175   :  { %317 = dma.hbm_to_vmem [thread:$0]  %s8174_s5, 16, %s315_s24, [#allocation20]  }
 0x17a   :  { %s7062_s23 = scalar_lea.hbm %s8175_s3, 16 }
 0x17b   :  { %p7063_p6 = scmp.ne.s32.totalorder %s8175_s3, %s7062_s23  ;;  %p7066_p7 = scmp.lt.u32.totalorder %s7062_s23, %s8175_s3 }
 0x17d   :  { %p7068_p8 = pnand %p7066_p7, %p7063_p6 }
 0x17f   :  { %7071 = shalt.err (!%p7068_p8)
}
 0x180   :  { %s7072_s30 = scalar_lea.vmem %s339_s9, 16  ;;  %s7076_s22 = scalar_lea.vmem %s339_s9, 32 }
 0x181   :  { %p7073_p9 = scmp.ne.s32.totalorder %s339_s9, %s7072_s30  ;;  %p7077_p10 = scmp.lt.s32.totalorder %s339_s9, %s339_s9 }
 0x182   :  { %p7078_p11 = scmp.lt.s32.totalorder %s7076_s22, %s7072_s30 }
 0x184   :  { %p7079_p12 = por %p7078_p11, %p7077_p10 }
 0x186   :  { %p7080_p13 = pnand %p7079_p12, %p7073_p9 }
 0x188   :  { %7083 = shalt.err (!%p7080_p13)
}
 0x189   :  { %s8176_s26 = sld [smem:[#allocation92_spill]]  ;;  %s7298_s13 = smov [#allocation27]  }
 0x18a   :  { %341 = dma.hbm_to_vmem [thread:$0]  %s8175_s3, 16, %s339_s9, [#allocation23]  }
 0x18b   :  { %s362_s1 = sshll.u32 %s7298_s13, 4  ;;  %s7299_s17 = smov [#allocation30]   ;;  %s363_s1 = int_to_ptr.vmem [resolvable:$true] %s362_s1 }
 0x18c   :  { %s384_s4 = sshll.u32 %s7299_s17, 4  ;;  %s385_s4 = int_to_ptr.vmem [resolvable:$true] %s384_s4 }
 0x18f   :  { %s7084_s6 = scalar_lea.hbm %s8176_s26, 16 }
 0x190   :  { %p7085_p0 = scmp.ne.s32.totalorder %s8176_s26, %s7084_s6  ;;  %p7088_p1 = scmp.lt.u32.totalorder %s7084_s6, %s8176_s26 }
 0x192   :  { %p7090_p2 = pnand %p7088_p1, %p7085_p0 }
 0x194   :  { %7093 = shalt.err (!%p7090_p2)
}
 0x195   :  { %s7094_s19 = scalar_lea.vmem %s363_s1, 16  ;;  %s7098_s28 = scalar_lea.vmem %s363_s1, 32 }
 0x196   :  { %p7095_p3 = scmp.ne.s32.totalorder %s363_s1, %s7094_s19  ;;  %p7099_p4 = scmp.lt.s32.totalorder %s363_s1, %s363_s1 }
 0x197   :  { %p7100_p5 = scmp.lt.s32.totalorder %s7098_s28, %s7094_s19 }
 0x199   :  { %p7101_p6 = por %p7100_p5, %p7099_p4 }
 0x19b   :  { %p7102_p7 = pnand %p7101_p6, %p7095_p3 }
 0x19d   :  { %7105 = shalt.err (!%p7102_p7)
}
 0x19e   :  { %s8177_s2 = sld [smem:[#allocation93_spill]] }
 0x19f   :  { %365 = dma.hbm_to_vmem [thread:$0]  %s8176_s26, 16, %s363_s1, [#allocation26]  }
 0x1a4   :  { %s7106_s27 = scalar_lea.hbm %s8177_s2, 16 }
 0x1a5   :  { %p7107_p8 = scmp.ne.s32.totalorder %s8177_s2, %s7106_s27  ;;  %p7110_p9 = scmp.lt.u32.totalorder %s7106_s27, %s8177_s2 }
 0x1a7   :  { %p7112_p10 = pnand %p7110_p9, %p7107_p8 }
 0x1a9   :  { %7115 = shalt.err (!%p7112_p10)
}
 0x1aa   :  { %s7116_s21 = scalar_lea.vmem %s385_s4, 16  ;;  %s7120_s29 = scalar_lea.vmem %s385_s4, 32 }
 0x1ab   :  { %p7117_p11 = scmp.ne.s32.totalorder %s385_s4, %s7116_s21  ;;  %p7121_p12 = scmp.lt.s32.totalorder %s385_s4, %s385_s4 }
 0x1ac   :  { %p7122_p13 = scmp.lt.s32.totalorder %s7120_s29, %s7116_s21 }
 0x1ae   :  { %p7123_p0 = por %p7122_p13, %p7121_p12 }
 0x1b0   :  { %p7124_p1 = pnand %p7123_p0, %p7117_p11 }
 0x1b2   :  { %7127 = shalt.err (!%p7124_p1)
}
 0x1b3   :  { %387 = dma.hbm_to_vmem [thread:$0]  %s8177_s2, 16, %s385_s4, [#allocation29]  }
 0x1b4   :  { %s7300_s14 = smov [#allocation33]   ;;  %s7301_s10 = smov [#allocation36]  }
 0x1b5   :  { %s404_s0 = sshll.u32 %s7300_s14, 4  ;;  %s424_s5 = sshll.u32 %s7301_s10, 4  ;;  %s405_s0 = int_to_ptr.vmem [resolvable:$true] %s404_s0  ;;  %s425_s5 = int_to_ptr.vmem [resolvable:$true] %s424_s5 }
 0x1b6   :  { %s7128_s11 = scalar_lea.hbm %s7604_s25, 16 }
 0x1b7   :  { %p7129_p2 = scmp.ne.s32.totalorder %s7604_s25, %s7128_s11  ;;  %p7132_p3 = scmp.lt.u32.totalorder %s7128_s11, %s7604_s25 }
 0x1b9   :  { %p7134_p4 = pnand %p7132_p3, %p7129_p2 }
 0x1bb   :  { %7137 = shalt.err (!%p7134_p4)
}
 0x1bc   :  { %s7138_s24 = scalar_lea.vmem %s405_s0, 16  ;;  %s7142_s8 = scalar_lea.vmem %s405_s0, 32 }
 0x1bd   :  { %p7139_p5 = scmp.ne.s32.totalorder %s405_s0, %s7138_s24  ;;  %p7143_p6 = scmp.lt.s32.totalorder %s405_s0, %s405_s0 }
 0x1be   :  { %p7144_p7 = scmp.lt.s32.totalorder %s7142_s8, %s7138_s24 }
 0x1c0   :  { %p7145_p8 = por %p7144_p7, %p7143_p6 }
 0x1c2   :  { %p7146_p9 = pnand %p7145_p8, %p7139_p5 }
 0x1c4   :  { %7149 = shalt.err (!%p7146_p9)
}
 0x1c5   :  { %407 = dma.hbm_to_vmem [thread:$0]  %s7604_s25, 16, %s405_s0, [#allocation32]  }
 0x1c6   :  { %s7150_s9 = scalar_lea.hbm %s7614_s20, 64 }
 0x1c7   :  { %p7151_p10 = scmp.ne.s32.totalorder %s7614_s20, %s7150_s9  ;;  %p7154_p11 = scmp.lt.u32.totalorder %s7150_s9, %s7614_s20 }
 0x1c9   :  { %p7156_p12 = pnand %p7154_p11, %p7151_p10 }
 0x1cb   :  { %7159 = shalt.err (!%p7156_p12)
}
 0x1cc   :  { %s7160_s16 = scalar_lea.vmem %s425_s5, 64  ;;  %p7165_p0 = scmp.lt.s32.totalorder %s425_s5, %s425_s5 }
 0x1cd   :  { %p7161_p13 = scmp.ne.s32.totalorder %s425_s5, %s7160_s16  ;;  %p7166_p1 = scmp.lt.s32.totalorder %s7160_s16, %s7160_s16 }
 0x1cf   :  { %p7167_p2 = por %p7166_p1, %p7165_p0 }
 0x1d1   :  { %p7168_p3 = pnand %p7167_p2, %p7161_p13 }
 0x1d3   :  { %7171 = shalt.err (!%p7168_p3)
}
 0x1d4   :  { %427 = dma.hbm_to_vmem [thread:$0]  %s7614_s20, 64, %s425_s5, [#allocation35]  }
 0x1d5   :  { %7194 = dma.done.wait [#allocation6], 16  }
 0x1d6   :  { %7195 = vsyncadd [#allocation6], 4294967280 }
 0x1d7   :  { %7196 = dma.done.wait [#allocation8], 16  }
 0x1d8   :  { %7197 = vsyncadd [#allocation8], 4294967280 }
 0x1d9   :  { %7198 = dma.done.wait [#allocation4], 16  }
 0x1da   :  { %7199 = vsyncadd [#allocation4], 4294967280 }
 0x1db   :  { %7200 = dma.done.wait [#allocation11], 80  }
 0x1dc   :  { %7201 = vsyncadd [#allocation11], 4294967216 }
 0x1dd   :  { %7202 = dma.done.wait [#allocation14], 80  }
 0x1de   :  { %7203 = vsyncadd [#allocation14], 4294967216 }
 0x1df   :  { %7204 = dma.done.wait [#allocation17], 128  }
 0x1e0   :  { %7205 = vsyncadd [#allocation17], 4294967168 }
 0x1e1   :  { %7206 = dma.done.wait [#allocation20], 80  }
 0x1e2   :  { %7207 = vsyncadd [#allocation20], 4294967216 }
 0x1e3   :  { %7208 = dma.done.wait [#allocation23], 32  }
 0x1e4   :  { %7209 = vsyncadd [#allocation23], 4294967264 }
 0x1e5   :  { %7210 = dma.done.wait [#allocation26], 32  }
 0x1e6   :  { %7211 = vsyncadd [#allocation26], 4294967264 }
 0x1e7   :  { %7212 = dma.done.wait [#allocation29], 80  }
 0x1e8   :  { %7213 = vsyncadd [#allocation29], 4294967216 }
 0x1e9   :  { %7214 = dma.done.wait [#allocation32], 32  }
 0x1ea   :  { %7215 = vsyncadd [#allocation32], 4294967264 }
 0x1eb   :  { %7216 = dma.done.wait [#allocation35], 192  }
 0x1ec   :  { %7217 = vsyncadd [#allocation35], 4294967104 }
 0x1ed   :  { %491 = sfence }
 0x1ee   :  { %v494_v1 = vld [vmem:[#allocation36] sm:$0xf]  ;;  %s8178_s25 = sld [smem:[#allocation51_spill]]  ;;  %vm509_vm0 = vcmask 1043456   ;;  %vm502_vm1 = vcmask 31744   ;;  %v7302_v3 = vmov 0.0  }
 0x1ef   :  { %5950 = vmatprep.subr.msk.mxu0 %vm509_vm0, %v494_v1  ;;  %5955 = vmatprep.subr.mxu1 %v7302_v3  ;;  %v7713_v4 = vld [vmem:[#allocation34] sm:$0xff]  ;;  %vm7303_vm2 = vmmov 0   ;;  %v7733_v6 = vld [vmem:[#allocation31] ss:$0 sm:$0xff]  ;;  %v5586_v8 = vld [vmem:[#allocation33] ss:$0 sm:$0xff] }
 0x1f0   :  { %5951 = vmatpush3.msk.msra.mxu0 %vm509_vm0, %v494_v1  ;;  %5956 = vmatpush3.msra.mxu1 %v7713_v4  ;;  %s7304_s20 = smov 112   ;;  %s7305_s15 = smov 16   ;;  %vm596_vm3 = vcmask 64512   ;;  %vm1594_vm5 = vcmask 130112   ;;  %vm1728_vm12 = vcmask 130048   ;;  %vm2703_vm15 = vcmask 261120  }
 0x1f1   :  { %5957 = vmatprep.mubr.msk.f32.mxu1 %vm7303_vm2, %v7302_v3  ;;  %5960 = vmatprep.subr.mxu0 %v7302_v3  ;;  %s7306_s18 = smov 120   ;;  %s5594_s3 = sld [smem:[#allocation3 + $0x1]]  ;;  %vm5621_vm13 = vmneg %vm596_vm3 }
 0x1f2   :  { %5958 = vmatmul.mubr.f32.vlgmr.msra.gmra.mrb[0].mxu1 %v7302_v3  ;;  %5965 = vmatprep.subr.mxu1 %v7302_v3  ;;  %s5595_s23 = sld [smem:[#allocation7 + $0x1]]  ;;  %s696_s30 = sld [smem:[#allocation3]]  ;;  %vm6286_vm14 = vmpackc.low %vm5621_vm13, %vm596_vm3 }
 0x1f3   :  { %5966 = vmatpush3.msra.mxu1 %v7713_v4  ;;  %5967 = vmatprep.mubr.msk.f32.mxu1 %vm7303_vm2, %v7302_v3  ;;  %s700_s22 = sld [smem:[#allocation7]]  ;;  %s5598_s26 = sld [smem:[#allocation3 + $0x2]] }
 0x1f4   :  { %v492_v2 = vld [vmem:[%s8178_s25] sm:$0xff]  ;;  %v493_v5 = vld [vmem:[%s8178_s25 + $0x8] sm:$0xff]  ;;  %5975 = vmatprep.subr.mxu1 %v7302_v3  ;;  %s5599_s13 = sld [smem:[#allocation7 + $0x2]]  ;;  %s5602_s1 = sld [smem:[#allocation3 + $0x3]] }
 0x1f5   :  { %5952 = vmatprep.mubr.msk.f32.mxu0 %vm502_vm1, %v492_v2  ;;  %s5603_s17 = sld [smem:[#allocation7 + $0x3]]  ;;  %s5606_s4 = sld [smem:[#allocation3 + $0x4]] }
 0x1f6   :  { %5953 = vmatmul.mubr.msk.f32.vlgmr.msra.gmra.mrb[0].mxu0 %vm502_vm1, %v493_v5  ;;  %s5607_s6 = sld [smem:[#allocation7 + $0x4]]  ;;  %s5611_s19 = sld [smem:[#allocation7 + $0x5]] }
 0x1f7   :  { %5962 = vmatprep.mubr.msk.f32.mxu0 %vm7303_vm2, %v7302_v3  ;;  %5961 = vmatpush3.msra.mxu0 %v7713_v4  ;;  %v810_v50 = vstv %s5594_s3  ;;  %s5610_s28 = sld [smem:[#allocation3 + $0x5]]  ;;  %s5614_s2 = sld [smem:[#allocation3 + $0x6]] }
 0x1f8   :  { %5970 = vmatprep.subr.mxu0 %v7302_v3  ;;  %v817_v51 = vstv %s5595_s23  ;;  %v697_v53 = vstv %s696_s30  ;;  %s5615_s27 = sld [smem:[#allocation7 + $0x6]]  ;;  %s5618_s21 = sld [smem:[#allocation3 + $0x7]] }
 0x1f9   :  { %v701_v54 = vstv %s700_s22  ;;  %s5619_s29 = sld [smem:[#allocation7 + $0x7]]  ;;  %s7309_s14 = smov 8  }
 0x1fa   :  { %s8179_s0 = sld [smem:[#allocation52_spill]]  ;;  %s8181_s5 = sld [smem:[#allocation69_spill]] }
 0x1fb   :  { %s8180_s10 = sld [smem:[#allocation68_spill]]  ;;  %s8182_s11 = sld [smem:[#allocation64_spill]] }
 0x1fc   :  { %s8183_s24 = sld [smem:[#allocation65_spill]]  ;;  %s8184_s8 = sld [smem:[#allocation66_spill]] }
 0x1fd   :  { %s8185_s9 = sld [smem:[#allocation70_spill]]  ;;  %s8186_s16 = sld [smem:[#allocation73_spill]] }
 0x1fe   :  { %s8187_s25 = sld [smem:[#allocation63_spill]]  ;;  %s7310_s3 = smov 96  }
 0x1ff   :  { %s8190_s23 = sld [smem:[#allocation74_spill]]  ;;  %s8191_s30 = sld [smem:[#allocation71_spill]] }
 0x200   :  { %s8192_s22 = sld [smem:[#allocation75_spill]] }
 0x2c5   :  { %v666_v9 = vpop.f32.mrb[0].mxu1 }
 0x2c6   :  { %v667_v11 = vadd.f32 %v7733_v6, %v666_v9  ;;  %v5959_v13 = vpop.f32.mrb[1].mxu1 }
 0x2c8   :  { %678 = vrot.lane.b32.xlu0 %v667_v11, %s7304_s20 }
 0x2c9   :  { %v5954_v7 = vpop.f32.mrb[0].mxu0 }
 0x2ca   :  { %v7735_v10 = vadd.f32 %v5954_v7, %v5586_v8  ;;  %v579_v12 = vpop.f32.mrb[1].mxu0 }
 0x2cb   :  { %v7739_v14 = vadd.f32 %v5586_v8, %v579_v12 }
 0x2cd   :  { %v670_v15 = vadd.f32 %v667_v11, %v7739_v14 }
 0x2cf   :  { %v5591_v16 = vmul.f32 -1.442695, %v670_v15 }
 0x2d1   :  { %6550 = vpow2.f32 %v5591_v16 }
 0x2db   :  { %v6551_v17 = vpop.eup %6550 }
 0x2dc   :  { %v674_v18 = vadd.f32 1.0, %v6551_v17 }
 0x2de   :  { %6552 = vrcp.f32 %v674_v18 }
 0x2e8   :  { %v6553_v19 = vpop.eup %6552 }
 0x2e9   :  { %v688_v25 = vsub.f32 1.0, %v6553_v19  ;;  %v694_v27 = vmul.f32 0.0, %v6553_v19 }
 0x33a   :  { %v679_v20 = vpop.permute.xlu0 %678 }
 0x33b   :  { %v681_v21 = vmul.f32 %v6553_v19, %v679_v20 }
 0x33d   :  { %683 = vrot.lane.b32.xlu0 %v681_v21, %s7305_s15 }
 0x3af   :  { %v684_v22 = vpop.permute.xlu0 %683 }
 0x3b0   :  { %v686_v23 = vadd.f32 %v684_v22, %v7739_v14 }
 0x3b2   :  { %6554 = vtanh.f32 %v686_v23 }
 0x3bc   :  { %v6555_v24 = vpop.eup %6554 }
 0x3bd   :  { %690 = vrot.lane.b32.xlu1 %v6555_v24, %s7306_s18 }
 0x42f   :  { %v691_v26 = vpop.permute.xlu1 %690 }
 0x430   :  { %v693_v28 = vmul.f32 %v691_v26, %v688_v25  ;;  %v930_v25 = vstv %s5598_s26  ;;  %v937_v26 = vstv %s5599_s13  ;;  %s8193_s26 = sld [smem:[#allocation78_spill]]  ;;  %s8194_s13 = sld [smem:[#allocation57_spill]] }
 0x432   :  { %v695_v29 = vadd.f32 %v694_v27, %v693_v28 }
 0x434   :  { %705 = vrot.lane.b32.xlu1 %v695_v29, %s7306_s18  ;;  %v805_v46 = vrot.slane %v695_v29, 6  ;;  %v698_v58 = vmul.f32 %v697_v53, %v695_v29  ;;  %v702_v59 = vmul.f32 %v701_v54, %v695_v29 }
 0x4a6   :  { %v706_v30 = vpop.permute.xlu1 %705 }
 0x4a7   :  { %5963 = vmatmul.mubr.msk.f32.vlgmr.msra.gmra.mrb[2].mxu0 %vm596_vm3, %v706_v30 }
 0x4a8   :  { %5971 = vmatpush3.msra.mxu0 %v7713_v4  ;;  %5972 = vmatprep.mubr.msk.f32.mxu0 %vm7303_vm2, %v7302_v3 }
 0x4a9   :  { %5980 = vmatprep.subr.mxu0 %v7302_v3 }
 0x57a   :  { %v775_v31 = vpop.f32.mrb[2].mxu0 }
 0x57b   :  { %v776_v32 = vadd.f32 %v7733_v6, %v775_v31  ;;  %v5964_v33 = vpop.f32.mrb[3].mxu0 }
 0x57d   :  { %v780_v34 = vrot.slane %v776_v32, 6 }
 0x57f   :  { %789 = vrot.lane.b32.xlu0 %v780_v34, %s7304_s20  ;;  %v782_v35 = vadd.f32 %v780_v34, %v7739_v14 }
 0x581   :  { %v5593_v36 = vmul.f32 -1.442695, %v782_v35 }
 0x583   :  { %6556 = vpow2.f32 %v5593_v36 }
 0x58d   :  { %v6557_v37 = vpop.eup %6556 }
 0x58e   :  { %v786_v38 = vadd.f32 1.0, %v6557_v37 }
 0x590   :  { %6558 = vrcp.f32 %v786_v38 }
 0x59a   :  { %v6559_v39 = vpop.eup %6558 }
 0x59b   :  { %v799_v45 = vsub.f32 1.0, %v6559_v39  ;;  %v807_v49 = vmul.f32 %v6559_v39, %v805_v46 }
 0x5f1   :  { %v790_v40 = vpop.permute.xlu0 %789 }
 0x5f2   :  { %v792_v41 = vmul.f32 %v6559_v39, %v790_v40 }
 0x5f4   :  { %794 = vrot.lane.b32.xlu1 %v792_v41, %s7305_s15 }
 0x666   :  { %v795_v42 = vpop.permute.xlu1 %794 }
 0x667   :  { %v797_v43 = vadd.f32 %v795_v42, %v7739_v14 }
 0x669   :  { %6560 = vtanh.f32 %v797_v43 }
 0x673   :  { %v6561_v44 = vpop.eup %6560 }
 0x674   :  { %801 = vrot.lane.b32.xlu0 %v6561_v44, %s7306_s18 }
 0x6e6   :  { %v802_v47 = vpop.permute.xlu0 %801 }
 0x6e7   :  { %v804_v48 = vmul.f32 %v802_v47, %v799_v45 }
 0x6e9   :  { %v808_v52 = vadd.f32 %v807_v49, %v804_v48 }
 0x6eb   :  { %v811_v55 = vmul.f32 %v810_v50, %v808_v52  ;;  %v818_v56 = vmul.f32 %v817_v51, %v808_v52  ;;  %v824_v57 = vrot.slane %v808_v52, 2  ;;  %v925_v21 = vrot.slane %v808_v52, 6 }
 0x6ed   :  { %v813_v60 = vrot.slane %v811_v55, 2  ;;  %v820_v61 = vrot.slane %v818_v56, 2  ;;  %825 = vrot.lane.b32.xlu1 %v824_v57, %s7306_s18  ;;  %v1050_v55 = vstv %s5602_s1  ;;  %v1057_v56 = vstv %s5603_s17  ;;  %s8195_s1 = sld [smem:[#allocation72_spill]]  ;;  %s8196_s17 = sld [smem:[#allocation76_spill]] }
 0x6ef   :  { %v815_v62 = vadd.f32 %v813_v60, %v698_v58  ;;  %v822_v63 = vadd.f32 %v820_v61, %v702_v59 }
 0x75f   :  { %v826_v0 = vpop.permute.xlu1 %825 }
 0x760   :  { %5968 = vmatmul.mubr.msk.f32.vlgmr.msra.gmra.mrb[2].mxu1 %vm596_vm3, %v826_v0 }
 0x761   :  { %5976 = vmatpush3.msra.mxu1 %v7713_v4  ;;  %5977 = vmatprep.mubr.msk.f32.mxu1 %vm7303_vm2, %v7302_v3 }
 0x762   :  { %5985 = vmatprep.subr.mxu1 %v7302_v3 }
 0x833   :  { %v895_v1 = vpop.f32.mrb[2].mxu1 }
 0x834   :  { %v896_v2 = vadd.f32 %v7733_v6, %v895_v1  ;;  %v5969_v5 = vpop.f32.mrb[3].mxu1 }
 0x836   :  { %v900_v7 = vrot.slane %v896_v2, 4 }
 0x838   :  { %909 = vrot.lane.b32.xlu0 %v900_v7, %s7304_s20  ;;  %v902_v8 = vadd.f32 %v900_v7, %v7739_v14 }
 0x83a   :  { %v5597_v9 = vmul.f32 -1.442695, %v902_v8 }
 0x83c   :  { %6562 = vpow2.f32 %v5597_v9 }
 0x846   :  { %v6563_v11 = vpop.eup %6562 }
 0x847   :  { %v906_v12 = vadd.f32 1.0, %v6563_v11 }
 0x849   :  { %6564 = vrcp.f32 %v906_v12 }
 0x853   :  { %v6565_v13 = vpop.eup %6564 }
 0x854   :  { %v919_v20 = vsub.f32 1.0, %v6565_v13  ;;  %v927_v23 = vmul.f32 %v6565_v13, %v925_v21 }
 0x8aa   :  { %v910_v15 = vpop.permute.xlu0 %909 }
 0x8ab   :  { %v912_v16 = vmul.f32 %v6565_v13, %v910_v15 }
 0x8ad   :  { %914 = vrot.lane.b32.xlu1 %v912_v16, %s7305_s15 }
 0x91f   :  { %v915_v17 = vpop.permute.xlu1 %914 }
 0x920   :  { %v917_v18 = vadd.f32 %v915_v17, %v7739_v14 }
 0x922   :  { %6566 = vtanh.f32 %v917_v18 }
 0x92c   :  { %v6567_v19 = vpop.eup %6566 }
 0x92d   :  { %921 = vrot.lane.b32.xlu0 %v6567_v19, %s7306_s18 }
 0x99f   :  { %v922_v22 = vpop.permute.xlu0 %921 }
 0x9a0   :  { %v924_v24 = vmul.f32 %v922_v22, %v919_v20 }
 0x9a2   :  { %v928_v27 = vadd.f32 %v927_v23, %v924_v24  ;;  %v1167_v23 = vstv %s5606_s4  ;;  %v1171_v24 = vstv %s5607_s6  ;;  %s8197_s4 = sld [smem:[#allocation58_spill]]  ;;  %s8198_s6 = sld [smem:[#allocation62_spill]] }
 0x9a4   :  { %v931_v28 = vmul.f32 %v930_v25, %v928_v27  ;;  %v938_v29 = vmul.f32 %v937_v26, %v928_v27  ;;  %v944_v30 = vrot.slane %v928_v27, 4  ;;  %v1045_v51 = vrot.slane %v928_v27, 6 }
 0x9a6   :  { %v933_v31 = vrot.slane %v931_v28, 4  ;;  %v940_v32 = vrot.slane %v938_v29, 4  ;;  %945 = vrot.lane.b32.xlu1 %v944_v30, %s7306_s18 }
 0x9a8   :  { %v935_v33 = vadd.f32 %v933_v31, %v815_v62  ;;  %v942_v34 = vadd.f32 %v940_v32, %v822_v63 }
 0xa18   :  { %v946_v35 = vpop.permute.xlu1 %945 }
 0xa19   :  { %5973 = vmatmul.mubr.msk.f32.vlgmr.msra.gmra.mrb[4].mxu0 %vm596_vm3, %v946_v35 }
 0xa1a   :  { %5981 = vmatpush3.msra.mxu0 %v7713_v4  ;;  %5982 = vmatprep.mubr.msk.f32.mxu0 %vm7303_vm2, %v7302_v3 }
 0xa1b   :  { %5990 = vmatprep.subr.mxu0 %v7302_v3 }
 0xaec   :  { %v1015_v36 = vpop.f32.mrb[4].mxu0 }
 0xaed   :  { %v1016_v37 = vadd.f32 %v7733_v6, %v1015_v36  ;;  %v5974_v38 = vpop.f32.mrb[5].mxu0 }
 0xaef   :  { %v1020_v39 = vrot.slane %v1016_v37, 2 }
 0xaf1   :  { %1029 = vrot.lane.b32.xlu0 %v1020_v39, %s7304_s20  ;;  %v1022_v40 = vadd.f32 %v1020_v39, %v7739_v14 }
 0xaf3   :  { %v5601_v41 = vmul.f32 -1.442695, %v1022_v40 }
 0xaf5   :  { %6568 = vpow2.f32 %v5601_v41 }
 0xaff   :  { %v6569_v42 = vpop.eup %6568 }
 0xb00   :  { %v1026_v43 = vadd.f32 1.0, %v6569_v42 }
 0xb02   :  { %6570 = vrcp.f32 %v1026_v43 }
 0xb0c   :  { %v6571_v44 = vpop.eup %6570 }
 0xb0d   :  { %v1039_v50 = vsub.f32 1.0, %v6571_v44  ;;  %v1047_v53 = vmul.f32 %v6571_v44, %v1045_v51 }
 0xb63   :  { %v1030_v45 = vpop.permute.xlu0 %1029 }
 0xb64   :  { %v1032_v46 = vmul.f32 %v6571_v44, %v1030_v45 }
 0xb66   :  { %1034 = vrot.lane.b32.xlu1 %v1032_v46, %s7305_s15 }
 0xbd8   :  { %v1035_v47 = vpop.permute.xlu1 %1034 }
 0xbd9   :  { %v1037_v48 = vadd.f32 %v1035_v47, %v7739_v14 }
 0xbdb   :  { %6572 = vtanh.f32 %v1037_v48 }
 0xbe5   :  { %v6573_v49 = vpop.eup %6572 }
 0xbe6   :  { %1041 = vrot.lane.b32.xlu0 %v6573_v49, %s7306_s18  ;;  %v1287_v49 = vstv %s5611_s19  ;;  %s8199_s19 = sld [smem:[#allocation61_spill]] }
 0xc58   :  { %v1042_v52 = vpop.permute.xlu0 %1041 }
 0xc59   :  { %v1044_v54 = vmul.f32 %v1042_v52, %v1039_v50  ;;  %v1280_v50 = vstv %s5610_s28  ;;  %s8200_s28 = sld [smem:[#allocation55_spill]] }
 0xc5b   :  { %v1048_v57 = vadd.f32 %v1047_v53, %v1044_v54 }
 0xc5d   :  { %v1051_v58 = vmul.f32 %v1050_v55, %v1048_v57  ;;  %v1058_v59 = vmul.f32 %v1057_v56, %v1048_v57  ;;  %v1064_v60 = vrot.slane %v1048_v57, 6 }
 0xc5f   :  { %v1053_v61 = vrot.slane %v1051_v58, 6  ;;  %v1060_v62 = vrot.slane %v1058_v59, 6  ;;  %1065 = vrot.lane.b32.xlu1 %v1064_v60, %s7306_s18 }
 0xc61   :  { %v1055_v14 = vadd.f32 %v1053_v61, %v935_v33  ;;  %v1062_v63 = vadd.f32 %v1060_v62, %v942_v34 }
 0xcd1   :  { %v1066_v0 = vpop.permute.xlu1 %1065 }
 0xcd2   :  { %5978 = vmatmul.mubr.msk.f32.vlgmr.msra.gmra.mrb[4].mxu1 %vm596_vm3, %v1066_v0 }
 0xcd3   :  { %5986 = vmatpush3.msra.mxu1 %v7713_v4  ;;  %5987 = vmatprep.mubr.msk.f32.mxu1 %vm7303_vm2, %v7302_v3 }
 0xda5   :  { %v1135_v1 = vpop.f32.mrb[4].mxu1 }
 0xda6   :  { %v1136_v2 = vadd.f32 %v7733_v6, %v1135_v1  ;;  %v5979_v5 = vpop.f32.mrb[5].mxu1 }
 0xda8   :  { %1147 = vrot.lane.b32.xlu0 %v1136_v2, %s7304_s20  ;;  %v1139_v7 = vadd.f32 %v1136_v2, %v7735_v10 }
 0xdaa   :  { %v5605_v8 = vmul.f32 -1.442695, %v1139_v7 }
 0xdac   :  { %6574 = vpow2.f32 %v5605_v8 }
 0xdb6   :  { %v6575_v9 = vpop.eup %6574 }
 0xdb7   :  { %v1143_v11 = vadd.f32 1.0, %v6575_v9 }
 0xdb9   :  { %6576 = vrcp.f32 %v1143_v11 }
 0xdc3   :  { %v6577_v12 = vpop.eup %6576 }
 0xdc4   :  { %v1157_v19 = vsub.f32 1.0, %v6577_v12  ;;  %v1164_v21 = vmul.f32 %v6577_v12, %v1064_v60 }
 0xe1a   :  { %v1148_v13 = vpop.permute.xlu0 %1147 }
 0xe1b   :  { %v1150_v15 = vmul.f32 %v6577_v12, %v1148_v13 }
 0xe1d   :  { %1152 = vrot.lane.b32.xlu1 %v1150_v15, %s7305_s15 }
 0xe8f   :  { %v1153_v16 = vpop.permute.xlu1 %1152 }
 0xe90   :  { %v1155_v17 = vadd.f32 %v1153_v16, %v7735_v10 }
 0xe92   :  { %6578 = vtanh.f32 %v1155_v17 }
 0xe9c   :  { %v6579_v18 = vpop.eup %6578 }
 0xe9d   :  { %1159 = vrot.lane.b32.xlu0 %v6579_v18, %s7306_s18 }
 0xf0f   :  { %v1160_v20 = vpop.permute.xlu0 %1159 }
 0xf10   :  { %v1162_v22 = vmul.f32 %v1160_v20, %v1157_v19  ;;  %v1400_v19 = vstv %s5614_s2  ;;  %v1407_v20 = vstv %s5615_s27  ;;  %s8201_s2 = sld [smem:[#allocation59_spill]]  ;;  %s8202_s27 = sld [smem:[#allocation56_spill]] }
 0xf12   :  { %v1165_v25 = vadd.f32 %v1164_v21, %v1162_v22 }
 0xf14   :  { %v1168_v26 = vmul.f32 %v1167_v23, %v1165_v25  ;;  %v1172_v27 = vmul.f32 %v1171_v24, %v1165_v25  ;;  %1175 = vrot.lane.b32.xlu1 %v1165_v25, %s7306_s18  ;;  %v1275_v45 = vrot.slane %v1165_v25, 6 }
 0xf16   :  { %v1169_v28 = vadd.f32 %v1168_v26, %v1055_v14  ;;  %v1173_v29 = vadd.f32 %v1172_v27, %v1062_v63 }
 0xf86   :  { %v1176_v30 = vpop.permute.xlu1 %1175 }
 0xf87   :  { %5983 = vmatmul.mubr.msk.f32.vlgmr.msra.gmra.mrb[6].mxu0 %vm596_vm3, %v1176_v30 }
 0xf88   :  { %5991 = vmatpush3.msra.mxu0 %v7713_v4  ;;  %5992 = vmatprep.mubr.msk.f32.mxu0 %vm7303_vm2, %v7302_v3 }
0x105a   :  { %v1245_v31 = vpop.f32.mrb[6].mxu0 }
0x105b   :  { %v1246_v32 = vadd.f32 %v7733_v6, %v1245_v31  ;;  %v5984_v33 = vpop.f32.mrb[7].mxu0 }
0x105d   :  { %v1250_v34 = vrot.slane %v1246_v32, 6 }
0x105f   :  { %1259 = vrot.lane.b32.xlu0 %v1250_v34, %s7304_s20  ;;  %v1252_v35 = vadd.f32 %v1250_v34, %v7735_v10 }
0x1061   :  { %v5609_v36 = vmul.f32 -1.442695, %v1252_v35 }
0x1063   :  { %6580 = vpow2.f32 %v5609_v36 }
0x106d   :  { %v6581_v37 = vpop.eup %6580 }
0x106e   :  { %v1256_v38 = vadd.f32 1.0, %v6581_v37 }
0x1070   :  { %6582 = vrcp.f32 %v1256_v38 }
0x107a   :  { %v6583_v39 = vpop.eup %6582 }
0x107b   :  { %v1269_v44 = vsub.f32 1.0, %v6583_v39  ;;  %v1277_v48 = vmul.f32 %v6583_v39, %v1275_v45 }
0x10d1   :  { %v1260_v40 = vpop.permute.xlu0 %1259 }
0x10d2   :  { %v1262_v4 = vmul.f32 %v6583_v39, %v1260_v40 }
0x10d4   :  { %1264 = vrot.lane.b32.xlu1 %v1262_v4, %s7305_s15 }
0x1146   :  { %v1265_v41 = vpop.permute.xlu1 %1264 }
0x1147   :  { %v1267_v42 = vadd.f32 %v1265_v41, %v7735_v10 }
0x1149   :  { %6584 = vtanh.f32 %v1267_v42 }
0x1153   :  { %v6585_v43 = vpop.eup %6584 }
0x1154   :  { %1271 = vrot.lane.b32.xlu0 %v6585_v43, %s7306_s18 }
0x11c6   :  { %v1272_v46 = vpop.permute.xlu0 %1271 }
0x11c7   :  { %v1274_v47 = vmul.f32 %v1272_v46, %v1269_v44  ;;  %v7307_v44 = vmov 0  }
0x11c8   :  { %6546 = vset.pattern.permute.xlu1 %v7307_v44 }
0x11c9   :  { %v1278_v51 = vadd.f32 %v1277_v48, %v1274_v47  ;;  %v1520_v48 = vstv %s5618_s21  ;;  %s8203_s21 = sld [smem:[#allocation54_spill]] }
0x11cb   :  { %v1288_v52 = vmul.f32 %v1287_v49, %v1278_v51  ;;  %v1294_v53 = vrot.slane %v1278_v51, 2  ;;  %v1281_v54 = vmul.f32 %v1280_v50, %v1278_v51  ;;  %v1395_v15 = vrot.slane %v1278_v51, 6 }
0x11cc   :  { %v1527_v49 = vstv %s5619_s29  ;;  %s8204_s29 = sld [smem:[#allocation53_spill]] }
0x11cd   :  { %1295 = vrot.lane.b32.xlu1 %v1294_v53, %s7306_s18  ;;  %v1283_v55 = vrot.slane %v1281_v54, 2  ;;  %v1290_v56 = vrot.slane %v1288_v52, 2 }
0x11cf   :  { %v1285_v57 = vadd.f32 %v1283_v55, %v1169_v28  ;;  %v1292_v58 = vadd.f32 %v1290_v56, %v1173_v29 }
0x123f   :  { %v1296_v59 = vpop.permute.xlu1 %1295 }
0x1240   :  { %5988 = vmatmul.mubr.msk.f32.vlgmr.msra.gmra.mrb[6].mxu1 %vm596_vm3, %v1296_v59  ;;  %v1574_v59 = vlaneseq }
0x1313   :  { %v1365_v60 = vpop.f32.mrb[6].mxu1 }
0x1314   :  { %v1366_v61 = vadd.f32 %v7733_v6, %v1365_v60  ;;  %v5989_v62 = vpop.f32.mrb[7].mxu1  ;;  %v7823_v60 = vshrl.u32 %v1574_v59, 7 }
0x1316   :  { %v1370_v14 = vrot.slane %v1366_v61, 4  ;;  %v1576_v61 = vsub.s32 0, %v7823_v60 }
0x1318   :  { %1379 = vrot.lane.b32.xlu0 %v1370_v14, %s7304_s20  ;;  %v1372_v63 = vadd.f32 %v1370_v14, %v7735_v10 }
0x131a   :  { %v5613_v0 = vmul.f32 -1.442695, %v1372_v63  ;;  %v1585_v63 = vsub.s32 1, %v7823_v60 }
0x131c   :  { %6586 = vpow2.f32 %v5613_v0 }
0x1326   :  { %v6587_v1 = vpop.eup %6586 }
0x1327   :  { %v1376_v2 = vadd.f32 1.0, %v6587_v1 }
0x1329   :  { %6588 = vrcp.f32 %v1376_v2 }
0x1333   :  { %v6589_v5 = vpop.eup %6588 }
0x1334   :  { %v1389_v13 = vsub.f32 1.0, %v6589_v5  ;;  %v1397_v17 = vmul.f32 %v6589_v5, %v1395_v15 }
0x138a   :  { %v1380_v7 = vpop.permute.xlu0 %1379 }
0x138b   :  { %v1382_v8 = vmul.f32 %v6589_v5, %v1380_v7 }
0x138d   :  { %1384 = vrot.lane.b32.xlu1 %v1382_v8, %s7305_s15 }
0x13ff   :  { %v1385_v9 = vpop.permute.xlu1 %1384 }
0x1400   :  { %v1387_v11 = vadd.f32 %v1385_v9, %v7735_v10 }
0x1402   :  { %6590 = vtanh.f32 %v1387_v11 }
0x140c   :  { %v6591_v12 = vpop.eup %6590 }
0x140d   :  { %1391 = vrot.lane.b32.xlu0 %v6591_v12, %s7306_s18 }
0x147f   :  { %v1392_v16 = vpop.permute.xlu0 %1391 }
0x1480   :  { %v1394_v18 = vmul.f32 %v1392_v16, %v1389_v13 }
0x1482   :  { %v1398_v21 = vadd.f32 %v1397_v17, %v1394_v18 }
0x1484   :  { %v1414_v22 = vrot.slane %v1398_v21, 4  ;;  %v1401_v23 = vmul.f32 %v1400_v19, %v1398_v21  ;;  %v1408_v24 = vmul.f32 %v1407_v20, %v1398_v21  ;;  %v1515_v43 = vrot.slane %v1398_v21, 6 }
0x1486   :  { %1415 = vrot.lane.b32.xlu1 %v1414_v22, %s7306_s18  ;;  %v1403_v25 = vrot.slane %v1401_v23, 4  ;;  %v1410_v26 = vrot.slane %v1408_v24, 4 }
0x1488   :  { %v1405_v27 = vadd.f32 %v1403_v25, %v1285_v57  ;;  %v1412_v28 = vadd.f32 %v1410_v26, %v1292_v58  ;;  %v7308_v58 = vmov 1  }
0x14f8   :  { %v1416_v29 = vpop.permute.xlu1 %1415 }
0x14f9   :  { %5993 = vmatmul.mubr.msk.f32.vlgmr.msra.gmra.mrb[8].mxu0 %vm596_vm3, %v1416_v29 }
0x15cc   :  { %v1485_v30 = vpop.f32.mrb[8].mxu0 }
0x15cd   :  { %v1486_v31 = vadd.f32 %v7733_v6, %v1485_v30  ;;  %v5994_v32 = vpop.f32.mrb[9].mxu0 }
0x15cf   :  { %v1490_v33 = vrot.slane %v1486_v31, 2 }
0x15d1   :  { %1499 = vrot.lane.b32.xlu0 %v1490_v33, %s7304_s20  ;;  %v1492_v34 = vadd.f32 %v1490_v33, %v7735_v10  ;;  %s8188_s20 = sld [smem:[#allocation67_spill]] }
0x15d3   :  { %v5617_v35 = vmul.f32 -1.442695, %v1492_v34 }
0x15d5   :  { %6592 = vpow2.f32 %v5617_v35 }
0x15df   :  { %v6593_v36 = vpop.eup %6592 }
0x15e0   :  { %v1496_v37 = vadd.f32 1.0, %v6593_v36 }
0x15e2   :  { %6594 = vrcp.f32 %v1496_v37 }
0x15ec   :  { %v6595_v38 = vpop.eup %6594 }
0x15ed   :  { %v1509_v42 = vsub.f32 1.0, %v6595_v38  ;;  %v1517_v46 = vmul.f32 %v6595_v38, %v1515_v43 }
0x1643   :  { %v1500_v39 = vpop.permute.xlu0 %1499 }
0x1644   :  { %v1502_v40 = vmul.f32 %v6595_v38, %v1500_v39 }
0x1646   :  { %1504 = vrot.lane.b32.xlu1 %v1502_v40, %s7305_s15  ;;  %s8189_s15 = sld [smem:[#allocation77_spill]] }
0x16b8   :  { %v1505_v4 = vpop.permute.xlu1 %1504 }
0x16b9   :  { %v1507_v41 = vadd.f32 %v1505_v4, %v7735_v10 }
0x16bb   :  { %6596 = vtanh.f32 %v1507_v41 }
0x16c5   :  { %v6597_v6 = vpop.eup %6596 }
0x16c6   :  { %1511 = vrot.lane.b32.xlu0 %v6597_v6, %s7306_s18 }
0x1738   :  { %v1512_v45 = vpop.permute.xlu0 %1511 }
0x1739   :  { %v1514_v47 = vmul.f32 %v1512_v45, %v1509_v42 }
0x173b   :  { %v1518_v50 = vadd.f32 %v1517_v46, %v1514_v47 }
0x173d   :  { %v1521_v51 = vmul.f32 %v1520_v48, %v1518_v50  ;;  %v1528_v52 = vmul.f32 %v1527_v49, %v1518_v50 }
0x173f   :  { %v1523_v10 = vrot.slane %v1521_v51, 6  ;;  %v1530_v53 = vrot.slane %v1528_v52, 6 }
0x1741   :  { %v1525_v54 = vadd.f32 %v1523_v10, %v1405_v27  ;;  %v1532_v55 = vadd.f32 %v1530_v53, %v1412_v28 }
0x1743   :  { %1534 = vrot.lane.b32.xlu1 %v1525_v54, %s7306_s18  ;;  %v1577_v62 = vrot.slane %v1532_v55, %v1576_v61  ;;  %v1586_v2 = vrot.slane %v1532_v55, %v1585_v63 }
0x17b5   :  { %v1535_v56 = vpop.permute.xlu1 %1534 }
0x17b6   :  { %1537 = vxpose.xlu0.b32.start.end [1/1] (short) (narrow) %v1535_v56, 8 }
0x1836   :  { %v1553_v57 = vpop.trf.xlu0 }
0x1837   :  { %1571 = vperm.xlu1 %6546, %v1553_v57  }
0x183b   :  { %6547 = vset.pattern.permute.xlu1 %v7308_v58 }
0x183c   :  { %1580 = vperm.xlu1 %6547, %v1553_v57  }
0x1840   :  { %6548 = vset.pattern.permute.xlu1 %v7307_v44 }
0x18b6   :  { %v1572_v14 = vpop.permute.xlu1 %1571 }
0x18b7   :  { %v1578_v0 = vadd.f32 %v1577_v62, %v1572_v14  ;;  %v1707_v14 = vand.u32 127, %v1574_v59  ;;  %v7856_v59 = vld [vmem:[%s8179_s0] sm:$0xff] }
0x18b9   :  { %v1590_v1 = vmul.f32 0.2, %v1578_v0  ;;  %vm1588_vm4 = vcmp.ge.f32.partialorder %v1578_v0, 0.0  ;;  %vm1708_vm11 = vcmp.eq.s32.totalorder %v7823_v60, %v1707_v14 }
0x18bb   :  { %v1581_v5 = vpop.permute.xlu1 %1580  ;;  %v1592_v7 = vsel %vm1588_vm4, %v1578_v0, %v1590_v1  ;;  %vm6417_vm4 = vmpackc.low %vm502_vm1, %vm502_vm1 }
0x18bc   :  { %v1587_v8 = vadd.f32 %v1586_v2, %v1581_v5  ;;  %v1595_v9 = vsel %vm1594_vm5, %v1592_v7, -inf }
0x18bd   :  { %1596 = vmax.xlane.f32.xlu1 %v1595_v9 }
0x18be   :  { %v1591_v11 = vmul.f32 0.2, %v1587_v8  ;;  %vm1589_vm6 = vcmp.ge.f32.partialorder %v1587_v8, 0.0 }
0x18c0   :  { %v1593_v12 = vsel %vm1589_vm6, %v1587_v8, %v1591_v11  ;;  %v7859_v11 = vld [vmem:[%s8179_s0 + $0x8] sm:$0xff]  ;;  %s8206_s0 = sld [smem:[#allocation87_spill]] }
0x18c1   :  { %v1598_v13 = vsel %vm1594_vm5, %v1593_v12, -inf }
0x18c2   :  { %1599 = vmax.xlane.f32.xlu0 %v1598_v13 }
0x194a   :  { %v1597_v15 = vpop.xlane.xlu1 %1596 }
0x194b   :  { %v1601_v16 = vsub.f32 %v1592_v7, %v1597_v15  ;;  %v6295_v15 = vpack.c.bf16 %v7859_v11, %v7856_v59 }
0x194d   :  { %v1603_v17 = vmul.f32 1.442695, %v1601_v16 }
0x194f   :  { %6598 = vpow2.f32 %v1603_v17  ;;  %v1600_v18 = vpop.xlane.xlu0 %1599 }
0x1950   :  { %v1602_v19 = vsub.f32 %v1593_v12, %v1600_v18 }
0x1952   :  { %v1605_v20 = vmul.f32 1.442695, %v1602_v19 }
0x1954   :  { %6600 = vpow2.f32 %v1605_v20 }
0x1959   :  { %v6599_v21 = vpop.eup %6598 }
0x195a   :  { %1609 = vrot.lane.b32.xlu1 %v6599_v21, %s7306_s18 }
0x195e   :  { %v6601_v22 = vpop.eup %6600 }
0x195f   :  { %1611 = vrot.lane.b32.xlu1 %v6601_v22, %s7306_s18 }
0x19cc   :  { %v1610_v23 = vpop.permute.xlu1 %1609 }
0x19cd   :  { %v1615_v24 = vsel %vm596_vm3, %v1610_v23, 0.0 }
0x19ce   :  { %1616 = vadd.xlane.f32.xlu1 %v1615_v24  ;;  %v2132_v24 = vld [vmem:[%s8180_s10] sm:$0xf]  ;;  %s8207_s10 = sld [smem:[#allocation90_spill]] }
0x19d1   :  { %v1612_v25 = vpop.permute.xlu1 %1611 }
0x19d2   :  { %v1618_v26 = vsel %vm596_vm3, %v1612_v25, 0.0  ;;  %v2312_v25 = vld [vmem:[%s8181_s5] sm:$0xf]  ;;  %s8208_s5 = sld [smem:[#allocation88_spill]] }
0x19d3   :  { %1619 = vadd.xlane.f32.xlu0 %v1618_v26  ;;  %v2225_v26 = vld [vmem:[%s8182_s11] sm:$0xf]  ;;  %s8209_s11 = sld [smem:[#allocation91_spill]] }
0x1a5b   :  { %v1617_v27 = vpop.xlane.xlu1 %1616 }
0x1a5c   :  { %6602 = vrcp.f32 %v1617_v27 }
0x1a60   :  { %v1620_v28 = vpop.xlane.xlu0 %1619 }
0x1a61   :  { %6604 = vrcp.f32 %v1620_v28 }
0x1a66   :  { %v6603_v29 = vpop.eup %6602 }
0x1a67   :  { %v1622_v31 = vmul.f32 %v6603_v29, %v6599_v21 }
0x1a6b   :  { %v6605_v30 = vpop.eup %6604 }
0x1a6c   :  { %v1624_v32 = vmul.f32 %v6605_v30, %v6601_v22 }
0x1a6e   :  { %v1625_v33 = vadd.f32 %v1624_v32, %v1622_v31 }
0x1a70   :  { %v1626_v34 = vmul.f32 0.5, %v1625_v33 }
0x1a72   :  { %1628 = vrot.lane.b32.xlu0 %v1626_v34, %s7306_s18 }
0x1ae4   :  { %v1629_v35 = vpop.permute.xlu0 %1628 }
0x1ae5   :  { %1631 = vxpose.xlu0.b32.start.end [1/1] (short) (narrow) %v1629_v35, 8  ;;  %v1674_v36 = vsel %vm596_vm3, %v1629_v35, 0.0  ;;  %v2399_v35 = vld [vmem:[%s8183_s24] sm:$0xf]  ;;  %s8210_s24 = sld [smem:[#allocation79_spill]] }
0x1ae6   :  { %1675 = vadd.xlane.f32.xlu1 %v1674_v36  ;;  %v2567_v36 = vld [vmem:[%s8184_s8] sm:$0xf]  ;;  %s8211_s8 = sld [smem:[#allocation80_spill]] }
0x1b0e   :  { %6549 = vset.pattern.permute.xlu0 %v7307_v44 }
0x1b65   :  { %v1647_v37 = vpop.trf.xlu0 }
0x1b66   :  { %1664 = vrot.lane.b32.xlu1 %v1647_v37, %s7309_s14  ;;  %v1677_v42 = vsel %vm596_vm3, %v1647_v37, 0.0  ;;  %v2480_v37 = vld [vmem:[%s8185_s9] sm:$0xf]  ;;  %s8212_s9 = sld [smem:[#allocation83_spill]] }
0x1b67   :  { %v1678_v43 = vrot.slane %v1677_v42, 4 }
0x1b69   :  { %v1679_v44 = vadd.f32 %v1678_v43, %v1677_v42  ;;  %v5640_v42 = vld [vmem:[%s8187_s25] ss:$0 sm:$0xff]  ;;  %s8214_s25 = sld [smem:[#allocation81_spill]] }
0x1b6a   :  { %v5636_v43 = vld [vmem:[%s8188_s20] ss:$0 sm:$0xff]  ;;  %s7312_s20 = smov [#allocation37]  }
0x1b6b   :  { %v1680_v45 = vrot.slane %v1679_v44, 2 }
0x1b6d   :  { %v1681_v46 = vadd.f32 %v1680_v45, %v1679_v44 }
0x1b6f   :  { %v1682_v47 = vrot.slane %v1681_v46, 1 }
0x1b71   :  { %v1683_v48 = vadd.f32 %v1682_v47, %v1681_v46 }
0x1b73   :  { %v1676_v38 = vpop.xlane.xlu1 %1675  ;;  %vm1696_vm8 = vcmp.eq.f32.partialorder %v1683_v48, inf  ;;  %v1699_v56 = vand.u32 2147483648, %v1683_v48  ;;  %vm1698_vm10 = vcmp.eq.f32.partialorder %v1683_v48, 0.0 }
0x1b74   :  { %6606 = vrsqrt.f32 %v1676_v38  ;;  %vm1686_vm7 = vcmp.eq.f32.partialorder %v1676_v38, inf  ;;  %v1689_v53 = vand.u32 2147483648, %v1676_v38  ;;  %vm1688_vm9 = vcmp.eq.f32.partialorder %v1676_v38, 0.0 }
0x1b75   :  { %6608 = vrsqrt.f32 %v1683_v48 }
0x1b7e   :  { %v6607_v49 = vpop.eup %6606 }
0x1b7f   :  { %v6609_v50 = vpop.eup %6608  ;;  %v1685_v51 = vmul.f32 %v6607_v49, %v1676_v38 }
0x1b80   :  { %v1695_v52 = vmul.f32 %v6609_v50, %v1683_v48 }
0x1b81   :  { %v1687_v10 = vsel %vm1686_vm7, %v1676_v38, %v1685_v51 }
0x1b82   :  { %v1697_v54 = vsel %vm1696_vm8, %v1683_v48, %v1695_v52  ;;  %v1690_v55 = vsel %vm1688_vm9, %v1689_v53, %v1687_v10 }
0x1b83   :  { %v1700_v57 = vsel %vm1698_vm10, %v1699_v56, %v1697_v54  ;;  %v1691_v58 = vadd.f32 1e-07, %v1690_v55  ;;  %v2809_v55 = vld [vmem:[%s8186_s16 + $0x10] sm:$0xff]  ;;  %v2810_v56 = vld [vmem:[%s8186_s16 + $0x18] sm:$0xff] }
0x1b84   :  { %v1701_v62 = vadd.f32 1e-07, %v1700_v57 }
0x1b85   :  { %6610 = vrcp.f32 %v1691_v58  ;;  %v6319_v58 = vpack.c.bf16 %v2810_v56, %v2809_v55  ;;  %v2921_v56 = vld [vmem:[%s8193_s26] sm:$0xff] }
0x1b86   :  { %6612 = vrcp.f32 %v1701_v62 }
0x1b8f   :  { %v6611_v1 = vpop.eup %6610 }
0x1b90   :  { %v6613_v7 = vpop.eup %6612 }
0x1bd8   :  { %v1665_v39 = vpop.permute.xlu1 %1664 }
0x1bd9   :  { %v1667_v40 = vadd.f32 %v1665_v39, %v1626_v34 }
0x1bdb   :  { %v7837_v4 = vmul.f32 0.5, %v1667_v40  ;;  %v2807_v40 = vld [vmem:[%s8186_s16] sm:$0xff] }
0x1bdd   :  { %v1709_v41 = vsub.f32 %v1676_v38, %v7837_v4  ;;  %v1710_v6 = vsub.f32 0.0, %v7837_v4 }
0x1bdf   :  { %1712 = vrot.lane.b32.xlu1 %v1709_v41, %s7306_s18  ;;  %v2808_v41 = vld [vmem:[%s8186_s16 + $0x8] sm:$0xff]  ;;  %s8213_s16 = sld [smem:[#allocation82_spill]] }
0x1be3   :  { %1716 = vrot.lane.b32.xlu1 %v1710_v6, %s7306_s18  ;;  %v6315_v6 = vpack.c.bf16 %v2808_v41, %v2807_v40 }
0x1c51   :  { %v1713_v63 = vpop.permute.xlu1 %1712 }
0x1c55   :  { %v1717_v0 = vpop.permute.xlu1 %1716 }
0x1c56   :  { %v1719_v2 = vsel %vm1708_vm11, %v1713_v63, %v1717_v0  ;;  %v2692_v63 = vld [vmem:[%s8189_s15] sm:$0xff]  ;;  %v2693_v0 = vld [vmem:[%s8189_s15 + $0x8] sm:$0xff] }
0x1c57   :  { %v1720_v5 = vmul.f32 %v6611_v1, %v1719_v2  ;;  %v6307_v2 = vpack.c.bf16 %v2693_v0, %v2692_v63  ;;  %v2923_v0 = vld [vmem:[%s8193_s26 + $0x10] sm:$0xff] }
0x1c59   :  { %v1721_v8 = vmul.f32 %v6613_v7, %v1720_v5 }
0x1c5b   :  { %1724 = vrot.lane.b32.xlu1 %v1721_v8, %s7309_s14  ;;  %v7848_v9 = vsel %vm596_vm3, %v1721_v8, 0.0  ;;  %s8205_s14 = sld [smem:[#allocation84_spill]] }
0x1c5c   :  { %5999 = vmatprep.mubr.msk.f32.mxu1 %vm1728_vm12, %v7848_v9  ;;  %6006 = vmatprep.mubr.msk.f32.mxu0 %vm1728_vm12, %v7848_v9 }
0x1ccd   :  { %v1725_v12 = vpop.permute.xlu1 %1724 }
0x1cce   :  { %v6285_v13 = vpack.c.bf16 %v1725_v12, %v1721_v8  ;;  %v7865_v16 = vsel %vm596_vm3, 0.0, %v1725_v12  ;;  %v2694_v12 = vld [vmem:[%s8189_s15 + $0x10] sm:$0xff] }
0x1cd0   :  { %6287 = vmatprep.subr.msk.bf16.mxu1 %vm6286_vm14, %v6285_v13 }
0x1cd1   :  { %6290 = vmatpush3.bf16.msk.msra.mxu1 %vm6286_vm14, %v6285_v13  ;;  %v2695_v13 = vld [vmem:[%s8189_s15 + $0x18] sm:$0xff]  ;;  %s5503_s15 = sshll.u32 %s7312_s20, 4  ;;  %s5504_s15 = int_to_ptr.vmem [resolvable:$true] %s5503_s15 }
0x1cd2   :  { %6296 = vmatprep.subr.bf16.mxu1 %v6295_v15  ;;  %p7177_p5 = scmp.lt.s32.totalorder %s5504_s15, %s5504_s15 }
0x1cd4   :  { %6000 = vmatmul.mubr.msk.f32.vlgmr.msra.gmra.mrb[8].mxu1 %vm1728_vm12, %v7865_v16 }
0x1cd5   :  { %6298 = vmatpush3.bf16.msra.mxu1 %v6295_v15  ;;  %6013 = vmatprep.mubr.msk.f32.mxu1 %vm1728_vm12, %v7848_v9 }
0x1cd6   :  { %6304 = vmatprep.subr.bf16.mxu1 %v6295_v15 }
0x1cd8   :  { %6014 = vmatmul.mubr.msk.f32.vlgmr.msra.gmra.mrb[10].mxu1 %vm1728_vm12, %v7865_v16 }
0x1cd9   :  { %6306 = vmatpush3.bf16.msra.mxu1 %v6295_v15 }
0x1cda   :  { %6035 = vmatprep.subr.msk.mxu1 %vm509_vm0, %v2225_v26 }
0x1da7   :  { %v6001_v17 = vpop.f32.mrb[8].mxu1 }
0x1da8   :  { %v7873_v18 = vmul.f32 2.0, %v6001_v17  ;;  %v1801_v19 = vpop.f32.mrb[9].mxu1 }
0x1da9   :  { %v7875_v20 = vmul.f32 2.0, %v1801_v19 }
0x1dab   :  { %v6015_v21 = vpop.f32.mrb[10].mxu1  ;;  %v6291_v22 = vpack.c.bf16 %v7873_v18, %v7875_v20 }
0x1dac   :  { %v1959_v23 = vpop.f32.mrb[11].mxu1 }
0x1dad   :  { %6292 = vmatprep.subr.bf16.mxu0 %v6291_v22 }
0x1dae   :  { %6294 = vmatpush3.bf16.msra.mxu0 %v6291_v22 }
0x1daf   :  { %6300 = vmatprep.subr.bf16.mxu0 %v6295_v15 }
0x1db1   :  { %6007 = vmatmul.mubr.msk.f32.vlgmr.msra.gmra.mrb[10].mxu0 %vm1728_vm12, %v7865_v16 }
0x1db2   :  { %6302 = vmatpush3.bf16.msra.mxu0 %v6295_v15  ;;  %6020 = vmatprep.mubr.msk.f32.mxu0 %vm1728_vm12, %v7875_v20  ;;  %v6311_v15 = vpack.c.bf16 %v2695_v13, %v2694_v12 }
0x1db3   :  { %6030 = vmatprep.subr.msk.mxu0 %vm509_vm0, %v2132_v24 }
0x1db5   :  { %6021 = vmatmul.mubr.msk.f32.vlgmr.msra.gmra.mrb[12].mxu0 %vm1728_vm12, %v7873_v18 }
0x1db6   :  { %6032 = vmatprep.mubr.msk.f32.mxu0 %vm502_vm1, %v1959_v23  ;;  %6031 = vmatpush3.msk.msra.mxu0 %vm509_vm0, %v2132_v24 }
0x1db7   :  { %6040 = vmatprep.subr.msk.mxu0 %vm509_vm0, %v2312_v25 }
0x1db9   :  { %6033 = vmatmul.mubr.msk.f32.vlgmr.msra.gmra.mrb[14].mxu0 %vm502_vm1, %v6015_v21 }
0x1dba   :  { %6041 = vmatpush3.msk.msra.mxu0 %vm509_vm0, %v2312_v25 }
0x1dbb   :  { %6050 = vmatprep.subr.msk.mxu0 %vm509_vm0, %v2480_v37 }
0x1e84   :  { %v6008_v27 = vpop.f32.mrb[10].mxu0 }
0x1e85   :  { %v1888_v28 = vmul.f32 2.0, %v6008_v27  ;;  %v1878_v29 = vpop.f32.mrb[11].mxu0 }
0x1e86   :  { %v1887_v30 = vmul.f32 2.0, %v1878_v29 }
0x1e87   :  { %v7899_v33 = vsub.f32 %v1888_v28, %v7865_v16 }
0x1e88   :  { %v7896_v31 = vsub.f32 %v1887_v30, %v7848_v9  ;;  %v6022_v32 = vpop.f32.mrb[12].mxu0 }
0x1e89   :  { %v2040_v34 = vpop.f32.mrb[13].mxu0 }
0x1e8a   :  { %6027 = vmatprep.mubr.msk.f32.mxu1 %vm1728_vm12, %v7896_v31  ;;  %6042 = vmatprep.mubr.msk.f32.mxu0 %vm502_vm1, %v2040_v34 }
0x1e8b   :  { %6028 = vmatmul.mubr.msk.f32.vlgmr.msra.gmra.mrb[12].mxu1 %vm1728_vm12, %v7899_v33  ;;  %6043 = vmatmul.mubr.msk.f32.vlgmr.msra.gmra.mrb[14].mxu0 %vm502_vm1, %v6022_v32 }
0x1e8c   :  { %6037 = vmatprep.mubr.msk.f32.mxu1 %vm502_vm1, %v1959_v23  ;;  %6036 = vmatpush3.msk.msra.mxu1 %vm509_vm0, %v2225_v26 }
0x1e8d   :  { %6045 = vmatprep.subr.msk.mxu1 %vm509_vm0, %v2399_v35  ;;  %6051 = vmatpush3.msk.msra.mxu0 %vm509_vm0, %v2480_v37  ;;  %v5662_v37 = vld [vmem:[%s8191_s30] ss:$0 sm:$0xff] }
0x1e8e   :  { %6308 = vmatprep.subr.bf16.mxu0 %v6307_v2 }
0x1e8f   :  { %6038 = vmatmul.mubr.msk.f32.vlgmr.msra.gmra.mrb[14].mxu1 %vm502_vm1, %v6015_v21 }
0x1e90   :  { %6047 = vmatprep.mubr.msk.f32.mxu1 %vm502_vm1, %v2040_v34  ;;  %6046 = vmatpush3.msk.msra.mxu1 %vm509_vm0, %v2399_v35  ;;  %v3035_v34 = vld [vmem:[%s8190_s23] sm:$0xff]  ;;  %v3036_v35 = vld [vmem:[%s8190_s23 + $0x8] sm:$0xff] }
0x1e91   :  { %6055 = vmatprep.subr.msk.mxu1 %vm509_vm0, %v2567_v36 }
0x1e97   :  { %6048 = vmatmul.mubr.msk.f32.vlgmr.msra.gmra.mrb[14].mxu1 %vm502_vm1, %v6022_v32 }
0x1e98   :  { %6056 = vmatpush3.msk.msra.mxu1 %vm509_vm0, %v2567_v36  ;;  %v6331_v36 = vpack.c.bf16 %v3036_v35, %v3035_v34 }
0x1e99   :  { %6316 = vmatprep.subr.bf16.mxu1 %v6315_v6 }
0x1f5e   :  { %v6029_v38 = vpop.f32.mrb[12].mxu1 }
0x1f5f   :  { %v2121_v39 = vpop.f32.mrb[13].mxu1 }
0x1f60   :  { %6052 = vmatprep.mubr.msk.f32.mxu0 %vm502_vm1, %v2121_v39  ;;  %6057 = vmatprep.mubr.msk.f32.mxu1 %vm502_vm1, %v2121_v39 }
0x1f61   :  { %6053 = vmatmul.mubr.msk.f32.vlgmr.msra.gmra.mrb[14].mxu0 %vm502_vm1, %v6029_v38  ;;  %6058 = vmatmul.mubr.msk.f32.vlgmr.msra.gmra.mrb[14].mxu1 %vm502_vm1, %v6029_v38 }
0x1f62   :  { %6318 = vmatpush3.bf16.msra.mxu1 %v6315_v6  ;;  %6310 = vmatpush3.bf16.msra.mxu0 %v6307_v2 }
0x1f63   :  { %6320 = vmatprep.subr.bf16.mxu1 %v6319_v58  ;;  %6312 = vmatprep.subr.bf16.mxu0 %v6311_v15 }
0x1f66   :  { %6322 = vmatpush3.bf16.msra.mxu1 %v6319_v58  ;;  %6314 = vmatpush3.bf16.msra.mxu0 %v6311_v15 }
0x1f67   :  { %6332 = vmatprep.subr.bf16.mxu1 %v6331_v36 }
0x2034   :  { %v6054_v44 = vpop.f32.mrb[14].mxu0  ;;  %v6059_v45 = vpop.f32.mrb[14].mxu1 }
0x2035   :  { %v6421_v46 = vadd.f32 %v6059_v45, %v5640_v42  ;;  %v2556_v47 = vpop.f32.mrb[15].mxu0  ;;  %v2637_v48 = vpop.f32.mrb[15].mxu1  ;;  %v6419_v49 = vadd.f32 %v6054_v44, %v5636_v43 }
0x2036   :  { %v6420_v50 = vadd.f32 %v5636_v43, %v2556_v47  ;;  %v6422_v51 = vadd.f32 %v5640_v42, %v2637_v48  ;;  %v5657_v42 = vld [vmem:[%s8192_s22] ss:$0 sm:$0xff] }
0x2037   :  { %v5656_v52 = vmul.f32 -1.442695, %v6421_v46  ;;  %v5654_v54 = vmul.f32 -1.442695, %v6419_v49 }
0x2038   :  { %v5653_v10 = vmul.f32 -1.442695, %v6420_v50  ;;  %v5655_v53 = vmul.f32 -1.442695, %v6422_v51 }
0x2039   :  { %6614 = vpow2.f32 %v5656_v52  ;;  %v3037_v52 = vld [vmem:[%s8190_s23 + $0x10] sm:$0xff] }
0x203a   :  { %6616 = vpow2.f32 %v5653_v10  ;;  %v3038_v10 = vld [vmem:[%s8190_s23 + $0x18] sm:$0xff] }
0x203b   :  { %6618 = vpow2.f32 %v5655_v53 }
0x203c   :  { %6620 = vpow2.f32 %v5654_v54  ;;  %v6335_v54 = vpack.c.bf16 %v3038_v10, %v3037_v52  ;;  %v3150_v52 = vld [vmem:[%s8197_s4 + $0x8] sm:$0xff] }
0x2043   :  { %v6615_v57 = vpop.eup %6614 }
0x2044   :  { %v6617_v62 = vpop.eup %6616  ;;  %v2677_v14 = vadd.f32 1.0, %v6615_v57  ;;  %v2922_v57 = vld [vmem:[%s8193_s26 + $0x8] sm:$0xff] }
0x2045   :  { %v6619_v1 = vpop.eup %6618  ;;  %v2654_v5 = vadd.f32 1.0, %v6617_v62  ;;  %v6323_v62 = vpack.c.bf16 %v2922_v57, %v2921_v56 }
0x2046   :  { %6622 = vrcp.f32 %v2677_v14  ;;  %v2676_v7 = vadd.f32 1.0, %v6619_v1  ;;  %v6621_v8 = vpop.eup %6620  ;;  %v2924_v1 = vld [vmem:[%s8193_s26 + $0x18] sm:$0xff] }
0x2047   :  { %v2655_v17 = vadd.f32 1.0, %v6621_v8  ;;  %6324 = vmatprep.subr.bf16.mxu0 %v6323_v62  ;;  %v6327_v2 = vpack.c.bf16 %v2924_v1, %v2923_v0 }
0x2048   :  { %6624 = vrcp.f32 %v2676_v7 }
0x2049   :  { %6626 = vrcp.f32 %v2654_v5 }
0x204a   :  { %6628 = vrcp.f32 %v2655_v17 }
0x2050   :  { %v6623_v19 = vpop.eup %6622 }
0x2051   :  { %2686 = vrot.lane.b32.xlu1 %v6623_v19, %s7310_s3 }
0x2052   :  { %v6625_v21 = vpop.eup %6624 }
0x2053   :  { %2684 = vrot.lane.b32.xlu0 %v6625_v21, %s7310_s3  ;;  %v6627_v22 = vpop.eup %6626 }
0x2054   :  { %v6629_v23 = vpop.eup %6628 }
0x2055   :  { %2662 = vrot.lane.b32.xlu1 %v6627_v22, %s7310_s3 }
0x2059   :  { %2664 = vrot.lane.b32.xlu1 %v6629_v23, %s7310_s3 }
0x20c3   :  { %v2687_v24 = vpop.permute.xlu1 %2686 }
0x20c4   :  { %v2691_v27 = vmul.f32 %v6421_v46, %v2687_v24 }
0x20c5   :  { %v2685_v25 = vpop.permute.xlu0 %2684 }
0x20c6   :  { %v2690_v26 = vmul.f32 %v6422_v51, %v2685_v25 }
0x20c7   :  { %v2663_v28 = vpop.permute.xlu1 %2662 }
0x20c8   :  { %6079 = vmatprep.mubr.msk.f32.mxu1 %vm2703_vm15, %v2690_v26  ;;  %v2668_v29 = vmul.f32 %v6420_v50, %v2663_v28  ;;  %v3153_v26 = vld [vmem:[%s8194_s13] sm:$0xff] }
0x20c9   :  { %6080 = vmatmul.mubr.msk.f32.vlgmr.msra.gmra.mrb[16].mxu1 %vm2703_vm15, %v2691_v27  ;;  %v3154_v27 = vld [vmem:[%s8194_s13 + $0x8] sm:$0xff] }
0x20ca   :  { %6068 = vmatprep.mubr.msk.f32.mxu0 %vm2703_vm15, %v2668_v29  ;;  %6334 = vmatpush3.bf16.msra.mxu1 %v6331_v36  ;;  %v6339_v28 = vpack.c.bf16 %v3154_v27, %v3153_v26  ;;  %v5672_v29 = vld [vmem:[%s8195_s1] ss:$0 sm:$0xff] }
0x20cb   :  { %v2665_v30 = vpop.permute.xlu1 %2664  ;;  %6336 = vmatprep.subr.bf16.mxu1 %v6335_v54 }
0x20cc   :  { %v2669_v32 = vmul.f32 %v6419_v49, %v2665_v30 }
0x20ce   :  { %6069 = vmatmul.mubr.msk.f32.vlgmr.msra.gmra.mrb[16].mxu0 %vm2703_vm15, %v2669_v32  ;;  %6338 = vmatpush3.bf16.msra.mxu1 %v6335_v54 }
0x20cf   :  { %6326 = vmatpush3.bf16.msra.mxu0 %v6323_v62 }
0x20d0   :  { %6328 = vmatprep.subr.bf16.mxu0 %v6327_v2 }
0x20d3   :  { %6330 = vmatpush3.bf16.msra.mxu0 %v6327_v2  ;;  %v3151_v2 = vld [vmem:[%s8197_s4 + $0x10] sm:$0xff] }
0x20d4   :  { %6340 = vmatprep.subr.bf16.mxu0 %v6339_v28 }
0x219c   :  { %v6081_v38 = vpop.f32.mrb[16].mxu1 }
0x219d   :  { %v2896_v39 = vadd.f32 %v6081_v38, %v5662_v37  ;;  %v2890_v40 = vpop.f32.mrb[17].mxu1  ;;  %v5667_v38 = vld [vmem:[%s8196_s17] ss:$0 sm:$0xff] }
0x219e   :  { %v2891_v41 = vadd.f32 %v5662_v37, %v2890_v40 }
0x219f   :  { %v5666_v6 = vmul.f32 -1.442695, %v2896_v39 }
0x21a0   :  { %v5665_v43 = vmul.f32 -1.442695, %v2891_v41 }
0x21a1   :  { %6630 = vpow2.f32 %v5666_v6  ;;  %v6070_v44 = vpop.f32.mrb[16].mxu0 }
0x21a2   :  { %6632 = vpow2.f32 %v5665_v43  ;;  %v2782_v45 = vadd.f32 %v6070_v44, %v5657_v42  ;;  %v2776_v46 = vpop.f32.mrb[17].mxu0 }
0x21a3   :  { %v2777_v47 = vadd.f32 %v5657_v42, %v2776_v46  ;;  %v3155_v46 = vld [vmem:[%s8194_s13 + $0x10] sm:$0xff] }
0x21a4   :  { %v5661_v49 = vmul.f32 -1.442695, %v2782_v45 }
0x21a5   :  { %v5660_v48 = vmul.f32 -1.442695, %v2777_v47 }
0x21a7   :  { %6634 = vpow2.f32 %v5660_v48 }
0x21a8   :  { %6636 = vpow2.f32 %v5661_v49 }
0x21ab   :  { %v6631_v50 = vpop.eup %6630 }
0x21ac   :  { %v6633_v51 = vpop.eup %6632  ;;  %v2906_v55 = vadd.f32 1.0, %v6631_v50 }
0x21ad   :  { %v2905_v53 = vadd.f32 1.0, %v6633_v51  ;;  %v3149_v51 = vld [vmem:[%s8197_s4] sm:$0xff] }
0x21ae   :  { %v6347_v10 = vpack.c.bf16 %v3150_v52, %v3149_v51 }
0x21af   :  { %6638 = vrcp.f32 %v2905_v53 }
0x21b0   :  { %6640 = vrcp.f32 %v2906_v55 }
0x21b1   :  { %v6635_v58 = vpop.eup %6634 }
0x21b2   :  { %v2791_v14 = vadd.f32 1.0, %v6635_v58  ;;  %v6637_v63 = vpop.eup %6636  ;;  %v3319_v58 = vld [vmem:[%s8198_s6] sm:$0xff] }
0x21b3   :  { %v2792_v5 = vadd.f32 1.0, %v6637_v63  ;;  %6126 = vmatprep.subr.mxu1 %v3319_v58 }
0x21b4   :  { %6642 = vrcp.f32 %v2791_v14 }
0x21b5   :  { %6644 = vrcp.f32 %v2792_v5  ;;  %v3152_v5 = vld [vmem:[%s8197_s4 + $0x18] sm:$0xff] }
0x21b9   :  { %v6639_v7 = vpop.eup %6638 }
0x21ba   :  { %2913 = vrot.lane.b32.xlu1 %v6639_v7, %s7310_s3  ;;  %v6641_v8 = vpop.eup %6640 }
0x21be   :  { %2915 = vrot.lane.b32.xlu1 %v6641_v8, %s7310_s3  ;;  %v6643_v12 = vpop.eup %6642 }
0x21bf   :  { %v6645_v13 = vpop.eup %6644 }
0x21c2   :  { %2799 = vrot.lane.b32.xlu1 %v6643_v12, %s7310_s3  ;;  %v6351_v12 = vpack.c.bf16 %v3152_v5, %v3151_v2  ;;  %v4601_v2 = vld [vmem:[%s8206_s0] sm:$0xff]  ;;  %v4602_v5 = vld [vmem:[%s8206_s0 + $0x8] sm:$0xff] }
0x21c6   :  { %2801 = vrot.lane.b32.xlu1 %v6645_v13, %s7310_s3 }
0x222c   :  { %v2914_v15 = vpop.permute.xlu1 %2913 }
0x222d   :  { %v2919_v17 = vmul.f32 %v2914_v15, %v2891_v41 }
0x222f   :  { %6101 = vmatprep.mubr.msk.f32.mxu1 %vm2703_vm15, %v2919_v17 }
0x2230   :  { %v2916_v19 = vpop.permute.xlu1 %2915 }
0x2231   :  { %v2920_v21 = vmul.f32 %v2916_v19, %v2896_v39 }
0x2233   :  { %6102 = vmatmul.mubr.msk.f32.vlgmr.msra.gmra.mrb[18].mxu1 %vm2703_vm15, %v2920_v21 }
0x2234   :  { %v2800_v22 = vpop.permute.xlu1 %2799  ;;  %6127 = vmatpush3.msra.mxu1 %v3319_v58 }
0x2235   :  { %v2805_v23 = vmul.f32 %v2800_v22, %v2777_v47  ;;  %v3156_v47 = vld [vmem:[%s8194_s13 + $0x18] sm:$0xff] }
0x2236   :  { %v6343_v49 = vpack.c.bf16 %v3156_v47, %v3155_v46 }
0x2237   :  { %6090 = vmatprep.mubr.msk.f32.mxu0 %vm2703_vm15, %v2805_v23  ;;  %v3420_v23 = vld [vmem:[%s8199_s19] sm:$0xff] }
0x2238   :  { %v2802_v24 = vpop.permute.xlu1 %2801  ;;  %6131 = vmatprep.subr.mxu1 %v3420_v23 }
0x2239   :  { %v2806_v25 = vmul.f32 %v2802_v24, %v2782_v45  ;;  %v3511_v24 = vld [vmem:[%s8200_s28] sm:$0xf] }
0x223b   :  { %6091 = vmatmul.mubr.msk.f32.vlgmr.msra.gmra.mrb[18].mxu0 %vm2703_vm15, %v2806_v25  ;;  %v5681_v25 = vld [vmem:[%s8201_s2] ss:$0 sm:$0xff] }
0x223c   :  { %6342 = vmatpush3.bf16.msra.mxu0 %v6339_v28 }
0x223d   :  { %6344 = vmatprep.subr.bf16.mxu0 %v6343_v49 }
0x2240   :  { %6346 = vmatpush3.bf16.msra.mxu0 %v6343_v49 }
0x2241   :  { %6348 = vmatprep.subr.bf16.mxu0 %v6347_v10 }
0x2306   :  { %v6103_v30 = vpop.f32.mrb[18].mxu1 }
0x2307   :  { %v3124_v32 = vadd.f32 %v6103_v30, %v5672_v29  ;;  %v3118_v34 = vpop.f32.mrb[19].mxu1 }
0x2308   :  { %v3119_v35 = vadd.f32 %v5672_v29, %v3118_v34 }
0x2309   :  { %v5676_v36 = vmul.f32 -1.442695, %v3124_v32 }
0x230a   :  { %v5675_v37 = vmul.f32 -1.442695, %v3119_v35 }
0x230b   :  { %6646 = vpow2.f32 %v5676_v36 }
0x230c   :  { %6648 = vpow2.f32 %v5675_v37 }
0x230e   :  { %v6092_v39 = vpop.f32.mrb[18].mxu0 }
0x230f   :  { %v3010_v40 = vadd.f32 %v6092_v39, %v5667_v38  ;;  %v3004_v41 = vpop.f32.mrb[19].mxu0  ;;  %v3603_v39 = vld [vmem:[%s8202_s27] sm:$0xff] }
0x2310   :  { %v3005_v6 = vadd.f32 %v5667_v38, %v3004_v41 }
0x2311   :  { %v5671_v42 = vmul.f32 -1.442695, %v3010_v40 }
0x2312   :  { %v5670_v43 = vmul.f32 -1.442695, %v3005_v6 }
0x2313   :  { %6650 = vpow2.f32 %v5671_v42  ;;  %v5693_v42 = vld [vmem:[%s8204_s29] ss:$0 sm:$0xff] }
0x2314   :  { %6652 = vpow2.f32 %v5670_v43 }
0x2315   :  { %v6647_v44 = vpop.eup %6646 }
0x2316   :  { %v6649_v45 = vpop.eup %6648  ;;  %v3134_v50 = vadd.f32 1.0, %v6647_v44 }
0x2317   :  { %v3133_v48 = vadd.f32 1.0, %v6649_v45 }
0x2319   :  { %6654 = vrcp.f32 %v3133_v48 }
0x231a   :  { %6656 = vrcp.f32 %v3134_v50 }
0x231d   :  { %v6651_v53 = vpop.eup %6650 }
0x231e   :  { %v6653_v54 = vpop.eup %6652  ;;  %v3020_v55 = vadd.f32 1.0, %v6651_v53 }
0x231f   :  { %v3019_v56 = vadd.f32 1.0, %v6653_v54 }
0x2320   :  { %6658 = vrcp.f32 %v3020_v55 }
0x2321   :  { %6660 = vrcp.f32 %v3019_v56  ;;  %v4020_v56 = vld [vmem:[%s8205_s14] sm:$0xf] }
0x2323   :  { %v6655_v57 = vpop.eup %6654 }
0x2324   :  { %3141 = vrot.lane.b32.xlu1 %v6655_v57, %s7310_s3  ;;  %v6657_v62 = vpop.eup %6656  ;;  %v3927_v57 = vld [vmem:[#allocation16] sm:$0xf] }
0x2328   :  { %3143 = vrot.lane.b32.xlu1 %v6657_v62, %s7310_s3 }
0x232a   :  { %v6659_v14 = vpop.eup %6658 }
0x232b   :  { %v6661_v63 = vpop.eup %6660  ;;  %3029 = vrot.lane.b32.xlu0 %v6659_v14, %s7310_s3 }
0x232c   :  { %3027 = vrot.lane.b32.xlu1 %v6661_v63, %s7310_s3  ;;  %v4275_v63 = vld [vmem:[#allocation19] sm:$0xf] }
0x2396   :  { %v3142_v0 = vpop.permute.xlu1 %3141 }
0x2397   :  { %v3147_v1 = vmul.f32 %v3142_v0, %v3119_v35 }
0x2399   :  { %6112 = vmatprep.mubr.msk.f32.mxu0 %vm2703_vm15, %v3147_v1 }
0x239a   :  { %v3144_v7 = vpop.permute.xlu1 %3143 }
0x239b   :  { %v3148_v8 = vmul.f32 %v3144_v7, %v3124_v32  ;;  %v6375_v7 = vpack.c.bf16 %v4602_v5, %v4601_v2 }
0x239d   :  { %6113 = vmatmul.mubr.msk.f32.vlgmr.msra.gmra.mrb[20].mxu0 %vm2703_vm15, %v3148_v8  ;;  %v3030_v17 = vpop.permute.xlu0 %3029  ;;  %v5707_v8 = vld [vmem:[#allocation15] ss:$0 sm:$0xff] }
0x239e   :  { %6350 = vmatpush3.bf16.msra.mxu0 %v6347_v10  ;;  %v3028_v13 = vpop.permute.xlu1 %3027  ;;  %v3034_v19 = vmul.f32 %v3030_v17, %v3010_v40 }
0x239f   :  { %v3033_v15 = vmul.f32 %v3028_v13, %v3005_v6  ;;  %6352 = vmatprep.subr.bf16.mxu0 %v6351_v12  ;;  %v5689_v6 = vld [vmem:[%s8203_s21] ss:$0 sm:$0xff] }
0x23a1   :  { %6123 = vmatprep.mubr.msk.f32.mxu0 %vm2703_vm15, %v3033_v15 }
0x23a2   :  { %6354 = vmatpush3.bf16.msra.mxu0 %v6351_v12  ;;  %v5711_v12 = vld [vmem:[#allocation10] ss:$0 sm:$0xff] }
0x23a5   :  { %6124 = vmatmul.mubr.msk.f32.vlgmr.msra.gmra.mrb[20].mxu0 %vm2703_vm15, %v3034_v19 }
0x23a6   :  { %6150 = vmatprep.mubr.msk.f32.mxu0 %vm1728_vm12, %v7848_v9 }
0x2478   :  { %v6125_v21 = vpop.f32.mrb[20].mxu0 }
0x2479   :  { %v3310_v22 = vpop.f32.mrb[21].mxu0 }
0x247a   :  { %6128 = vmatprep.mubr.msk.f32.mxu1 %vm596_vm3, %v3310_v22 }
0x247b   :  { %6129 = vmatmul.mubr.msk.f32.vlgmr.msra.gmra.mrb[20].mxu1 %vm596_vm3, %v6125_v21 }
0x247c   :  { %6132 = vmatpush3.msra.mxu1 %v3420_v23 }
0x247d   :  { %6136 = vmatprep.subr.msk.mxu1 %vm509_vm0, %v3511_v24 }
0x254e   :  { %v6130_v26 = vpop.f32.mrb[20].mxu1 }
0x254f   :  { %v3405_v27 = vadd.f32 %v6130_v26, %v5681_v25  ;;  %v3399_v28 = vpop.f32.mrb[21].mxu1 }
0x2550   :  { %v3400_v29 = vadd.f32 %v5681_v25, %v3399_v28 }
0x2551   :  { %v5685_v30 = vmul.f32 -1.442695, %v3405_v27 }
0x2552   :  { %v5684_v9 = vmul.f32 -1.442695, %v3400_v29 }
0x2553   :  { %6662 = vpow2.f32 %v5685_v30  ;;  %v4487_v30 = vld [vmem:[%s8207_s10] sm:$0xff] }
0x2554   :  { %6664 = vpow2.f32 %v5684_v9  ;;  %v4488_v9 = vld [vmem:[%s8207_s10 + $0x8] sm:$0xff] }
0x255d   :  { %v6663_v32 = vpop.eup %6662 }
0x255e   :  { %v6665_v34 = vpop.eup %6664  ;;  %v3415_v35 = vadd.f32 1.0, %v6663_v32  ;;  %v4603_v32 = vld [vmem:[%s8206_s0 + $0x10] sm:$0xff] }
0x255f   :  { %v3414_v36 = vadd.f32 1.0, %v6665_v34 }
0x2561   :  { %6666 = vrcp.f32 %v3414_v36  ;;  %v4604_v36 = vld [vmem:[%s8206_s0 + $0x18] sm:$0xff] }
0x2562   :  { %6668 = vrcp.f32 %v3415_v35  ;;  %v6367_v35 = vpack.c.bf16 %v4488_v9, %v4487_v30 }
0x256b   :  { %v6667_v37 = vpop.eup %6666 }
0x256c   :  { %v6669_v38 = vpop.eup %6668  ;;  %6133 = vmatprep.mubr.msk.f32.mxu1 %vm596_vm3, %v6667_v37 }
0x256d   :  { %6134 = vmatmul.mubr.msk.f32.vlgmr.msra.gmra.mrb[22].mxu1 %vm596_vm3, %v6669_v38 }
0x256e   :  { %6137 = vmatpush3.msk.msra.mxu1 %vm509_vm0, %v3511_v24  ;;  %6138 = vmatprep.mubr.msk.f32.mxu1 %vm502_vm1, %v7856_v59 }
0x256f   :  { %6141 = vmatprep.subr.mxu1 %v3603_v39 }
0x2571   :  { %6139 = vmatmul.mubr.msk.f32.vlgmr.msra.gmra.mrb[24].mxu1 %vm502_vm1, %v7859_v11 }
0x2572   :  { %6142 = vmatpush3.msra.mxu1 %v3603_v39  ;;  %6143 = vmatprep.mubr.msk.f32.mxu1 %vm596_vm3, %v3310_v22  ;;  %v6379_v39 = vpack.c.bf16 %v4604_v36, %v4603_v32 }
0x2575   :  { %6144 = vmatmul.mubr.msk.f32.vlgmr.msra.gmra.mrb[26].mxu1 %vm596_vm3, %v6125_v21 }
0x2576   :  { %6157 = vmatprep.mubr.msk.f32.mxu1 %vm1728_vm12, %v7875_v20 }
0x2644   :  { %v6140_v40 = vpop.f32.mrb[24].mxu1 }
0x2645   :  { %v3594_v41 = vpop.f32.mrb[25].mxu1  ;;  %v3600_v44 = vadd.f32 %v6140_v40, %v5689_v6 }
0x2646   :  { %v3595_v46 = vadd.f32 %v5689_v6, %v3594_v41 }
0x2648   :  { %v6145_v43 = vpop.f32.mrb[26].mxu1 }
0x2649   :  { %v3683_v45 = vadd.f32 %v6145_v43, %v5693_v42  ;;  %v3677_v59 = vpop.f32.mrb[27].mxu1  ;;  %v4490_v43 = vld [vmem:[%s8207_s10 + $0x18] sm:$0xff] }
0x264a   :  { %v3678_v47 = vadd.f32 %v5693_v42, %v3677_v59  ;;  %v4489_v42 = vld [vmem:[%s8207_s10 + $0x10] sm:$0xff] }
0x264b   :  { %v3687_v48 = vsub.f32 %v3683_v45, %v3600_v44  ;;  %v6371_v44 = vpack.c.bf16 %v4490_v43, %v4489_v42 }
0x264c   :  { %v3686_v11 = vsub.f32 %v3678_v47, %v3595_v46 }
0x264d   :  { %v5697_v49 = vmul.f32 -1.442695, %v3687_v48 }
0x264e   :  { %v5696_v50 = vmul.f32 -1.442695, %v3686_v11 }
0x264f   :  { %6670 = vpow2.f32 %v5697_v49 }
0x2650   :  { %6672 = vpow2.f32 %v5696_v50 }
0x2659   :  { %v6671_v51 = vpop.eup %6670 }
0x265a   :  { %v6673_v52 = vpop.eup %6672  ;;  %v3695_v20 = vadd.f32 1.0, %v6671_v51 }
0x265b   :  { %v3694_v10 = vadd.f32 1.0, %v6673_v52 }
0x265c   :  { %6674 = vrcp.f32 %v3695_v20 }
0x265d   :  { %6676 = vrcp.f32 %v3694_v10 }
0x2666   :  { %v6675_v53 = vpop.eup %6674 }
0x2667   :  { %v6677_v54 = vpop.eup %6676 }
0x2668   :  { %v6355_v55 = vpack.c.bf16 %v6675_v53, %v6677_v54  ;;  %v4829_v54 = vld [vmem:[%s8208_s5] sm:$0xff] }
0x266a   :  { %6356 = vmatprep.subr.bf16.mxu0 %v6355_v55  ;;  %6360 = vmatprep.subr.bf16.mxu1 %v6355_v55 }
0x266b   :  { %6358 = vmatpush3.bf16.msra.mxu0 %v6355_v55  ;;  %6362 = vmatpush3.bf16.msra.mxu1 %v6355_v55 }
0x266c   :  { %6364 = vmatprep.subr.bf16.mxu0 %v6355_v55  ;;  %6167 = vmatprep.subr.msk.mxu1 %vm509_vm0, %v3927_v57 }
0x266e   :  { %6151 = vmatmul.mubr.msk.f32.vlgmr.msra.gmra.mrb[22].mxu0 %vm1728_vm12, %v7865_v16  ;;  %6158 = vmatmul.mubr.msk.f32.vlgmr.msra.gmra.mrb[28].mxu1 %vm1728_vm12, %v7873_v18  ;;  %v4194_v16 = vld [vmem:[#allocation12] sm:$0xf]  ;;  %v4107_v18 = vld [vmem:[#allocation18] sm:$0xf] }
0x266f   :  { %6366 = vmatpush3.bf16.msra.mxu0 %v6355_v55  ;;  %6164 = vmatprep.mubr.msk.f32.mxu0 %vm1728_vm12, %v7896_v31  ;;  %v4830_v55 = vld [vmem:[%s8208_s5 + $0x8] sm:$0xff] }
0x2670   :  { %6172 = vmatprep.subr.msk.mxu0 %vm509_vm0, %v4020_v56  ;;  %6168 = vmatpush3.msk.msra.mxu1 %vm509_vm0, %v3927_v57  ;;  %v5733_v57 = vld [vmem:[#allocation21] ss:$0 sm:$0xff] }
0x2671   :  { %6177 = vmatprep.subr.msk.mxu1 %vm509_vm0, %v4107_v18 }
0x2672   :  { %6165 = vmatmul.mubr.msk.f32.vlgmr.msra.gmra.mrb[24].mxu0 %vm1728_vm12, %v7899_v33  ;;  %v4362_v33 = vld [vmem:[#allocation13] sm:$0xf] }
0x2673   :  { %6173 = vmatpush3.msk.msra.mxu0 %vm509_vm0, %v4020_v56  ;;  %v6391_v56 = vpack.c.bf16 %v4830_v55, %v4829_v54 }
0x2674   :  { %6182 = vmatprep.subr.msk.mxu0 %vm509_vm0, %v4194_v16 }
0x2741   :  { %v6152_v58 = vpop.f32.mrb[22].mxu0  ;;  %v6159_v31 = vpop.f32.mrb[28].mxu1 }
0x2742   :  { %v3766_v62 = vpop.f32.mrb[23].mxu0  ;;  %v3841_v14 = vpop.f32.mrb[29].mxu1 }
0x2743   :  { %6169 = vmatprep.mubr.msk.f32.mxu1 %vm502_vm1, %v3766_v62  ;;  %6174 = vmatprep.mubr.msk.f32.mxu0 %vm502_vm1, %v3766_v62  ;;  %v5728_v62 = vld [vmem:[#allocation24] ss:$0 sm:$0xff] }
0x2744   :  { %6170 = vmatmul.mubr.msk.f32.vlgmr.msra.gmra.mrb[30].mxu1 %vm502_vm1, %v6152_v58  ;;  %6175 = vmatmul.mubr.msk.f32.vlgmr.msra.gmra.mrb[26].mxu0 %vm502_vm1, %v6152_v58 }
0x2745   :  { %v6166_v0 = vpop.f32.mrb[24].mxu0  ;;  %6179 = vmatprep.mubr.msk.f32.mxu1 %vm502_vm1, %v3841_v14  ;;  %6183 = vmatpush3.msk.msra.mxu0 %vm509_vm0, %v4194_v16 }
0x2746   :  { %6184 = vmatprep.mubr.msk.f32.mxu0 %vm502_vm1, %v3841_v14  ;;  %v3916_v1 = vpop.f32.mrb[25].mxu0  ;;  %6178 = vmatpush3.msk.msra.mxu1 %vm509_vm0, %v4107_v18 }
0x2747   :  { %6192 = vmatprep.subr.msk.mxu0 %vm509_vm0, %v4362_v33  ;;  %6187 = vmatprep.subr.msk.mxu1 %vm509_vm0, %v4275_v63 }
0x274c   :  { %6180 = vmatmul.mubr.msk.f32.vlgmr.msra.gmra.mrb[30].mxu1 %vm502_vm1, %v6159_v31  ;;  %6185 = vmatmul.mubr.msk.f32.vlgmr.msra.gmra.mrb[26].mxu0 %vm502_vm1, %v6159_v31 }
0x274d   :  { %6189 = vmatprep.mubr.msk.f32.mxu1 %vm502_vm1, %v3916_v1  ;;  %6193 = vmatpush3.msk.msra.mxu0 %vm509_vm0, %v4362_v33 }
0x274e   :  { %6194 = vmatprep.mubr.msk.f32.mxu0 %vm502_vm1, %v3916_v1  ;;  %6188 = vmatpush3.msk.msra.mxu1 %vm509_vm0, %v4275_v63 }
0x274f   :  { %6376 = vmatprep.subr.bf16.mxu0 %v6375_v7  ;;  %6368 = vmatprep.subr.bf16.mxu1 %v6367_v35 }
0x2754   :  { %6190 = vmatmul.mubr.msk.f32.vlgmr.msra.gmra.mrb[30].mxu1 %vm502_vm1, %v6166_v0  ;;  %6195 = vmatmul.mubr.msk.f32.vlgmr.msra.gmra.mrb[26].mxu0 %vm502_vm1, %v6166_v0 }
0x2755   :  { %6378 = vmatpush3.bf16.msra.mxu0 %v6375_v7  ;;  %6370 = vmatpush3.bf16.msra.mxu1 %v6367_v35 }
0x2756   :  { %6380 = vmatprep.subr.bf16.mxu0 %v6379_v39  ;;  %6372 = vmatprep.subr.bf16.mxu1 %v6371_v44 }
0x2759   :  { %6382 = vmatpush3.bf16.msra.mxu0 %v6379_v39  ;;  %6374 = vmatpush3.bf16.msra.mxu1 %v6371_v44  ;;  %v4947_v44 = vld [vmem:[%s8210_s24] sm:$0xff] }
0x275a   :  { %6392 = vmatprep.subr.bf16.mxu0 %v6391_v56 }
0x2827   :  { %v6191_v13 = vpop.f32.mrb[30].mxu1  ;;  %v6196_v15 = vpop.f32.mrb[26].mxu0 }
0x2828   :  { %v6427_v17 = vadd.f32 %v6191_v13, %v5707_v8  ;;  %v6429_v19 = vadd.f32 %v6196_v15, %v5711_v12  ;;  %v4351_v21 = vpop.f32.mrb[31].mxu1  ;;  %v4432_v22 = vpop.f32.mrb[27].mxu0  ;;  %v4831_v13 = vld [vmem:[%s8208_s5 + $0x10] sm:$0xff] }
0x2829   :  { %v6428_v23 = vadd.f32 %v5707_v8, %v4351_v21  ;;  %v6430_v24 = vadd.f32 %v5711_v12, %v4432_v22  ;;  %v4715_v8 = vld [vmem:[%s8209_s11] sm:$0xff]  ;;  %v4716_v12 = vld [vmem:[%s8209_s11 + $0x8] sm:$0xff] }
0x282a   :  { %v5725_v25 = vmul.f32 -1.442695, %v6427_v17  ;;  %v5727_v26 = vmul.f32 -1.442695, %v6429_v19  ;;  %v6383_v15 = vpack.c.bf16 %v4716_v12, %v4715_v8  ;;  %v5113_v12 = vld [vmem:[%s8212_s9] sm:$0xff] }
0x282b   :  { %v5724_v27 = vmul.f32 -1.442695, %v6428_v23  ;;  %v5726_v28 = vmul.f32 -1.442695, %v6430_v24 }
0x282c   :  { %6678 = vpow2.f32 %v5725_v25  ;;  %6384 = vmatprep.subr.bf16.mxu1 %v6383_v15  ;;  %v4717_v25 = vld [vmem:[%s8209_s11 + $0x10] sm:$0xff] }
0x282d   :  { %6680 = vpow2.f32 %v5727_v26  ;;  %v4718_v26 = vld [vmem:[%s8209_s11 + $0x18] sm:$0xff] }
0x282e   :  { %6682 = vpow2.f32 %v5724_v27  ;;  %v6387_v27 = vpack.c.bf16 %v4718_v26, %v4717_v25 }
0x282f   :  { %6684 = vpow2.f32 %v5726_v28 }
0x2836   :  { %v6679_v29 = vpop.eup %6678 }
0x2837   :  { %v6681_v34 = vpop.eup %6680  ;;  %v4450_v41 = vadd.f32 1.0, %v6679_v29 }
0x2838   :  { %v6683_v37 = vpop.eup %6682  ;;  %v4472_v38 = vadd.f32 1.0, %v6681_v34 }
0x2839   :  { %v6685_v40 = vpop.eup %6684  ;;  %v4449_v45 = vadd.f32 1.0, %v6683_v37 }
0x283a   :  { %6686 = vrcp.f32 %v4472_v38  ;;  %v4471_v6 = vadd.f32 1.0, %v6685_v40 }
0x283c   :  { %6688 = vrcp.f32 %v4471_v6 }
0x283d   :  { %6690 = vrcp.f32 %v4450_v41 }
0x283e   :  { %6692 = vrcp.f32 %v4449_v45  ;;  %v4948_v45 = vld [vmem:[%s8210_s24 + $0x8] sm:$0xff] }
0x2844   :  { %v6687_v59 = vpop.eup %6686 }
0x2845   :  { %4481 = vrot.lane.b32.xlu0 %v6687_v59, %s7310_s3  ;;  %v6399_v59 = vpack.c.bf16 %v4948_v45, %v4947_v44 }
0x2846   :  { %v6689_v46 = vpop.eup %6688 }
0x2847   :  { %4479 = vrot.lane.b32.xlu1 %v6689_v46, %s7310_s3  ;;  %v6691_v47 = vpop.eup %6690  ;;  %v5743_v46 = vld [vmem:[#allocation22] ss:$0 sm:$0xff] }
0x2848   :  { %v6693_v48 = vpop.eup %6692 }
0x2849   :  { %4459 = vrot.lane.b32.xlu0 %v6691_v47, %s7310_s3 }
0x284b   :  { %4457 = vrot.lane.b32.xlu1 %v6693_v48, %s7310_s3 }
0x28b7   :  { %v4482_v11 = vpop.permute.xlu0 %4481 }
0x28b8   :  { %v4486_v51 = vmul.f32 %v6429_v19, %v4482_v11 }
0x28b9   :  { %v4480_v49 = vpop.permute.xlu1 %4479 }
0x28ba   :  { %v4485_v50 = vmul.f32 %v6430_v24, %v4480_v49 }
0x28bb   :  { %v4460_v52 = vpop.permute.xlu0 %4459 }
0x28bc   :  { %6216 = vmatprep.mubr.msk.f32.mxu0 %vm2703_vm15, %v4485_v50  ;;  %v4464_v53 = vmul.f32 %v6427_v17, %v4460_v52  ;;  %v4832_v17 = vld [vmem:[%s8208_s5 + $0x18] sm:$0xff]  ;;  %v5738_v50 = vld [vmem:[#allocation25] ss:$0 sm:$0xff] }
0x28bd   :  { %6217 = vmatmul.mubr.msk.f32.vlgmr.msra.gmra.mrb[28].mxu0 %vm2703_vm15, %v4486_v51  ;;  %v4458_v20 = vpop.permute.xlu1 %4457  ;;  %v6395_v21 = vpack.c.bf16 %v4832_v17, %v4831_v13 }
0x28be   :  { %v4463_v10 = vmul.f32 %v6428_v23, %v4458_v20  ;;  %6394 = vmatpush3.bf16.msra.mxu0 %v6391_v56 }
0x28bf   :  { %6396 = vmatprep.subr.bf16.mxu0 %v6395_v21 }
0x28c0   :  { %6205 = vmatprep.mubr.msk.f32.mxu1 %vm2703_vm15, %v4463_v10 }
0x28c1   :  { %6206 = vmatmul.mubr.msk.f32.vlgmr.msra.gmra.mrb[32].mxu1 %vm2703_vm15, %v4464_v53 }
0x28c2   :  { %6386 = vmatpush3.bf16.msra.mxu1 %v6383_v15  ;;  %6398 = vmatpush3.bf16.msra.mxu0 %v6395_v21  ;;  %v4945_v21 = vld [vmem:[%s8211_s8 + $0x10] sm:$0xff] }
0x28c3   :  { %6388 = vmatprep.subr.bf16.mxu1 %v6387_v27  ;;  %6263 = vmatprep.subr.mxu0 %v5113_v12 }
0x28c6   :  { %6390 = vmatpush3.bf16.msra.mxu1 %v6387_v27 }
0x28c7   :  { %6400 = vmatprep.subr.bf16.mxu1 %v6399_v59 }
0x2990   :  { %v6218_v16 = vpop.f32.mrb[28].mxu0 }
0x2991   :  { %v4690_v18 = vadd.f32 %v6218_v16, %v5733_v57  ;;  %v4684_v58 = vpop.f32.mrb[29].mxu0  ;;  %v4950_v16 = vld [vmem:[%s8210_s24 + $0x18] sm:$0xff] }
0x2992   :  { %v4685_v31 = vadd.f32 %v5733_v57, %v4684_v58  ;;  %v4949_v57 = vld [vmem:[%s8210_s24 + $0x10] sm:$0xff] }
0x2993   :  { %v5737_v14 = vmul.f32 -1.442695, %v4690_v18 }
0x2994   :  { %v5736_v33 = vmul.f32 -1.442695, %v4685_v31  ;;  %v6207_v63 = vpop.f32.mrb[32].mxu1 }
0x2995   :  { %6694 = vpow2.f32 %v5737_v14  ;;  %v4576_v0 = vadd.f32 %v6207_v63, %v5728_v62  ;;  %v4570_v1 = vpop.f32.mrb[33].mxu1  ;;  %v4944_v63 = vld [vmem:[%s8211_s8 + $0x8] sm:$0xff] }
0x2996   :  { %6696 = vpow2.f32 %v5736_v33  ;;  %v4571_v2 = vadd.f32 %v5728_v62, %v4570_v1  ;;  %v4943_v33 = vld [vmem:[%s8211_s8] sm:$0xff] }
0x2997   :  { %v5732_v5 = vmul.f32 -1.442695, %v4576_v0 }
0x2998   :  { %v5731_v7 = vmul.f32 -1.442695, %v4571_v2 }
0x2999   :  { %6698 = vpow2.f32 %v5732_v5 }
0x299a   :  { %6700 = vpow2.f32 %v5731_v7 }
0x299f   :  { %v6695_v19 = vpop.eup %6694 }
0x29a0   :  { %v6697_v22 = vpop.eup %6696  ;;  %v4700_v23 = vadd.f32 1.0, %v6695_v19 }
0x29a1   :  { %v4699_v24 = vadd.f32 1.0, %v6697_v22  ;;  %v4946_v22 = vld [vmem:[%s8211_s8 + $0x18] sm:$0xff] }
0x29a2   :  { %6702 = vrcp.f32 %v4700_v23  ;;  %v6411_v26 = vpack.c.bf16 %v4946_v22, %v4945_v21 }
0x29a3   :  { %v6699_v28 = vpop.eup %6698  ;;  %6704 = vrcp.f32 %v4699_v24 }
0x29a4   :  { %v6701_v29 = vpop.eup %6700  ;;  %v4586_v30 = vadd.f32 1.0, %v6699_v28 }
0x29a5   :  { %v4585_v9 = vadd.f32 1.0, %v6701_v29 }
0x29a6   :  { %6706 = vrcp.f32 %v4586_v30 }
0x29a7   :  { %6708 = vrcp.f32 %v4585_v9 }
0x29ac   :  { %v6703_v32 = vpop.eup %6702 }
0x29ad   :  { %v6705_v34 = vpop.eup %6704  ;;  %4709 = vrot.lane.b32.xlu0 %v6703_v32, %s7310_s3 }
0x29ae   :  { %4707 = vrot.lane.b32.xlu1 %v6705_v34, %s7310_s3  ;;  %v5214_v34 = vld [vmem:[%s8213_s16] sm:$0xff] }
0x29b0   :  { %v6707_v35 = vpop.eup %6706 }
0x29b1   :  { %v6709_v36 = vpop.eup %6708  ;;  %4595 = vrot.lane.b32.xlu0 %v6707_v35, %s7310_s3  ;;  %v5752_v35 = vld [vmem:[%s8214_s25] ss:$0 sm:$0xff] }
0x29b2   :  { %4593 = vrot.lane.b32.xlu1 %v6709_v36, %s7310_s3 }
0x2a1f   :  { %v4710_v37 = vpop.permute.xlu0 %4709 }
0x2a20   :  { %v4708_v38 = vpop.permute.xlu1 %4707  ;;  %v4714_v40 = vmul.f32 %v4710_v37, %v4690_v18  ;;  %v6403_v18 = vpack.c.bf16 %v4950_v16, %v4949_v57 }
0x2a21   :  { %v4713_v39 = vmul.f32 %v4708_v38, %v4685_v31 }
0x2a23   :  { %v4596_v41 = vpop.permute.xlu0 %4595  ;;  %6238 = vmatprep.mubr.msk.f32.mxu0 %vm2703_vm15, %v4713_v39 }
0x2a24   :  { %6239 = vmatmul.mubr.msk.f32.vlgmr.msra.gmra.mrb[30].mxu0 %vm2703_vm15, %v4714_v40  ;;  %v4594_v6 = vpop.permute.xlu1 %4593  ;;  %v4600_v43 = vmul.f32 %v4596_v41, %v4576_v0  ;;  %v6407_v0 = vpack.c.bf16 %v4944_v63, %v4943_v33 }
0x2a25   :  { %v4599_v42 = vmul.f32 %v4594_v6, %v4571_v2  ;;  %6264 = vmatpush3.msra.mxu0 %v5113_v12 }
0x2a27   :  { %6227 = vmatprep.mubr.msk.f32.mxu1 %vm2703_vm15, %v4599_v42 }
0x2a28   :  { %6228 = vmatmul.mubr.msk.f32.vlgmr.msra.gmra.mrb[34].mxu1 %vm2703_vm15, %v4600_v43 }
0x2a29   :  { %6402 = vmatpush3.bf16.msra.mxu1 %v6399_v59 }
0x2a2a   :  { %6404 = vmatprep.subr.bf16.mxu1 %v6403_v18 }
0x2a2d   :  { %6406 = vmatpush3.bf16.msra.mxu1 %v6403_v18 }
0x2a2e   :  { %6408 = vmatprep.subr.bf16.mxu1 %v6407_v0 }
0x2af7   :  { %v6240_v47 = vpop.f32.mrb[30].mxu0 }
0x2af8   :  { %v4918_v48 = vadd.f32 %v6240_v47, %v5743_v46  ;;  %v4912_v11 = vpop.f32.mrb[31].mxu0 }
0x2af9   :  { %v4913_v49 = vadd.f32 %v5743_v46, %v4912_v11  ;;  %v5305_v46 = vld [vmem:[#allocation28] sm:$0xf]  ;;  %v5757_v11 = vld [vmem:[#allocation9] ss:$0 sm:$0xff] }
0x2afa   :  { %v5747_v51 = vmul.f32 -1.442695, %v4918_v48  ;;  %6273 = vmatprep.subr.msk.mxu0 %vm509_vm0, %v5305_v46 }
0x2afb   :  { %v5746_v52 = vmul.f32 -1.442695, %v4913_v49  ;;  %v6229_v20 = vpop.f32.mrb[34].mxu1 }
0x2afc   :  { %6710 = vpow2.f32 %v5747_v51  ;;  %v4804_v10 = vadd.f32 %v6229_v20, %v5738_v50  ;;  %v4798_v53 = vpop.f32.mrb[35].mxu1 }
0x2afd   :  { %6712 = vpow2.f32 %v5746_v52  ;;  %v4799_v54 = vadd.f32 %v5738_v50, %v4798_v53  ;;  %v5404_v53 = vld [vmem:[#allocation2] sm:$0x1] }
0x2afe   :  { %v5742_v55 = vmul.f32 -1.442695, %v4804_v10 }
0x2aff   :  { %v5741_v56 = vmul.f32 -1.442695, %v4799_v54 }
0x2b00   :  { %6714 = vpow2.f32 %v5742_v55 }
0x2b01   :  { %6716 = vpow2.f32 %v5741_v56 }
0x2b06   :  { %v6711_v58 = vpop.eup %6710 }
0x2b07   :  { %v6713_v31 = vpop.eup %6712  ;;  %v4928_v62 = vadd.f32 1.0, %v6711_v58 }
0x2b08   :  { %v4927_v14 = vadd.f32 1.0, %v6713_v31 }
0x2b09   :  { %6718 = vrcp.f32 %v4928_v62 }
0x2b0a   :  { %v6715_v1 = vpop.eup %6714  ;;  %6720 = vrcp.f32 %v4927_v14 }
0x2b0b   :  { %v6717_v2 = vpop.eup %6716  ;;  %v4814_v5 = vadd.f32 1.0, %v6715_v1 }
0x2b0c   :  { %v4813_v7 = vadd.f32 1.0, %v6717_v2 }
0x2b0d   :  { %6722 = vrcp.f32 %v4814_v5 }
0x2b0e   :  { %6724 = vrcp.f32 %v4813_v7 }
0x2b13   :  { %v6719_v8 = vpop.eup %6718 }
0x2b14   :  { %v6721_v13 = vpop.eup %6720  ;;  %4937 = vrot.lane.b32.xlu0 %v6719_v8, %s7310_s3 }
0x2b15   :  { %4935 = vrot.lane.b32.xlu1 %v6721_v13, %s7310_s3 }
0x2b17   :  { %v6723_v15 = vpop.eup %6722 }
0x2b18   :  { %v6725_v17 = vpop.eup %6724  ;;  %4823 = vrot.lane.b32.xlu0 %v6723_v15, %s7310_s3 }
0x2b19   :  { %4821 = vrot.lane.b32.xlu1 %v6725_v17, %s7310_s3  ;;  %s7172_s3 = scalar_lea.vmem %s5504_s15, 128 }
0x2b1a   :  { %p7173_p4 = scmp.ne.s32.totalorder %s5504_s15, %s7172_s3  ;;  %p7178_p6 = scmp.lt.s32.totalorder %s7172_s3, %s7172_s3 }
0x2b1c   :  { %1670 = vrot.lane.b32.xlu0 %v7837_v4, %s7306_s18  ;;  %s8215_s18 = sld [smem:[#allocation60_spill]]  ;;  %p7179_p7 = por %p7178_p6, %p7177_p5 }
0x2b1d   :  { %5407 = vperm.xlu1 %6548, %v5404_v53  }
0x2b1e   :  { %p7180_p8 = pnand %p7179_p7, %p7173_p4 }
0x2b22   :  { %v5686_v47 = vld [vmem:[%s8215_s18] ss:$0 sm:$0xff] }
0x2b86   :  { %v4938_v19 = vpop.permute.xlu0 %4937 }
0x2b87   :  { %v4936_v23 = vpop.permute.xlu1 %4935  ;;  %v4942_v25 = vmul.f32 %v4938_v19, %v4918_v48 }
0x2b88   :  { %v4941_v24 = vmul.f32 %v4936_v23, %v4913_v49 }
0x2b8a   :  { %v4824_v27 = vpop.permute.xlu0 %4823  ;;  %6249 = vmatprep.mubr.msk.f32.mxu1 %vm2703_vm15, %v4941_v24 }
0x2b8b   :  { %6250 = vmatmul.mubr.msk.f32.vlgmr.msra.gmra.mrb[36].mxu1 %vm2703_vm15, %v4942_v25  ;;  %v4822_v28 = vpop.permute.xlu1 %4821  ;;  %v4828_v4 = vmul.f32 %v4824_v27, %v4804_v10  ;;  %v7311_v10 = vmov 0.0|0.0  }
0x2b8c   :  { %v4827_v29 = vmul.f32 %v4822_v28, %v4799_v54  ;;  %6410 = vmatpush3.bf16.msra.mxu1 %v6407_v0  ;;  %v5760_v54 = vld [vmem:[#allocation27] ss:$0 sm:$0xff] }
0x2b8d   :  { %6412 = vmatprep.subr.bf16.mxu1 %v6411_v26 }
0x2b8e   :  { %v1671_v30 = vpop.permute.xlu0 %1670  ;;  %6260 = vmatprep.mubr.msk.f32.mxu1 %vm2703_vm15, %v4827_v29 }
0x2b8f   :  { %1673 = vst.msk [vmem:[#allocation37] sm:$0xff] %vm596_vm3, %v1671_v30 }
0x2b90   :  { %6414 = vmatpush3.bf16.msra.mxu1 %v6411_v26 }
0x2b91   :  { %6268 = vmatprep.subr.mxu1 %v5214_v34 }
0x2b93   :  { %6261 = vmatmul.mubr.msk.f32.vlgmr.msra.gmra.mrb[36].mxu1 %vm2703_vm15, %v4828_v4 }
0x2b94   :  { %6269 = vmatpush3.msra.mxu1 %v5214_v34 }
0x2c66   :  { %v6262_v9 = vpop.f32.mrb[36].mxu1 }
0x2c67   :  { %v5104_v32 = vpop.f32.mrb[37].mxu1 }
0x2c68   :  { %6265 = vmatprep.mubr.msk.f32.mxu0 %vm596_vm3, %v5104_v32 }
0x2c69   :  { %6266 = vmatmul.mubr.msk.f32.vlgmr.msra.gmra.mrb[32].mxu0 %vm596_vm3, %v6262_v9 }
0x2c6a   :  { %6274 = vmatpush3.msk.msra.mxu0 %vm509_vm0, %v5305_v46 }
0x2c6b   :  { %6415 = vmatprep.subr.bf16.mxu0 %v7311_v10 }
0x2d3c   :  { %v6267_v36 = vpop.f32.mrb[32].mxu0 }
0x2d3d   :  { %v5199_v37 = vadd.f32 %v6267_v36, %v5752_v35  ;;  %v5193_v38 = vpop.f32.mrb[33].mxu0 }
0x2d3e   :  { %v5194_v39 = vadd.f32 %v5752_v35, %v5193_v38 }
0x2d3f   :  { %v5756_v40 = vmul.f32 -1.442695, %v5199_v37 }
0x2d40   :  { %v5755_v41 = vmul.f32 -1.442695, %v5194_v39 }
0x2d41   :  { %6726 = vpow2.f32 %v5756_v40 }
0x2d42   :  { %6728 = vpow2.f32 %v5755_v41 }
0x2d4b   :  { %v6727_v6 = vpop.eup %6726 }
0x2d4c   :  { %v6729_v42 = vpop.eup %6728  ;;  %v5209_v43 = vadd.f32 1.0, %v6727_v6 }
0x2d4d   :  { %v5208_v44 = vadd.f32 1.0, %v6729_v42 }
0x2d4f   :  { %6730 = vrcp.f32 %v5208_v44 }
0x2d50   :  { %6732 = vrcp.f32 %v5209_v43 }
0x2d59   :  { %v6731_v45 = vpop.eup %6730 }
0x2d5a   :  { %v6733_v59 = vpop.eup %6732  ;;  %6270 = vmatprep.mubr.msk.f32.mxu1 %vm596_vm3, %v6731_v45 }
0x2d5b   :  { %6271 = vmatmul.mubr.msk.f32.vlgmr.msra.gmra.mrb[22].mxu1 %vm596_vm3, %v6733_v59 }
0x2e2e   :  { %v6272_v48 = vpop.f32.mrb[22].mxu1 }
0x2e2f   :  { %v6423_v49 = vadd.f32 %v6272_v48, %v5686_v47  ;;  %v5294_v50 = vpop.f32.mrb[23].mxu1 }
0x2e30   :  { %v6425_v51 = vadd.f32 %v5686_v47, %v5294_v50 }
0x2e31   :  { %v6424_v20 = vadd.f32 %v6423_v49, %v5757_v11 }
0x2e32   :  { %v6426_v52 = vadd.f32 %v6425_v51, %v5757_v11 }
0x2e34   :  { %6275 = vmatprep.mubr.msk.f32.mxu0 %vm502_vm1, %v6426_v52 }
0x2e35   :  { %6276 = vmatmul.mubr.msk.f32.vlgmr.msra.gmra.mrb[34].mxu0 %vm502_vm1, %v6424_v20 }
0x2e36   :  { %6282 = vmatprep.mubr.msk.f32.mxu0 %vm7303_vm2, %v7302_v3  ;;  %v5403_v3 = vld [vmem:[#allocation30] sm:$0x1] }
0x2f08   :  { %v6277_v55 = vpop.f32.mrb[34].mxu0 }
0x2f09   :  { %v5394_v56 = vadd.f32 %v6277_v55, %v5760_v54  ;;  %v5388_v57 = vpop.f32.mrb[35].mxu0 }
0x2f0a   :  { %v5389_v16 = vadd.f32 %v5760_v54, %v5388_v57 }
0x2f0b   :  { %vm5398_vm0 = vcmp.ge.f32.partialorder %v5394_v56, 0.0  ;;  %v5400_v18 = vmul.f32 0.01, %v5394_v56 }
0x2f0c   :  { %vm5397_vm3 = vcmp.ge.f32.partialorder %v5389_v16, 0.0  ;;  %v5399_v58 = vmul.f32 0.01, %v5389_v16 }
0x2f0d   :  { %v5402_v31 = vsel %vm5398_vm0, %v5394_v56, %v5400_v18 }
0x2f0e   :  { %v5401_v62 = vsel %vm5397_vm3, %v5389_v16, %v5399_v58 }
0x2f0f   :  { %v6416_v14 = vpack.c.bf16 %v5402_v31, %v5401_v62 }
0x2f11   :  { %6418 = vmatpush3.bf16.xpose.msk.msra.mxu0 %vm6417_vm4, %v6416_v14 }
0x2f18   :  { %6283 = vmatmul.mubr.msk.f32.vlgmr.msra.gmra.mrb[36].mxu0 %vm502_vm1, %v5403_v3 }
0x2f19   :  { %7183 = shalt.err (!%p7180_p8)
}
0x2f1a   :  { %s7184_s23 = scalar_lea.hbm %s7624_s7, 128 }
0x2f1b   :  { %p7185_p9 = scmp.ne.s32.totalorder %s7624_s7, %s7184_s23  ;;  %p7188_p10 = scmp.lt.u32.totalorder %s7184_s23, %s7624_s7 }
0x2f1d   :  { %p7190_p11 = pnand %p7188_p10, %p7185_p9 }
0x2f1f   :  { %7193 = shalt.err (!%p7190_p11)
}
0x2f20   :  { %5506 = dma.vmem_to_hbm [thread:$0]  %s5504_s15, 128, %s7624_s7, [#allocation5]   ;;  %v5408_v33 = vpop.permute.xlu1 %5407  ;;  %vm5493_vm1 = vcmask 122880  }
0x2f21   :  { %v5413_v63 = vrot.slane %v5408_v33, %v1576_v61 }
0x2feb   :  { %v5489_v0 = vpop.f32.mrb[36].mxu0 }
0x2fec   :  { %v5490_v1 = vadd.f32 %v5489_v0, %v5413_v63  ;;  %v6284_v2 = vpop.f32.mrb[37].mxu0 }
0x2fee   :  { %5494 = vst.msk [vmem:[%s7619_s12] sm:$0x1] %vm5493_vm1, %v5490_v1 }
0x2fef   :  { %7218 = dma.done.wait [#allocation5], 128  }
0x2ff0   :  { %7219 = vsyncadd [#allocation5], 4294967168 }
0x2ff1   :  { %5512 = vsyncpa [#allocation4], 1 }
0x2ff2   :  { %5513 = vsyncpa [#allocation11], 1 }
0x2ff3   :  { %5514 = vsyncpa [#allocation14], 1 }
0x2ff4   :  { %5515 = vsyncpa [#allocation17], 1 }
0x2ff5   :  { %5516 = vsyncpa [#allocation20], 1 }
0x2ff6   :  { %5517 = vsyncpa [#allocation23], 1 }
0x2ff7   :  { %5518 = vsyncpa [#allocation26], 1 }
0x2ff8   :  { %5519 = vsyncpa [#allocation29], 1 }
0x2ff9   :  { %5520 = vsyncpa [#allocation32], 1 }
0x2ffa   :  { %5521 = vsyncpa [#allocation35], 1 }
0x2ffb   :  { %5522 = vsyncpa [#allocation5], 1 }
0x2ffc   :  { %5523 = vsyncpa [#allocation6], 1 }
0x2ffd   :  { %5524 = vsyncpa [#allocation8], 1 }

</bundles_post_ra>
